<compile_context>
chip_gen: v7x
topology: tpu7x:2x2x1
jax: 0.10.0
libtpu: 0.0.40
codegen_flags: <defaults>
</compile_context>

<pallas_src>
import functools

import jax
import jax.numpy as jnp
from jax.experimental import pallas as pl


# ----------------------------------------------------------------------------
# Fused kernel: all 26 GRU "heads" (24 pose + shape + cam) in one invocation.
# ----------------------------------------------------------------------------
def _fused_gru_kernel(h_ref, x_ref, whzr_ref, whq_ref, wx_ref, b_ref, out_ref):
    h = h_ref[...]                                   # (G, B, H)
    x = x_ref[...]                                   # (B, D)
    G, B, H = h.shape
    D = x.shape[-1]

    ein = functools.partial(jnp.einsum, preferred_element_type=jnp.float32)

    # x is shared by every head: broadcast once in VMEM, then one batched
    # matmul covering all heads AND all three gates (z|r|q on the lane axis),
    # plus one wide bias add.
    xb = jnp.broadcast_to(x[None], (G, B, D))                    # (G, B, D)
    xw = ein("gbd,gdk->gbk", xb, wx_ref[...]) + b_ref[...]       # (G, B, 3H)

    # h-path: z and r gates fused into a single batched matmul.
    hzr = ein("gbh,ghk->gbk", h, whzr_ref[...])                  # (G, B, 2H)

    z = jax.nn.sigmoid(hzr[..., :H] + xw[..., :H])
    r = jax.nn.sigmoid(hzr[..., H:] + xw[..., H:2 * H])

    hq = ein("gbh,ghk->gbk", r * h, whq_ref[...])                # (G, B, H)
    q = jnp.tanh(hq + xw[..., 2 * H:])

    out_ref[...] = (1.0 - z) * h + z * q


def fused_gru(h_all, x, packed):
    """All GRU heads at once.  h_all: (G, B, H), x: (B, D)."""
    whzr, whq, wx, b = packed
    G, B, H = h_all.shape
    # Single grid step; every tensor is a whole-array VMEM block (loaded once).
    return pl.pallas_call(
        _fused_gru_kernel,
        out_shape=jax.ShapeDtypeStruct((G, B, H), jnp.float32),
    )(h_all, x, whzr, whq, wx, b)


# ----------------------------------------------------------------------------
# UpdateBlock forward
# ----------------------------------------------------------------------------
def update_block(hpose, hshape, hcam, loc, pose, shape, cam, packed):
    """hpose: (B, N, H), hshape/hcam: (B, H), loc/pose/shape/cam: (B, *) -> D."""
    x = jnp.concatenate([loc, pose, shape, cam], axis=-1)                 # (B, D)
    B, N, H = hpose.shape
    # Heads lead so the kernel's batched matmuls need no in-kernel transposes;
    # torch's x[:, None, :].repeat(1, N, 1) is a kernel-internal broadcast.
    h_all = jnp.concatenate(
        [jnp.transpose(hpose, (1, 0, 2)), hshape[None], hcam[None]], axis=0)  # (G,B,H)
    h_new = fused_gru(h_all, x, packed)                                   # (G, B, H)
    hpose_new = jnp.transpose(h_new[:N], (1, 0, 2))                       # (B, N, H)
    return hpose_new, h_new[N], h_new[N + 1]


# ----------------------------------------------------------------------------
# Parameter construction (per-gate, "natural" layout) + one-time packing
# ----------------------------------------------------------------------------
def make_gru_params(key, H, D):
    ks = jax.random.split(key, 9)
    s = 1.0 / jnp.sqrt(H + D)
    shapes = [(H, H), (D, H), (1, H)] * 3   # Wzh,Wzx,bz, Wrh,Wrx,br, Wqh,Wqx,bq
    return tuple(jax.random.normal(k, sh, jnp.float32) * s for k, sh in zip(ks, shapes))


def make_multi_gru_params(key, N, H, D):
    ks = jax.random.split(key, 9)
    s = 1.0 / jnp.sqrt(H + D)
    shapes = [(N, H, H), (N, D, H), (N, 1, H)] * 3
    return tuple(jax.random.normal(k, sh, jnp.float32) * s for k, sh in zip(ks, shapes))


def pack_params(params):
    """Stack pose heads + shape + cam GRUs into the fused, gate-stacked layout."""
    per_head = lambda p: tuple(a[None] for a in p)        # plain GRU -> 1 head
    heads = [params["pose"], per_head(params["shape"]), per_head(params["cam"])]
    wzh, wzx, bz, wrh, wrx, br, wqh, wqx, bq = (
        jnp.concatenate([h[i] for h in heads], axis=0) for i in range(9))
    whzr = jnp.concatenate([wzh, wrh], axis=-1)           # (G, H, 2H)
    whq = wqh                                             # (G, H, H)
    wx = jnp.concatenate([wzx, wrx, wqx], axis=-1)        # (G, D, 3H)
    b = jnp.concatenate([bz, br, bq], axis=-1)            # (G, 1, 3H)
    return whzr, whq, wx, b


# ----------------------------------------------------------------------------
# Pure-JAX references for validation
# ----------------------------------------------------------------------------
def gru_ref(h, x, p):
    wzh, wzx, bz, wrh, wrx, br, wqh, wqx, bq = p
    z = jax.nn.sigmoid(h @ wzh + x @ wzx + bz)
    r = jax.nn.sigmoid(h @ wrh + x @ wrx + br)
    q = jnp.tanh((r * h) @ wqh + x @ wqx + bq)
    return (1.0 - z) * h + z * q


def multi_gru_ref(h_bnh, x, p):
    wzh, wzx, bz, wrh, wrx, br, wqh, wqx, bq = p
    xh = jnp.broadcast_to(x[:, None, :], (h_bnh.shape[0], wzh.shape[0], x.shape[-1]))
    mm = lambda a, w: jnp.einsum("bnk,nkh->bnh", a, w)
    z = jax.nn.sigmoid(mm(h_bnh, wzh) + mm(xh, wzx) + bz[None, :, 0, :])
    r = jax.nn.sigmoid(mm(h_bnh, wrh) + mm(xh, wrx) + br[None, :, 0, :])
    q = jnp.tanh(mm(r * h_bnh, wqh) + mm(xh, wqx) + bq[None, :, 0, :])
    return (1.0 - z) * h_bnh + z * q


# ----------------------------------------------------------------------------
if __name__ == "__main__":
    B, N_HEAD, H = 2, 24, 32
    LOC, POSE, SHAPE, CAM = 8, 32, 16, 8
    D = LOC + POSE + SHAPE + CAM                       # input_dim = 64

    root = jax.random.PRNGKey(0)
    k_in, k_p, k_s, k_c = jax.random.split(root, 4)
    ki = jax.random.split(k_in, 7)

    hpose = jax.random.normal(ki[0], (B, N_HEAD, H), jnp.float32)
    hshape = jax.random.normal(ki[1], (B, H), jnp.float32)
    hcam = jax.random.normal(ki[2], (B, H), jnp.float32)
    loc = jax.random.normal(ki[3], (B, LOC), jnp.float32)
    pose = jax.random.normal(ki[4], (B, POSE), jnp.float32)
    shape = jax.random.normal(ki[5], (B, SHAPE), jnp.float32)
    cam = jax.random.normal(ki[6], (B, CAM), jnp.float32)

    params = {
        "pose": make_multi_gru_params(k_p, N_HEAD, H, D),
        "shape": make_gru_params(k_s, H, D),
        "cam": make_gru_params(k_c, H, D),
    }
    packed = pack_params(params)   # one-time parameter repack (not in hot path)

    fwd = jax.jit(update_block)
    hpose_o, hshape_o, hcam_o = fwd(hpose, hshape, hcam, loc, pose, shape, cam, packed)
    jax.block_until_ready((hpose_o, hshape_o, hcam_o))

    # Pure-JAX reference check.
    x = jnp.concatenate([loc, pose, shape, cam], axis=-1)
    hpose_r = multi_gru_ref(hpose, x, params["pose"])
    hshape_r = gru_ref(hshape, x, params["shape"])
    hcam_r = gru_ref(hcam, x, params["cam"])

    assert jnp.allclose(hpose_o, hpose_r, atol=1e-5), "pose GRU mismatch"
    assert jnp.allclose(hshape_o, hshape_r, atol=1e-5), "shape GRU mismatch"
    assert jnp.allclose(hcam_o, hcam_r, atol=1e-5), "cam GRU mismatch"

    print("KERNEL_OK")
</pallas_src>

<mosaic_0001>
module attributes {stable_mosaic.version = 11 : i64} {
  func.func @_fused_gru_kernel(%arg0: memref<26x2x32xf32, #tpu.memory_space<vmem>>, %arg1: memref<2x64xf32, #tpu.memory_space<vmem>>, %arg2: memref<26x32x64xf32, #tpu.memory_space<vmem>>, %arg3: memref<26x32x32xf32, #tpu.memory_space<vmem>>, %arg4: memref<26x64x96xf32, #tpu.memory_space<vmem>>, %arg5: memref<26x1x96xf32, #tpu.memory_space<vmem>>, %arg6: memref<26x2x32xf32, #tpu.memory_space<vmem>>) attributes {dimension_semantics = [], scalar_prefetch = 0 : i64, scratch_operands = 0 : i64, tpu.core_type = #tpu.core_type<tc>} {
    %c0 = arith.constant 0 : index
    %c0_0 = arith.constant 0 : index
    %c0_1 = arith.constant 0 : index
    %0 = vector.load %arg0[%c0, %c0_0, %c0_1] : memref<26x2x32xf32, #tpu.memory_space<vmem>>, vector<26x2x32xf32>
    %c0_2 = arith.constant 0 : index
    %c0_3 = arith.constant 0 : index
    %1 = vector.load %arg1[%c0_2, %c0_3] : memref<2x64xf32, #tpu.memory_space<vmem>>, vector<2x64xf32>
    %2 = vector.shape_cast %1 : vector<2x64xf32> to vector<1x2x64xf32>
    %3 = vector.shape_cast %2 : vector<1x2x64xf32> to vector<1x2x64xf32>
    %4 = vector.broadcast %3 : vector<1x2x64xf32> to vector<26x2x64xf32>
    %c0_4 = arith.constant 0 : index
    %c0_5 = arith.constant 0 : index
    %c0_6 = arith.constant 0 : index
    %5 = vector.load %arg4[%c0_4, %c0_5, %c0_6] : memref<26x64x96xf32, #tpu.memory_space<vmem>>, vector<26x64x96xf32>
    "tpu.trace_start"() <{level = 10 : i32, message = "gbd,gdk->gbk"}> : () -> ()
    %cst = arith.constant dense<0.000000e+00> : vector<26x2x96xf32>
    %6 = tpu.matmul %4, %5, %cst {dimension_numbers = #tpu.dot_dimension_numbers<[2], [1], [1], [2], [0, 0, 0, 1, 1, 2], [0], [0]>} : vector<26x2x64xf32>, vector<26x64x96xf32>, vector<26x2x96xf32> -> vector<26x2x96xf32>
    "tpu.trace_stop"() : () -> ()
    %c0_7 = arith.constant 0 : index
    %c0_8 = arith.constant 0 : index
    %c0_9 = arith.constant 0 : index
    %7 = vector.load %arg5[%c0_7, %c0_8, %c0_9] : memref<26x1x96xf32, #tpu.memory_space<vmem>>, vector<26x1x96xf32>
    %8 = vector.broadcast %7 : vector<26x1x96xf32> to vector<26x2x96xf32>
    %9 = arith.addf %6, %8 : vector<26x2x96xf32>
    %c0_10 = arith.constant 0 : index
    %c0_11 = arith.constant 0 : index
    %c0_12 = arith.constant 0 : index
    %10 = vector.load %arg2[%c0_10, %c0_11, %c0_12] : memref<26x32x64xf32, #tpu.memory_space<vmem>>, vector<26x32x64xf32>
    "tpu.trace_start"() <{level = 10 : i32, message = "gbh,ghk->gbk"}> : () -> ()
    %cst_13 = arith.constant dense<0.000000e+00> : vector<26x2x64xf32>
    %11 = tpu.matmul %0, %10, %cst_13 {dimension_numbers = #tpu.dot_dimension_numbers<[2], [1], [1], [2], [0, 0, 0, 1, 1, 2], [0], [0]>} : vector<26x2x32xf32>, vector<26x32x64xf32>, vector<26x2x64xf32> -> vector<26x2x64xf32>
    "tpu.trace_stop"() : () -> ()
    %12 = vector.extract_strided_slice %11 {offsets = [0, 0, 0], sizes = [26, 2, 32], strides = [1, 1, 1]} : vector<26x2x64xf32> to vector<26x2x32xf32>
    %13 = vector.extract_strided_slice %9 {offsets = [0, 0, 0], sizes = [26, 2, 32], strides = [1, 1, 1]} : vector<26x2x96xf32> to vector<26x2x32xf32>
    %14 = arith.addf %12, %13 : vector<26x2x32xf32>
    %15 = arith.negf %14 : vector<26x2x32xf32>
    %16 = math.exp %15 : vector<26x2x32xf32>
    %cst_14 = arith.constant 1.000000e+00 : f32
    %17 = vector.broadcast %cst_14 : f32 to vector<26x2x32xf32>
    %18 = arith.addf %17, %16 : vector<26x2x32xf32>
    %19 = arith.divf %17, %18 : vector<26x2x32xf32>
    %20 = vector.extract_strided_slice %11 {offsets = [0, 0, 32], sizes = [26, 2, 32], strides = [1, 1, 1]} : vector<26x2x64xf32> to vector<26x2x32xf32>
    %21 = vector.extract_strided_slice %9 {offsets = [0, 0, 32], sizes = [26, 2, 32], strides = [1, 1, 1]} : vector<26x2x96xf32> to vector<26x2x32xf32>
    %22 = arith.addf %20, %21 : vector<26x2x32xf32>
    %23 = arith.negf %22 : vector<26x2x32xf32>
    %24 = math.exp %23 : vector<26x2x32xf32>
    %cst_15 = arith.constant 1.000000e+00 : f32
    %25 = vector.broadcast %cst_15 : f32 to vector<26x2x32xf32>
    %26 = arith.addf %25, %24 : vector<26x2x32xf32>
    %27 = arith.divf %25, %26 : vector<26x2x32xf32>
    %28 = arith.mulf %27, %0 : vector<26x2x32xf32>
    %c0_16 = arith.constant 0 : index
    %c0_17 = arith.constant 0 : index
    %c0_18 = arith.constant 0 : index
    %29 = vector.load %arg3[%c0_16, %c0_17, %c0_18] : memref<26x32x32xf32, #tpu.memory_space<vmem>>, vector<26x32x32xf32>
    "tpu.trace_start"() <{level = 10 : i32, message = "gbh,ghk->gbk"}> : () -> ()
    %cst_19 = arith.constant dense<0.000000e+00> : vector<26x2x32xf32>
    %30 = tpu.matmul %28, %29, %cst_19 {dimension_numbers = #tpu.dot_dimension_numbers<[2], [1], [1], [2], [0, 0, 0, 1, 1, 2], [0], [0]>} : vector<26x2x32xf32>, vector<26x32x32xf32>, vector<26x2x32xf32> -> vector<26x2x32xf32>
    "tpu.trace_stop"() : () -> ()
    %31 = vector.extract_strided_slice %9 {offsets = [0, 0, 64], sizes = [26, 2, 32], strides = [1, 1, 1]} : vector<26x2x96xf32> to vector<26x2x32xf32>
    %32 = arith.addf %30, %31 : vector<26x2x32xf32>
    %33 = math.tanh %32 : vector<26x2x32xf32>
    %cst_20 = arith.constant 1.000000e+00 : f32
    %34 = vector.broadcast %cst_20 : f32 to vector<26x2x32xf32>
    %35 = arith.subf %34, %19 : vector<26x2x32xf32>
    %36 = arith.mulf %35, %0 : vector<26x2x32xf32>
    %37 = arith.mulf %19, %33 : vector<26x2x32xf32>
    %38 = arith.addf %36, %37 : vector<26x2x32xf32>
    %c0_21 = arith.constant 0 : index
    %c0_22 = arith.constant 0 : index
    %c0_23 = arith.constant 0 : index
    %39 = vector.load %arg6[%c0_21, %c0_22, %c0_23] : memref<26x2x32xf32, #tpu.memory_space<vmem>>, vector<26x2x32xf32>
    tpu.vector_store %arg6[%c0_21, %c0_22, %c0_23], %38 {strides = array<i32>} : memref<26x2x32xf32, #tpu.memory_space<vmem>>, vector<26x2x32xf32>,
    return
  }
}

</mosaic_0001>

<bundles_post_ra>
// kernel: update_block.1
= control target key start
LH: loop header
LB: loop body
LE: loop exit
PB: predicated region body
PF: predicated region fallthrough
CT: control target
= control target key end

     0   :  { %11 = vsyncpa [#allocation3], 0  ;;  %s10899_s0 = inlined_call_operand.vmem [shape: f32[26,2,32], index: 0, kind: input, shape index: {}]   ;;  %s10900_s1 = inlined_call_operand.vmem [shape: f32[2,64], index: 1, kind: input, shape index: {}]   ;;  %s10901_s2 = inlined_call_operand.hbm [shape: f32[26,32,64], index: 2, kind: input, shape index: {}]   ;;  %s10902_s3 = inlined_call_operand.hbm [shape: f32[26,32,32], index: 3, kind: input, shape index: {}]   ;;  %s10903_s4 = inlined_call_operand.hbm [shape: f32[26,64,96], index: 4, kind: input, shape index: {}]   ;;  %s10904_s5 = inlined_call_operand.vmem [shape: f32[26,1,96], index: 5, kind: input, shape index: {}]   ;;  %s10905_s6 = inlined_call_operand.vmem [shape: f32[26,2,32], index: 6, kind: output, shape index: {}]  }
   0x1   :  { %12 = vsyncpa [#allocation5], 0  ;;  %s9493_s21 = smov [#allocation4]   ;;  %s9494_s23 = smov [#allocation2]  }
   0x2   :  { %s34_s22 = sshll.u32 %s9493_s21, 4  ;;  %s22_s24 = sshll.u32 %s9494_s23, 4  ;;  %s35_s22 = int_to_ptr.vmem [resolvable:$true] %s34_s22  ;;  %s9539_s24 = int_to_ptr.vmem [resolvable:$true] %s22_s24 }
   0x3   :  { %s9423_s27 = scalar_lea.hbm %s10902_s3, 13312 }
   0x4   :  { %p9424_p0 = scmp.ne.s32.totalorder %s10902_s3, %s9423_s27  ;;  %p9427_p1 = scmp.lt.u32.totalorder %s9423_s27, %s10902_s3 }
   0x6   :  { %p9429_p2 = pnand %p9427_p1, %p9424_p0 }
   0x8   :  { %9432 = shalt.err (!%p9429_p2)
}
   0x9   :  { %s9433_s8 = scalar_lea.vmem %s35_s22, 13312  ;;  %p9438_p4 = scmp.lt.s32.totalorder %s35_s22, %s35_s22 }
   0xa   :  { %p9434_p3 = scmp.ne.s32.totalorder %s35_s22, %s9433_s8  ;;  %p9439_p5 = scmp.lt.s32.totalorder %s9433_s8, %s9433_s8 }
   0xc   :  { %p9440_p6 = por %p9439_p5, %p9438_p4 }
   0xe   :  { %p9441_p7 = pnand %p9440_p6, %p9434_p3 }
  0x10   :  { %9444 = shalt.err (!%p9441_p7)
}
  0x11   :  { %s9495_s9 = smov 128   ;;  %s9496_s10 = smov 8  }
  0x12   :  { %40 = dma.hbm_to_vmem [thread:$0]  %s10902_s3, 13312, %s35_s22, [#allocation5], %s9495_s9, %s9495_s9, %s9496_s10  }
  0x13   :  { %s9445_s15 = scalar_lea.hbm %s10901_s2, 13312 }
  0x14   :  { %p9446_p8 = scmp.ne.s32.totalorder %s10901_s2, %s9445_s15  ;;  %p9449_p9 = scmp.lt.u32.totalorder %s9445_s15, %s10901_s2 }
  0x16   :  { %p9451_p10 = pnand %p9449_p9, %p9446_p8 }
  0x18   :  { %9454 = shalt.err (!%p9451_p10)
}
  0x19   :  { %s9455_s20 = scalar_lea.vmem %s9539_s24, 13312  ;;  %p9460_p12 = scmp.lt.s32.totalorder %s9539_s24, %s9539_s24 }
  0x1a   :  { %p9456_p11 = scmp.ne.s32.totalorder %s9539_s24, %s9455_s20  ;;  %p9461_p13 = scmp.lt.s32.totalorder %s9455_s20, %s9455_s20 }
  0x1c   :  { %p9462_p0 = por %p9461_p13, %p9460_p12 }
  0x1e   :  { %p9463_p1 = pnand %p9462_p0, %p9456_p11 }
  0x20   :  { %9466 = shalt.err (!%p9463_p1)
}
  0x21   :  { %28 = dma.hbm_to_vmem [thread:$0]  %s10901_s2, 13312, %s9539_s24, [#allocation3], %s9495_s9, %s9495_s9, %s9496_s10  }
  0x22   :  { %s9497_s22 = smov [#allocation6]   ;;  %s9467_s27 = scalar_lea.hbm %s10903_s4, 26624 }
  0x23   :  { %s46_s23 = sshll.u32 %s9497_s22, 4  ;;  %p9468_p2 = scmp.ne.s32.totalorder %s10903_s4, %s9467_s27  ;;  %s47_s23 = int_to_ptr.vmem [resolvable:$true] %s46_s23 }
  0x24   :  { %p9471_p3 = scmp.lt.u32.totalorder %s9467_s27, %s10903_s4 }
  0x26   :  { %p9473_p4 = pnand %p9471_p3, %p9468_p2 }
  0x28   :  { %9476 = shalt.err (!%p9473_p4)
}
  0x29   :  { %s9477_s8 = scalar_lea.vmem %s47_s23, 26624  ;;  %p9482_p6 = scmp.lt.s32.totalorder %s47_s23, %s47_s23 }
  0x2a   :  { %p9478_p5 = scmp.ne.s32.totalorder %s47_s23, %s9477_s8  ;;  %p9483_p7 = scmp.lt.s32.totalorder %s9477_s8, %s9477_s8 }
  0x2c   :  { %p9484_p8 = por %p9483_p7, %p9482_p6 }
  0x2e   :  { %p9485_p9 = pnand %p9484_p8, %p9478_p5 }
  0x30   :  { %9488 = shalt.err (!%p9485_p9)
}
  0x31   :  { %52 = dma.hbm_to_vmem [thread:$0]  %s10903_s4, 26624, %s47_s23, [#allocation5], %s9495_s9, %s9495_s9, %s9496_s10  }
  0x32   :  { %9489 = dma.done.wait [#allocation3], 13312  }
  0x33   :  { %9490 = vsyncadd [#allocation3], 4294953984 }
  0x34   :  { %9491 = dma.done.wait [#allocation5], 39936  }
  0x35   :  { %9492 = vsyncadd [#allocation5], 4294927360  ;;  %v10908_v0 = vmov 0.0|0.0   ;;  %vm9499_vm0 = vmmov 0   ;;  %v10906_v1 = vmov 0.0   ;;  %v91_v2 = vld [vmem:[#allocation6] sm:$0xff] }
  0x36   :  { %8605 = vmatprep.subr.bf16.mxu0 %v10908_v0  ;;  %8617 = vmatprep.subr.bf16.mxu1 %v10908_v0  ;;  %v92_v3 = vld [vmem:[#allocation6 + $0x8] sm:$0xff]  ;;  %v99_v4 = vld [vmem:[#allocation6 + $0x40] sm:$0xff]  ;;  %v93_v7 = vld [vmem:[#allocation6 + $0x10] sm:$0xff]  ;;  %vm481_vm1 = vcmask 523264   ;;  %s9501_s14 = smov 32   ;;  %vm2409_vm2 = vcmask 261120  }
  0x37   :  { %7555 = vmatprep.mubr.msk.f32.mxu0 %vm9499_vm0, %v10906_v1  ;;  %7574 = vmatprep.mubr.msk.f32.mxu1 %vm9499_vm0, %v10906_v1  ;;  %v8606_v5 = vpack.c.bf16 %v92_v3, %v91_v2  ;;  %v100_v6 = vld [vmem:[#allocation6 + $0x48] sm:$0xff]  ;;  %v94_v8 = vld [vmem:[#allocation6 + $0x18] sm:$0xff]  ;;  %v101_v10 = vld [vmem:[#allocation6 + $0x50] sm:$0xff]  ;;  %s9502_s30 = smov 96   ;;  %vm6882_vm3 = vcmask 254976  }
  0x38   :  { %v8618_v9 = vpack.c.bf16 %v100_v6, %v99_v4  ;;  %v102_v11 = vld [vmem:[#allocation6 + $0x58] sm:$0xff]  ;;  %v8609_v12 = vpack.c.bf16 %v94_v8, %v93_v7  ;;  %v95_v14 = vld [vmem:[#allocation6 + $0x20] sm:$0xff]  ;;  %v96_v15 = vld [vmem:[#allocation6 + $0x28] sm:$0xff] }
  0x39   :  { %8607 = vmatpush3.bf16.msra.mxu0 %v8606_v5  ;;  %v8621_v13 = vpack.c.bf16 %v102_v11, %v101_v10  ;;  %v103_v16 = vld [vmem:[#allocation6 + $0x60] sm:$0xff]  ;;  %v104_v17 = vld [vmem:[#allocation6 + $0x68] sm:$0xff]  ;;  %v8612_v18 = vpack.c.bf16 %v96_v15, %v95_v14  ;;  %v97_v20 = vld [vmem:[#allocation6 + $0x30] sm:$0xff] }
  0x3a   :  { %8619 = vmatpush3.bf16.msra.mxu1 %v8618_v9  ;;  %8608 = vmatprep.subr.bf16.mxu0 %v10908_v0  ;;  %v8624_v19 = vpack.c.bf16 %v104_v17, %v103_v16  ;;  %v98_v21 = vld [vmem:[#allocation6 + $0x38] sm:$0xff]  ;;  %v105_v22 = vld [vmem:[#allocation6 + $0x70] sm:$0xff]  ;;  %v107_v26 = vld [vmem:[#allocation6 + $0x80] sm:$0xff] }
  0x3b   :  { %8620 = vmatprep.subr.bf16.mxu1 %v10908_v0  ;;  %v106_v23 = vld [vmem:[#allocation6 + $0x78] sm:$0xff]  ;;  %v8615_v24 = vpack.c.bf16 %v98_v21, %v97_v20  ;;  %v108_v27 = vld [vmem:[#allocation6 + $0x88] sm:$0xff]  ;;  %v115_v28 = vld [vmem:[#allocation6 + $0xc0] sm:$0xff] }
  0x3c   :  { %v8627_v25 = vpack.c.bf16 %v106_v23, %v105_v22  ;;  %v116_v29 = vld [vmem:[#allocation6 + $0xc8] sm:$0xff]  ;;  %v9606_v30 = vld [vmem:[%s10900_s1] sm:$0x3]  ;;  %v8630_v31 = vpack.c.bf16 %v108_v27, %v107_v26  ;;  %v109_v33 = vld [vmem:[#allocation6 + $0x90] sm:$0xff] }
  0x3d   :  { %8610 = vmatpush3.bf16.msra.mxu0 %v8609_v12  ;;  %v8642_v32 = vpack.c.bf16 %v116_v29, %v115_v28  ;;  %v110_v34 = vld [vmem:[#allocation6 + $0x98] sm:$0xff]  ;;  %v117_v35 = vld [vmem:[#allocation6 + $0xd0] sm:$0xff]  ;;  %v111_v39 = vld [vmem:[#allocation6 + $0xa0] sm:$0xff] }
  0x3e   :  { %8622 = vmatpush3.bf16.msra.mxu1 %v8621_v13  ;;  %8611 = vmatprep.subr.bf16.mxu0 %v10908_v0  ;;  %v118_v36 = vld [vmem:[#allocation6 + $0xd8] sm:$0xff]  ;;  %v8633_v37 = vpack.c.bf16 %v110_v34, %v109_v33  ;;  %v112_v40 = vld [vmem:[#allocation6 + $0xa8] sm:$0xff]  ;;  %v119_v41 = vld [vmem:[#allocation6 + $0xe0] sm:$0xff] }
  0x3f   :  { %8623 = vmatprep.subr.bf16.mxu1 %v10908_v0  ;;  %v8645_v38 = vpack.c.bf16 %v118_v36, %v117_v35  ;;  %v120_v42 = vld [vmem:[#allocation6 + $0xe8] sm:$0xff]  ;;  %v8636_v43 = vpack.c.bf16 %v112_v40, %v111_v39  ;;  %v113_v45 = vld [vmem:[#allocation6 + $0xb0] sm:$0xff]  ;;  %v114_v46 = vld [vmem:[#allocation6 + $0xb8] sm:$0xff] }
  0x40   :  { %v8648_v44 = vpack.c.bf16 %v120_v42, %v119_v41  ;;  %v121_v47 = vld [vmem:[#allocation6 + $0xf0] sm:$0xff]  ;;  %v122_v48 = vld [vmem:[#allocation6 + $0xf8] sm:$0xff]  ;;  %v8639_v49 = vpack.c.bf16 %v114_v46, %v113_v45  ;;  %v123_v51 = vld [vmem:[#allocation6 + $0x100] sm:$0xff] }
  0x41   :  { %8613 = vmatpush3.bf16.msra.mxu0 %v8612_v18  ;;  %v8651_v50 = vpack.c.bf16 %v122_v48, %v121_v47  ;;  %v124_v52 = vld [vmem:[#allocation6 + $0x108] sm:$0xff]  ;;  %v131_v53 = vld [vmem:[#allocation6 + $0x140] sm:$0xff]  ;;  %v125_v57 = vld [vmem:[#allocation6 + $0x110] sm:$0xff] }
  0x42   :  { %8625 = vmatpush3.bf16.msra.mxu1 %v8624_v19  ;;  %8614 = vmatprep.subr.bf16.mxu0 %v10908_v0  ;;  %v132_v54 = vld [vmem:[#allocation6 + $0x148] sm:$0xff]  ;;  %v8654_v55 = vpack.c.bf16 %v124_v52, %v123_v51  ;;  %v126_v58 = vld [vmem:[#allocation6 + $0x118] sm:$0xff]  ;;  %v133_v59 = vld [vmem:[#allocation6 + $0x150] sm:$0xff] }
  0x43   :  { %8626 = vmatprep.subr.bf16.mxu1 %v10908_v0  ;;  %v8666_v56 = vpack.c.bf16 %v132_v54, %v131_v53  ;;  %v134_v60 = vld [vmem:[#allocation6 + $0x158] sm:$0xff]  ;;  %v8657_v61 = vpack.c.bf16 %v126_v58, %v125_v57  ;;  %v127_v63 = vld [vmem:[#allocation6 + $0x120] sm:$0xff]  ;;  %v128_v2 = vld [vmem:[#allocation6 + $0x128] sm:$0xff] }
  0x44   :  { %v8669_v62 = vpack.c.bf16 %v134_v60, %v133_v59  ;;  %v135_v3 = vld [vmem:[#allocation6 + $0x160] sm:$0xff]  ;;  %v136_v4 = vld [vmem:[#allocation6 + $0x168] sm:$0xff]  ;;  %v8660_v5 = vpack.c.bf16 %v128_v2, %v127_v63  ;;  %v129_v7 = vld [vmem:[#allocation6 + $0x130] sm:$0xff] }
  0x45   :  { %8616 = vmatpush3.bf16.msra.mxu0 %v8615_v24  ;;  %v8672_v6 = vpack.c.bf16 %v136_v4, %v135_v3  ;;  %v130_v8 = vld [vmem:[#allocation6 + $0x138] sm:$0xff]  ;;  %v137_v9 = vld [vmem:[#allocation6 + $0x170] sm:$0xff]  ;;  %v139_v13 = vld [vmem:[#allocation6 + $0x180] sm:$0xff] }
  0x46   :  { %8628 = vmatpush3.bf16.msra.mxu1 %v8627_v25  ;;  %8629 = vmatprep.subr.bf16.mxu0 %v10908_v0  ;;  %v138_v10 = vld [vmem:[#allocation6 + $0x178] sm:$0xff]  ;;  %v8663_v11 = vpack.c.bf16 %v130_v8, %v129_v7  ;;  %v140_v14 = vld [vmem:[#allocation6 + $0x188] sm:$0xff]  ;;  %v147_v15 = vld [vmem:[#allocation6 + $0x1c0] sm:$0xff] }
  0x47   :  { %8641 = vmatprep.subr.bf16.mxu1 %v10908_v0  ;;  %v8675_v12 = vpack.c.bf16 %v138_v10, %v137_v9  ;;  %v148_v16 = vld [vmem:[#allocation6 + $0x1c8] sm:$0xff]  ;;  %v8678_v17 = vpack.c.bf16 %v140_v14, %v139_v13  ;;  %v141_v19 = vld [vmem:[#allocation6 + $0x190] sm:$0xff]  ;;  %v142_v20 = vld [vmem:[#allocation6 + $0x198] sm:$0xff] }
  0x48   :  { %7556 = vmatmul.mubr.msk.f32.vlgmr.msra.gmra.mrb[0].mxu0 %vm481_vm1, %v9606_v30  ;;  %v8690_v18 = vpack.c.bf16 %v148_v16, %v147_v15  ;;  %v149_v21 = vld [vmem:[#allocation6 + $0x1d0] sm:$0xff]  ;;  %v150_v22 = vld [vmem:[#allocation6 + $0x1d8] sm:$0xff]  ;;  %v8681_v23 = vpack.c.bf16 %v142_v20, %v141_v19  ;;  %v143_v25 = vld [vmem:[#allocation6 + $0x1a0] sm:$0xff] }
  0x49   :  { %7575 = vmatmul.mubr.msk.f32.vlgmr.msra.gmra.mrb[0].mxu1 %vm481_vm1, %v9606_v30  ;;  %8631 = vmatpush3.bf16.msra.mxu0 %v8630_v31  ;;  %v8693_v24 = vpack.c.bf16 %v150_v22, %v149_v21  ;;  %v144_v26 = vld [vmem:[#allocation6 + $0x1a8] sm:$0xff]  ;;  %v151_v27 = vld [vmem:[#allocation6 + $0x1e0] sm:$0xff]  ;;  %v146_v33 = vld [vmem:[#allocation6 + $0x1b8] sm:$0xff] }
  0x4a   :  { %8643 = vmatpush3.bf16.msra.mxu1 %v8642_v32  ;;  %8632 = vmatprep.subr.bf16.mxu0 %v10908_v0  ;;  %v152_v28 = vld [vmem:[#allocation6 + $0x1e8] sm:$0xff]  ;;  %v8684_v29 = vpack.c.bf16 %v144_v26, %v143_v25  ;;  %v145_v32 = vld [vmem:[#allocation6 + $0x1b0] sm:$0xff]  ;;  %v154_v35 = vld [vmem:[#allocation6 + $0x1f8] sm:$0xff] }
  0x4b   :  { %8644 = vmatprep.subr.bf16.mxu1 %v10908_v0  ;;  %7593 = vmatprep.mubr.msk.f32.mxu0 %vm9499_vm0, %v10906_v1  ;;  %v8696_v31 = vpack.c.bf16 %v152_v28, %v151_v27  ;;  %v153_v34 = vld [vmem:[#allocation6 + $0x1f0] sm:$0xff]  ;;  %v8687_v36 = vpack.c.bf16 %v146_v33, %v145_v32  ;;  %v156_v39 = vld [vmem:[#allocation6 + $0x208] sm:$0xff]  ;;  %v163_v40 = vld [vmem:[#allocation6 + $0x240] sm:$0xff] }
  0x4c   :  { %7612 = vmatprep.mubr.msk.f32.mxu1 %vm9499_vm0, %v10906_v1  ;;  %v164_v41 = vld [vmem:[#allocation6 + $0x248] sm:$0xff]  ;;  %v158_v45 = vld [vmem:[#allocation6 + $0x218] sm:$0xff]  ;;  %v165_v46 = vld [vmem:[#allocation6 + $0x250] sm:$0xff] }
  0x4d   :  { %8634 = vmatpush3.bf16.msra.mxu0 %v8633_v37  ;;  %v8699_v37 = vpack.c.bf16 %v154_v35, %v153_v34  ;;  %v166_v47 = vld [vmem:[#allocation6 + $0x258] sm:$0xff]  ;;  %v160_v51 = vld [vmem:[#allocation6 + $0x228] sm:$0xff]  ;;  %v167_v52 = vld [vmem:[#allocation6 + $0x260] sm:$0xff] }
  0x4e   :  { %8646 = vmatpush3.bf16.msra.mxu1 %v8645_v38  ;;  %8635 = vmatprep.subr.bf16.mxu0 %v10908_v0  ;;  %v155_v38 = vld [vmem:[#allocation6 + $0x200] sm:$0xff]  ;;  %v168_v53 = vld [vmem:[#allocation6 + $0x268] sm:$0xff]  ;;  %v162_v57 = vld [vmem:[#allocation6 + $0x238] sm:$0xff] }
  0x4f   :  { %8647 = vmatprep.subr.bf16.mxu1 %v10908_v0  ;;  %v8702_v42 = vpack.c.bf16 %v156_v39, %v155_v38  ;;  %v169_v58 = vld [vmem:[#allocation6 + $0x270] sm:$0xff]  ;;  %v170_v59 = vld [vmem:[#allocation6 + $0x278] sm:$0xff]  ;;  %v172_v63 = vld [vmem:[#allocation6 + $0x288] sm:$0xff] }
  0x50   :  { %v179_v2 = vld [vmem:[#allocation6 + $0x2c0] sm:$0xff]  ;;  %v180_v3 = vld [vmem:[#allocation6 + $0x2c8] sm:$0xff]  ;;  %v174_v7 = vld [vmem:[#allocation6 + $0x298] sm:$0xff] }
  0x51   :  { %8637 = vmatpush3.bf16.msra.mxu0 %v8636_v43  ;;  %v8714_v43 = vpack.c.bf16 %v164_v41, %v163_v40  ;;  %v181_v8 = vld [vmem:[#allocation6 + $0x2d0] sm:$0xff]  ;;  %v182_v9 = vld [vmem:[#allocation6 + $0x2d8] sm:$0xff]  ;;  %v176_v13 = vld [vmem:[#allocation6 + $0x2a8] sm:$0xff] }
  0x52   :  { %8649 = vmatpush3.bf16.msra.mxu1 %v8648_v44  ;;  %8638 = vmatprep.subr.bf16.mxu0 %v10908_v0  ;;  %v157_v44 = vld [vmem:[#allocation6 + $0x210] sm:$0xff]  ;;  %v183_v14 = vld [vmem:[#allocation6 + $0x2e0] sm:$0xff]  ;;  %v184_v15 = vld [vmem:[#allocation6 + $0x2e8] sm:$0xff] }
  0x53   :  { %8650 = vmatprep.subr.bf16.mxu1 %v10908_v0  ;;  %v8705_v48 = vpack.c.bf16 %v158_v45, %v157_v44  ;;  %v178_v19 = vld [vmem:[#allocation6 + $0x2b8] sm:$0xff]  ;;  %v185_v20 = vld [vmem:[#allocation6 + $0x2f0] sm:$0xff]  ;;  %v188_v25 = vld [vmem:[#allocation6 + $0x308] sm:$0xff] }
  0x54   :  { %v186_v21 = vld [vmem:[#allocation6 + $0x2f8] sm:$0xff]  ;;  %v195_v26 = vld [vmem:[#allocation6 + $0x340] sm:$0xff]  ;;  %v196_v27 = vld [vmem:[#allocation6 + $0x348] sm:$0xff] }
  0x55   :  { %8640 = vmatpush3.bf16.msra.mxu0 %v8639_v49  ;;  %v8717_v49 = vpack.c.bf16 %v166_v47, %v165_v46  ;;  %v190_v32 = vld [vmem:[#allocation6 + $0x318] sm:$0xff]  ;;  %v197_v33 = vld [vmem:[#allocation6 + $0x350] sm:$0xff]  ;;  %v192_v38 = vld [vmem:[#allocation6 + $0x328] sm:$0xff] }
  0x56   :  { %8652 = vmatpush3.bf16.msra.mxu1 %v8651_v50  ;;  %8653 = vmatprep.subr.bf16.mxu0 %v10908_v0  ;;  %v159_v50 = vld [vmem:[#allocation6 + $0x220] sm:$0xff]  ;;  %v198_v34 = vld [vmem:[#allocation6 + $0x358] sm:$0xff]  ;;  %v200_v40 = vld [vmem:[#allocation6 + $0x368] sm:$0xff] }
  0x57   :  { %8665 = vmatprep.subr.bf16.mxu1 %v10908_v0  ;;  %v8708_v54 = vpack.c.bf16 %v160_v51, %v159_v50  ;;  %v199_v39 = vld [vmem:[#allocation6 + $0x360] sm:$0xff]  ;;  %v194_v44 = vld [vmem:[#allocation6 + $0x338] sm:$0xff]  ;;  %v201_v45 = vld [vmem:[#allocation6 + $0x370] sm:$0xff] }
  0x58   :  { %7594 = vmatmul.mubr.msk.f32.vlgmr.msra.gmra.mrb[2].mxu0 %vm481_vm1, %v9606_v30  ;;  %v202_v46 = vld [vmem:[#allocation6 + $0x378] sm:$0xff]  ;;  %v204_v50 = vld [vmem:[#allocation6 + $0x388] sm:$0xff]  ;;  %v211_v51 = vld [vmem:[#allocation6 + $0x3c0] sm:$0xff] }
  0x59   :  { %7613 = vmatmul.mubr.msk.f32.vlgmr.msra.gmra.mrb[2].mxu1 %vm481_vm1, %v9606_v30  ;;  %8655 = vmatpush3.bf16.msra.mxu0 %v8654_v55  ;;  %v8720_v55 = vpack.c.bf16 %v168_v53, %v167_v52  ;;  %v212_v52 = vld [vmem:[#allocation6 + $0x3c8] sm:$0xff] }
  0x5a   :  { %8667 = vmatpush3.bf16.msra.mxu1 %v8666_v56  ;;  %8656 = vmatprep.subr.bf16.mxu0 %v10908_v0  ;;  %v161_v56 = vld [vmem:[#allocation6 + $0x230] sm:$0xff] }
  0x5b   :  { %8668 = vmatprep.subr.bf16.mxu1 %v10908_v0  ;;  %7631 = vmatprep.mubr.msk.f32.mxu0 %vm9499_vm0, %v10906_v1  ;;  %v8711_v60 = vpack.c.bf16 %v162_v57, %v161_v56  ;;  %v206_v56 = vld [vmem:[#allocation6 + $0x398] sm:$0xff]  ;;  %v213_v57 = vld [vmem:[#allocation6 + $0x3d0] sm:$0xff] }
  0x5c   :  { %7650 = vmatprep.mubr.msk.f32.mxu1 %vm9499_vm0, %v10906_v1 }
  0x5d   :  { %8658 = vmatpush3.bf16.msra.mxu0 %v8657_v61  ;;  %v8723_v61 = vpack.c.bf16 %v170_v59, %v169_v58  ;;  %v214_v58 = vld [vmem:[#allocation6 + $0x3d8] sm:$0xff] }
  0x5e   :  { %8670 = vmatpush3.bf16.msra.mxu1 %v8669_v62  ;;  %8659 = vmatprep.subr.bf16.mxu0 %v10908_v0  ;;  %v171_v62 = vld [vmem:[#allocation6 + $0x280] sm:$0xff] }
  0x5f   :  { %8671 = vmatprep.subr.bf16.mxu1 %v10908_v0  ;;  %v8726_v4 = vpack.c.bf16 %v172_v63, %v171_v62  ;;  %v208_v62 = vld [vmem:[#allocation6 + $0x3a8] sm:$0xff]  ;;  %v215_v63 = vld [vmem:[#allocation6 + $0x3e0] sm:$0xff] }
  0x61   :  { %8661 = vmatpush3.bf16.msra.mxu0 %v8660_v5  ;;  %v8738_v5 = vpack.c.bf16 %v180_v3, %v179_v2  ;;  %v216_v2 = vld [vmem:[#allocation6 + $0x3e8] sm:$0xff] }
  0x62   :  { %8673 = vmatpush3.bf16.msra.mxu1 %v8672_v6  ;;  %8662 = vmatprep.subr.bf16.mxu0 %v10908_v0  ;;  %v173_v6 = vld [vmem:[#allocation6 + $0x290] sm:$0xff] }
  0x63   :  { %8674 = vmatprep.subr.bf16.mxu1 %v10908_v0  ;;  %v8729_v10 = vpack.c.bf16 %v174_v7, %v173_v6  ;;  %v210_v6 = vld [vmem:[#allocation6 + $0x3b8] sm:$0xff]  ;;  %v217_v7 = vld [vmem:[#allocation6 + $0x3f0] sm:$0xff] }
  0x65   :  { %8664 = vmatpush3.bf16.msra.mxu0 %v8663_v11  ;;  %v8741_v11 = vpack.c.bf16 %v182_v9, %v181_v8  ;;  %v218_v8 = vld [vmem:[#allocation6 + $0x3f8] sm:$0xff] }
  0x66   :  { %8676 = vmatpush3.bf16.msra.mxu1 %v8675_v12  ;;  %8677 = vmatprep.subr.bf16.mxu0 %v10908_v0  ;;  %v175_v12 = vld [vmem:[#allocation6 + $0x2a0] sm:$0xff] }
  0x67   :  { %8689 = vmatprep.subr.bf16.mxu1 %v10908_v0  ;;  %v8732_v16 = vpack.c.bf16 %v176_v13, %v175_v12  ;;  %v220_v12 = vld [vmem:[#allocation6 + $0x408] sm:$0xff]  ;;  %v227_v13 = vld [vmem:[#allocation6 + $0x440] sm:$0xff] }
  0x68   :  { %7632 = vmatmul.mubr.msk.f32.vlgmr.msra.gmra.mrb[4].mxu0 %vm481_vm1, %v9606_v30 }
  0x69   :  { %7651 = vmatmul.mubr.msk.f32.vlgmr.msra.gmra.mrb[4].mxu1 %vm481_vm1, %v9606_v30  ;;  %8679 = vmatpush3.bf16.msra.mxu0 %v8678_v17  ;;  %v8744_v17 = vpack.c.bf16 %v184_v15, %v183_v14  ;;  %v228_v14 = vld [vmem:[#allocation6 + $0x448] sm:$0xff] }
  0x6a   :  { %8691 = vmatpush3.bf16.msra.mxu1 %v8690_v18  ;;  %8680 = vmatprep.subr.bf16.mxu0 %v10908_v0  ;;  %v177_v18 = vld [vmem:[#allocation6 + $0x2b0] sm:$0xff] }
  0x6b   :  { %8692 = vmatprep.subr.bf16.mxu1 %v10908_v0  ;;  %7669 = vmatprep.mubr.msk.f32.mxu0 %vm9499_vm0, %v10906_v1  ;;  %v8735_v22 = vpack.c.bf16 %v178_v19, %v177_v18  ;;  %v222_v18 = vld [vmem:[#allocation6 + $0x418] sm:$0xff]  ;;  %v229_v19 = vld [vmem:[#allocation6 + $0x450] sm:$0xff] }
  0x6c   :  { %7688 = vmatprep.mubr.msk.f32.mxu1 %vm9499_vm0, %v10906_v1 }
  0x6d   :  { %8682 = vmatpush3.bf16.msra.mxu0 %v8681_v23  ;;  %v8747_v23 = vpack.c.bf16 %v186_v21, %v185_v20  ;;  %v230_v20 = vld [vmem:[#allocation6 + $0x458] sm:$0xff] }
  0x6e   :  { %8694 = vmatpush3.bf16.msra.mxu1 %v8693_v24  ;;  %8683 = vmatprep.subr.bf16.mxu0 %v10908_v0  ;;  %v187_v24 = vld [vmem:[#allocation6 + $0x300] sm:$0xff] }
  0x6f   :  { %8695 = vmatprep.subr.bf16.mxu1 %v10908_v0  ;;  %v8750_v28 = vpack.c.bf16 %v188_v25, %v187_v24  ;;  %v224_v24 = vld [vmem:[#allocation6 + $0x428] sm:$0xff]  ;;  %v231_v25 = vld [vmem:[#allocation6 + $0x460] sm:$0xff] }
  0x71   :  { %8685 = vmatpush3.bf16.msra.mxu0 %v8684_v29  ;;  %v8762_v29 = vpack.c.bf16 %v196_v27, %v195_v26  ;;  %v232_v26 = vld [vmem:[#allocation6 + $0x468] sm:$0xff] }
  0x72   :  { %8697 = vmatpush3.bf16.msra.mxu1 %v8696_v31  ;;  %8686 = vmatprep.subr.bf16.mxu0 %v10908_v0  ;;  %v189_v31 = vld [vmem:[#allocation6 + $0x310] sm:$0xff] }
  0x73   :  { %8698 = vmatprep.subr.bf16.mxu1 %v10908_v0  ;;  %v8753_v35 = vpack.c.bf16 %v190_v32, %v189_v31  ;;  %v226_v31 = vld [vmem:[#allocation6 + $0x438] sm:$0xff]  ;;  %v233_v32 = vld [vmem:[#allocation6 + $0x470] sm:$0xff] }
  0x75   :  { %8688 = vmatpush3.bf16.msra.mxu0 %v8687_v36  ;;  %v8765_v36 = vpack.c.bf16 %v198_v34, %v197_v33  ;;  %v234_v33 = vld [vmem:[#allocation6 + $0x478] sm:$0xff] }
  0x76   :  { %8700 = vmatpush3.bf16.msra.mxu1 %v8699_v37  ;;  %8701 = vmatprep.subr.bf16.mxu0 %v10908_v0  ;;  %v191_v37 = vld [vmem:[#allocation6 + $0x320] sm:$0xff] }
  0x77   :  { %8713 = vmatprep.subr.bf16.mxu1 %v10908_v0  ;;  %v8756_v41 = vpack.c.bf16 %v192_v38, %v191_v37  ;;  %v236_v37 = vld [vmem:[#allocation6 + $0x488] sm:$0xff]  ;;  %v243_v38 = vld [vmem:[#allocation6 + $0x4c0] sm:$0xff] }
  0x78   :  { %7670 = vmatmul.mubr.msk.f32.vlgmr.msra.gmra.mrb[6].mxu0 %vm481_vm1, %v9606_v30 }
  0x79   :  { %7689 = vmatmul.mubr.msk.f32.vlgmr.msra.gmra.mrb[6].mxu1 %vm481_vm1, %v9606_v30  ;;  %8703 = vmatpush3.bf16.msra.mxu0 %v8702_v42  ;;  %v8768_v42 = vpack.c.bf16 %v200_v40, %v199_v39  ;;  %v244_v39 = vld [vmem:[#allocation6 + $0x4c8] sm:$0xff] }
  0x7a   :  { %8715 = vmatpush3.bf16.msra.mxu1 %v8714_v43  ;;  %8704 = vmatprep.subr.bf16.mxu0 %v10908_v0  ;;  %v193_v43 = vld [vmem:[#allocation6 + $0x330] sm:$0xff] }
  0x7b   :  { %8716 = vmatprep.subr.bf16.mxu1 %v10908_v0  ;;  %7707 = vmatprep.mubr.msk.f32.mxu0 %vm9499_vm0, %v10906_v1  ;;  %v8759_v47 = vpack.c.bf16 %v194_v44, %v193_v43  ;;  %v238_v43 = vld [vmem:[#allocation6 + $0x498] sm:$0xff]  ;;  %v245_v44 = vld [vmem:[#allocation6 + $0x4d0] sm:$0xff] }
  0x7c   :  { %7726 = vmatprep.mubr.msk.f32.mxu1 %vm9499_vm0, %v10906_v1 }
  0x7d   :  { %8706 = vmatpush3.bf16.msra.mxu0 %v8705_v48  ;;  %v8771_v48 = vpack.c.bf16 %v202_v46, %v201_v45  ;;  %v246_v45 = vld [vmem:[#allocation6 + $0x4d8] sm:$0xff] }
  0x7e   :  { %8718 = vmatpush3.bf16.msra.mxu1 %v8717_v49  ;;  %8707 = vmatprep.subr.bf16.mxu0 %v10908_v0  ;;  %v203_v49 = vld [vmem:[#allocation6 + $0x380] sm:$0xff] }
  0x7f   :  { %8719 = vmatprep.subr.bf16.mxu1 %v10908_v0  ;;  %v8774_v53 = vpack.c.bf16 %v204_v50, %v203_v49  ;;  %v240_v49 = vld [vmem:[#allocation6 + $0x4a8] sm:$0xff]  ;;  %v247_v50 = vld [vmem:[#allocation6 + $0x4e0] sm:$0xff] }
  0x81   :  { %8709 = vmatpush3.bf16.msra.mxu0 %v8708_v54  ;;  %v8786_v54 = vpack.c.bf16 %v212_v52, %v211_v51  ;;  %v248_v51 = vld [vmem:[#allocation6 + $0x4e8] sm:$0xff] }
  0x82   :  { %8721 = vmatpush3.bf16.msra.mxu1 %v8720_v55  ;;  %8710 = vmatprep.subr.bf16.mxu0 %v10908_v0  ;;  %v205_v55 = vld [vmem:[#allocation6 + $0x390] sm:$0xff] }
  0x83   :  { %8722 = vmatprep.subr.bf16.mxu1 %v10908_v0  ;;  %v8777_v59 = vpack.c.bf16 %v206_v56, %v205_v55  ;;  %v242_v55 = vld [vmem:[#allocation6 + $0x4b8] sm:$0xff]  ;;  %v249_v56 = vld [vmem:[#allocation6 + $0x4f0] sm:$0xff] }
  0x85   :  { %8712 = vmatpush3.bf16.msra.mxu0 %v8711_v60  ;;  %v8789_v60 = vpack.c.bf16 %v214_v58, %v213_v57  ;;  %v250_v57 = vld [vmem:[#allocation6 + $0x4f8] sm:$0xff] }
  0x86   :  { %8724 = vmatpush3.bf16.msra.mxu1 %v8723_v61  ;;  %8725 = vmatprep.subr.bf16.mxu0 %v10908_v0  ;;  %v207_v61 = vld [vmem:[#allocation6 + $0x3a0] sm:$0xff] }
  0x87   :  { %8737 = vmatprep.subr.bf16.mxu1 %v10908_v0  ;;  %v8780_v3 = vpack.c.bf16 %v208_v62, %v207_v61  ;;  %v252_v61 = vld [vmem:[#allocation6 + $0x508] sm:$0xff]  ;;  %v259_v62 = vld [vmem:[#allocation6 + $0x540] sm:$0xff] }
  0x88   :  { %7708 = vmatmul.mubr.msk.f32.vlgmr.msra.gmra.mrb[8].mxu0 %vm481_vm1, %v9606_v30 }
  0x89   :  { %7727 = vmatmul.mubr.msk.f32.vlgmr.msra.gmra.mrb[8].mxu1 %vm481_vm1, %v9606_v30  ;;  %8727 = vmatpush3.bf16.msra.mxu0 %v8726_v4  ;;  %v8792_v4 = vpack.c.bf16 %v216_v2, %v215_v63  ;;  %v260_v63 = vld [vmem:[#allocation6 + $0x548] sm:$0xff] }
  0x8a   :  { %8739 = vmatpush3.bf16.msra.mxu1 %v8738_v5  ;;  %8728 = vmatprep.subr.bf16.mxu0 %v10908_v0  ;;  %v209_v5 = vld [vmem:[#allocation6 + $0x3b0] sm:$0xff] }
  0x8b   :  { %8740 = vmatprep.subr.bf16.mxu1 %v10908_v0  ;;  %7745 = vmatprep.mubr.msk.f32.mxu0 %vm9499_vm0, %v10906_v1  ;;  %v8783_v9 = vpack.c.bf16 %v210_v6, %v209_v5  ;;  %v254_v5 = vld [vmem:[#allocation6 + $0x518] sm:$0xff]  ;;  %v261_v6 = vld [vmem:[#allocation6 + $0x550] sm:$0xff] }
  0x8c   :  { %7764 = vmatprep.mubr.msk.f32.mxu1 %vm9499_vm0, %v10906_v1 }
  0x8d   :  { %8730 = vmatpush3.bf16.msra.mxu0 %v8729_v10  ;;  %v8795_v10 = vpack.c.bf16 %v218_v8, %v217_v7  ;;  %v262_v7 = vld [vmem:[#allocation6 + $0x558] sm:$0xff] }
  0x8e   :  { %8742 = vmatpush3.bf16.msra.mxu1 %v8741_v11  ;;  %8731 = vmatprep.subr.bf16.mxu0 %v10908_v0  ;;  %v219_v11 = vld [vmem:[#allocation6 + $0x400] sm:$0xff] }
  0x8f   :  { %8743 = vmatprep.subr.bf16.mxu1 %v10908_v0  ;;  %v8798_v15 = vpack.c.bf16 %v220_v12, %v219_v11  ;;  %v256_v11 = vld [vmem:[#allocation6 + $0x528] sm:$0xff]  ;;  %v263_v12 = vld [vmem:[#allocation6 + $0x560] sm:$0xff] }
  0x91   :  { %8733 = vmatpush3.bf16.msra.mxu0 %v8732_v16  ;;  %v8810_v16 = vpack.c.bf16 %v228_v14, %v227_v13  ;;  %v264_v13 = vld [vmem:[#allocation6 + $0x568] sm:$0xff] }
  0x92   :  { %8745 = vmatpush3.bf16.msra.mxu1 %v8744_v17  ;;  %8734 = vmatprep.subr.bf16.mxu0 %v10908_v0  ;;  %v221_v17 = vld [vmem:[#allocation6 + $0x410] sm:$0xff] }
  0x93   :  { %8746 = vmatprep.subr.bf16.mxu1 %v10908_v0  ;;  %v8801_v21 = vpack.c.bf16 %v222_v18, %v221_v17  ;;  %v258_v17 = vld [vmem:[#allocation6 + $0x538] sm:$0xff]  ;;  %v265_v18 = vld [vmem:[#allocation6 + $0x570] sm:$0xff] }
  0x95   :  { %8736 = vmatpush3.bf16.msra.mxu0 %v8735_v22  ;;  %v8813_v22 = vpack.c.bf16 %v230_v20, %v229_v19  ;;  %v266_v19 = vld [vmem:[#allocation6 + $0x578] sm:$0xff] }
  0x96   :  { %8748 = vmatpush3.bf16.msra.mxu1 %v8747_v23  ;;  %8749 = vmatprep.subr.bf16.mxu0 %v10908_v0  ;;  %v223_v23 = vld [vmem:[#allocation6 + $0x420] sm:$0xff] }
  0x97   :  { %8761 = vmatprep.subr.bf16.mxu1 %v10908_v0  ;;  %v8804_v27 = vpack.c.bf16 %v224_v24, %v223_v23  ;;  %v268_v23 = vld [vmem:[#allocation6 + $0x588] sm:$0xff]  ;;  %v275_v24 = vld [vmem:[#allocation6 + $0x5c0] sm:$0xff] }
  0x98   :  { %7746 = vmatmul.mubr.msk.f32.vlgmr.msra.gmra.mrb[10].mxu0 %vm481_vm1, %v9606_v30 }
  0x99   :  { %7765 = vmatmul.mubr.msk.f32.vlgmr.msra.gmra.mrb[10].mxu1 %vm481_vm1, %v9606_v30  ;;  %8751 = vmatpush3.bf16.msra.mxu0 %v8750_v28  ;;  %v8816_v28 = vpack.c.bf16 %v232_v26, %v231_v25  ;;  %v276_v25 = vld [vmem:[#allocation6 + $0x5c8] sm:$0xff] }
  0x9a   :  { %8763 = vmatpush3.bf16.msra.mxu1 %v8762_v29  ;;  %8752 = vmatprep.subr.bf16.mxu0 %v10908_v0  ;;  %v225_v29 = vld [vmem:[#allocation6 + $0x430] sm:$0xff] }
  0x9b   :  { %8764 = vmatprep.subr.bf16.mxu1 %v10908_v0  ;;  %7783 = vmatprep.mubr.msk.f32.mxu0 %vm9499_vm0, %v10906_v1  ;;  %v8807_v34 = vpack.c.bf16 %v226_v31, %v225_v29  ;;  %v270_v29 = vld [vmem:[#allocation6 + $0x598] sm:$0xff]  ;;  %v277_v31 = vld [vmem:[#allocation6 + $0x5d0] sm:$0xff] }
  0x9c   :  { %7802 = vmatprep.mubr.msk.f32.mxu1 %vm9499_vm0, %v10906_v1 }
  0x9d   :  { %8754 = vmatpush3.bf16.msra.mxu0 %v8753_v35  ;;  %v8819_v35 = vpack.c.bf16 %v234_v33, %v233_v32  ;;  %v278_v32 = vld [vmem:[#allocation6 + $0x5d8] sm:$0xff] }
  0x9e   :  { %8766 = vmatpush3.bf16.msra.mxu1 %v8765_v36  ;;  %8755 = vmatprep.subr.bf16.mxu0 %v10908_v0  ;;  %v235_v36 = vld [vmem:[#allocation6 + $0x480] sm:$0xff] }
  0x9f   :  { %8767 = vmatprep.subr.bf16.mxu1 %v10908_v0  ;;  %v8822_v40 = vpack.c.bf16 %v236_v37, %v235_v36  ;;  %v272_v36 = vld [vmem:[#allocation6 + $0x5a8] sm:$0xff]  ;;  %v279_v37 = vld [vmem:[#allocation6 + $0x5e0] sm:$0xff] }
  0xa1   :  { %8757 = vmatpush3.bf16.msra.mxu0 %v8756_v41  ;;  %v8834_v41 = vpack.c.bf16 %v244_v39, %v243_v38  ;;  %v280_v38 = vld [vmem:[#allocation6 + $0x5e8] sm:$0xff] }
  0xa2   :  { %8769 = vmatpush3.bf16.msra.mxu1 %v8768_v42  ;;  %8758 = vmatprep.subr.bf16.mxu0 %v10908_v0  ;;  %v237_v42 = vld [vmem:[#allocation6 + $0x490] sm:$0xff] }
  0xa3   :  { %8770 = vmatprep.subr.bf16.mxu1 %v10908_v0  ;;  %v8825_v46 = vpack.c.bf16 %v238_v43, %v237_v42  ;;  %v274_v42 = vld [vmem:[#allocation6 + $0x5b8] sm:$0xff]  ;;  %v281_v43 = vld [vmem:[#allocation6 + $0x5f0] sm:$0xff] }
  0xa5   :  { %8760 = vmatpush3.bf16.msra.mxu0 %v8759_v47  ;;  %v8837_v47 = vpack.c.bf16 %v246_v45, %v245_v44  ;;  %v282_v44 = vld [vmem:[#allocation6 + $0x5f8] sm:$0xff] }
  0xa6   :  { %8772 = vmatpush3.bf16.msra.mxu1 %v8771_v48  ;;  %8773 = vmatprep.subr.bf16.mxu0 %v10908_v0  ;;  %v239_v48 = vld [vmem:[#allocation6 + $0x4a0] sm:$0xff] }
  0xa7   :  { %8785 = vmatprep.subr.bf16.mxu1 %v10908_v0  ;;  %v8828_v52 = vpack.c.bf16 %v240_v49, %v239_v48  ;;  %v284_v48 = vld [vmem:[#allocation6 + $0x608] sm:$0xff]  ;;  %v291_v49 = vld [vmem:[#allocation6 + $0x640] sm:$0xff] }
  0xa8   :  { %7784 = vmatmul.mubr.msk.f32.vlgmr.msra.gmra.mrb[12].mxu0 %vm481_vm1, %v9606_v30 }
  0xa9   :  { %7803 = vmatmul.mubr.msk.f32.vlgmr.msra.gmra.mrb[12].mxu1 %vm481_vm1, %v9606_v30  ;;  %8775 = vmatpush3.bf16.msra.mxu0 %v8774_v53  ;;  %v8840_v53 = vpack.c.bf16 %v248_v51, %v247_v50  ;;  %v292_v50 = vld [vmem:[#allocation6 + $0x648] sm:$0xff] }
  0xaa   :  { %8787 = vmatpush3.bf16.msra.mxu1 %v8786_v54  ;;  %8776 = vmatprep.subr.bf16.mxu0 %v10908_v0  ;;  %v241_v54 = vld [vmem:[#allocation6 + $0x4b0] sm:$0xff] }
  0xab   :  { %8788 = vmatprep.subr.bf16.mxu1 %v10908_v0  ;;  %7821 = vmatprep.mubr.msk.f32.mxu0 %vm9499_vm0, %v10906_v1  ;;  %v8831_v58 = vpack.c.bf16 %v242_v55, %v241_v54  ;;  %v286_v54 = vld [vmem:[#allocation6 + $0x618] sm:$0xff]  ;;  %v293_v55 = vld [vmem:[#allocation6 + $0x650] sm:$0xff] }
  0xac   :  { %7840 = vmatprep.mubr.msk.f32.mxu1 %vm9499_vm0, %v10906_v1 }
  0xad   :  { %8778 = vmatpush3.bf16.msra.mxu0 %v8777_v59  ;;  %v8843_v59 = vpack.c.bf16 %v250_v57, %v249_v56  ;;  %v294_v56 = vld [vmem:[#allocation6 + $0x658] sm:$0xff] }
  0xae   :  { %8790 = vmatpush3.bf16.msra.mxu1 %v8789_v60  ;;  %8779 = vmatprep.subr.bf16.mxu0 %v10908_v0  ;;  %v251_v60 = vld [vmem:[#allocation6 + $0x500] sm:$0xff] }
  0xaf   :  { %8791 = vmatprep.subr.bf16.mxu1 %v10908_v0  ;;  %v8846_v2 = vpack.c.bf16 %v252_v61, %v251_v60  ;;  %v288_v60 = vld [vmem:[#allocation6 + $0x628] sm:$0xff]  ;;  %v295_v61 = vld [vmem:[#allocation6 + $0x660] sm:$0xff] }
  0xb1   :  { %8781 = vmatpush3.bf16.msra.mxu0 %v8780_v3  ;;  %v8858_v3 = vpack.c.bf16 %v260_v63, %v259_v62  ;;  %v296_v62 = vld [vmem:[#allocation6 + $0x668] sm:$0xff] }
  0xb2   :  { %8793 = vmatpush3.bf16.msra.mxu1 %v8792_v4  ;;  %8782 = vmatprep.subr.bf16.mxu0 %v10908_v0  ;;  %v253_v4 = vld [vmem:[#allocation6 + $0x510] sm:$0xff]  ;;  %v8912_v63 = vpack.c.bf16 %v296_v62, %v295_v61  ;;  %v2333_v61 = vld [vmem:[#allocation2 + $0xe0] sm:$0xff]  ;;  %v2334_v62 = vld [vmem:[#allocation2 + $0xe8] sm:$0xff] }
  0xb3   :  { %8794 = vmatprep.subr.bf16.mxu1 %v10908_v0  ;;  %v8849_v8 = vpack.c.bf16 %v254_v5, %v253_v4  ;;  %v9800_v4 = vld [vmem:[%s10899_s0] sm:$0x3]  ;;  %v297_v5 = vld [vmem:[#allocation6 + $0x670] sm:$0xff] }
  0xb4   :  { %4490 = vrot.lane.b32.xlu0 %v9800_v4, %s9501_s14 }
  0xb5   :  { %8784 = vmatpush3.bf16.msra.mxu0 %v8783_v9  ;;  %v8861_v9 = vpack.c.bf16 %v262_v7, %v261_v6  ;;  %v298_v6 = vld [vmem:[#allocation6 + $0x678] sm:$0xff]  ;;  %v9806_v7 = vld [vmem:[%s10899_s0 + $0x4] sm:$0x3] }
  0xb6   :  { %8796 = vmatpush3.bf16.msra.mxu1 %v8795_v10  ;;  %8797 = vmatprep.subr.bf16.mxu0 %v10908_v0  ;;  %v255_v10 = vld [vmem:[#allocation6 + $0x520] sm:$0xff] }
  0xb7   :  { %8809 = vmatprep.subr.bf16.mxu1 %v10908_v0  ;;  %v8852_v14 = vpack.c.bf16 %v256_v11, %v255_v10  ;;  %4494 = vrot.lane.b32.xlu1 %v9806_v7, %s9501_s14  ;;  %v2305_v10 = vld [vmem:[#allocation2] sm:$0xff]  ;;  %v2306_v11 = vld [vmem:[#allocation2 + $0x8] sm:$0xff] }
  0xb8   :  { %7822 = vmatmul.mubr.msk.f32.vlgmr.msra.gmra.mrb[14].mxu0 %vm481_vm1, %v9606_v30 }
  0xb9   :  { %7841 = vmatmul.mubr.msk.f32.vlgmr.msra.gmra.mrb[14].mxu1 %vm481_vm1, %v9606_v30  ;;  %8799 = vmatpush3.bf16.msra.mxu0 %v8798_v15  ;;  %v8864_v15 = vpack.c.bf16 %v264_v13, %v263_v12  ;;  %v65_v12 = vld [vmem:[%s10899_s0 + $0x2] sm:$0x3] }
  0xba   :  { %8811 = vmatpush3.bf16.msra.mxu1 %v8810_v16  ;;  %8800 = vmatprep.subr.bf16.mxu0 %v10908_v0  ;;  %v257_v16 = vld [vmem:[#allocation6 + $0x530] sm:$0xff]  ;;  %v2309_v13 = vld [vmem:[#allocation2 + $0x20] sm:$0xff] }
  0xbb   :  { %8812 = vmatprep.subr.bf16.mxu1 %v10908_v0  ;;  %7859 = vmatprep.mubr.msk.f32.mxu0 %vm9499_vm0, %v10906_v1  ;;  %v8855_v20 = vpack.c.bf16 %v258_v17, %v257_v16  ;;  %v8918_v16 = vpack.c.bf16 %v2306_v11, %v2305_v10  ;;  %v2336_v10 = vld [vmem:[#allocation2 + $0xf8] sm:$0xff] }
  0xbc   :  { %7878 = vmatprep.mubr.msk.f32.mxu1 %vm9499_vm0, %v10906_v1  ;;  %4492 = vrot.lane.b32.xlu0 %v65_v12, %s9501_s14  ;;  %v9940_v11 = vld [vmem:[%s10899_s0 + $0x1e] sm:$0x3] }
  0xbd   :  { %8802 = vmatpush3.bf16.msra.mxu0 %v8801_v21  ;;  %v8867_v21 = vpack.c.bf16 %v266_v19, %v265_v18  ;;  %v2307_v18 = vld [vmem:[#allocation2 + $0x10] sm:$0xff]  ;;  %v2308_v19 = vld [vmem:[#allocation2 + $0x18] sm:$0xff] }
  0xbe   :  { %8814 = vmatpush3.bf16.msra.mxu1 %v8813_v22  ;;  %8803 = vmatprep.subr.bf16.mxu0 %v10908_v0  ;;  %v267_v22 = vld [vmem:[#allocation6 + $0x580] sm:$0xff] }
  0xbf   :  { %8815 = vmatprep.subr.bf16.mxu1 %v10908_v0  ;;  %v8870_v26 = vpack.c.bf16 %v268_v23, %v267_v22  ;;  %v2312_v22 = vld [vmem:[#allocation2 + $0x38] sm:$0xff]  ;;  %v9835_v23 = vld [vmem:[%s10899_s0 + $0xa] sm:$0x3] }
  0xc1   :  { %8805 = vmatpush3.bf16.msra.mxu0 %v8804_v27  ;;  %v8882_v27 = vpack.c.bf16 %v276_v25, %v275_v24  ;;  %v9396_v24 = vld [vmem:[%s10900_s1] sm:$0x3]  ;;  %v8921_v25 = vpack.c.bf16 %v2308_v19, %v2307_v18  ;;  %v9955_v18 = vld [vmem:[%s10899_s0 + $0x1c] sm:$0x3] }
  0xc2   :  { %8817 = vmatpush3.bf16.msra.mxu1 %v8816_v28  ;;  %8806 = vmatprep.subr.bf16.mxu0 %v10908_v0  ;;  %v269_v28 = vld [vmem:[#allocation6 + $0x590] sm:$0xff] }
  0xc3   :  { %8818 = vmatprep.subr.bf16.mxu1 %v10908_v0  ;;  %v8873_v33 = vpack.c.bf16 %v270_v29, %v269_v28  ;;  %v2314_v28 = vld [vmem:[#allocation2 + $0x48] sm:$0xff]  ;;  %v2317_v29 = vld [vmem:[#allocation2 + $0x60] sm:$0xff] }
  0xc5   :  { %8808 = vmatpush3.bf16.msra.mxu0 %v8807_v34  ;;  %v8885_v34 = vpack.c.bf16 %v278_v32, %v277_v31  ;;  %v2318_v31 = vld [vmem:[#allocation2 + $0x68] sm:$0xff] }
  0xc6   :  { %8820 = vmatpush3.bf16.msra.mxu1 %v8819_v35  ;;  %8821 = vmatprep.subr.bf16.mxu0 %v10908_v0  ;;  %v271_v35 = vld [vmem:[#allocation6 + $0x5a0] sm:$0xff]  ;;  %v9853_v32 = vld [vmem:[%s10899_s0 + $0xe] sm:$0x3] }
  0xc7   :  { %8833 = vmatprep.subr.bf16.mxu1 %v10908_v0  ;;  %v8876_v39 = vpack.c.bf16 %v272_v36, %v271_v35  ;;  %v8936_v35 = vpack.c.bf16 %v2318_v31, %v2317_v29  ;;  %v2315_v36 = vld [vmem:[#allocation2 + $0x50] sm:$0xff]  ;;  %v2349_v31 = vld [vmem:[#allocation2 + $0x160] sm:$0xff] }
  0xc8   :  { %7860 = vmatmul.mubr.msk.f32.vlgmr.msra.gmra.mrb[16].mxu0 %vm481_vm1, %v9606_v30 }
  0xc9   :  { %7879 = vmatmul.mubr.msk.f32.vlgmr.msra.gmra.mrb[16].mxu1 %vm481_vm1, %v9606_v30  ;;  %8823 = vmatpush3.bf16.msra.mxu0 %v8822_v40  ;;  %v8888_v40 = vpack.c.bf16 %v280_v38, %v279_v37  ;;  %v2316_v37 = vld [vmem:[#allocation2 + $0x58] sm:$0xff]  ;;  %v2319_v38 = vld [vmem:[#allocation2 + $0x70] sm:$0xff] }
  0xca   :  { %8835 = vmatpush3.bf16.msra.mxu1 %v8834_v41  ;;  %8824 = vmatprep.subr.bf16.mxu0 %v10908_v0  ;;  %v273_v41 = vld [vmem:[#allocation6 + $0x5b0] sm:$0xff] }
  0xcb   :  { %8836 = vmatprep.subr.bf16.mxu1 %v10908_v0  ;;  %7897 = vmatprep.mubr.msk.f32.mxu0 %vm9499_vm0, %v10906_v1  ;;  %v8879_v45 = vpack.c.bf16 %v274_v42, %v273_v41  ;;  %v8933_v41 = vpack.c.bf16 %v2316_v37, %v2315_v36 }
  0xcc   :  { %7916 = vmatprep.mubr.msk.f32.mxu1 %vm9499_vm0, %v10906_v1 }
  0xcd   :  { %8826 = vmatpush3.bf16.msra.mxu0 %v8825_v46  ;;  %v8891_v46 = vpack.c.bf16 %v282_v44, %v281_v43  ;;  %v2321_v43 = vld [vmem:[#allocation2 + $0x80] sm:$0xff]  ;;  %v2322_v44 = vld [vmem:[#allocation2 + $0x88] sm:$0xff] }
  0xce   :  { %8838 = vmatpush3.bf16.msra.mxu1 %v8837_v47  ;;  %8827 = vmatprep.subr.bf16.mxu0 %v10908_v0  ;;  %v283_v47 = vld [vmem:[#allocation6 + $0x600] sm:$0xff] }
  0xcf   :  { %8839 = vmatprep.subr.bf16.mxu1 %v10908_v0  ;;  %v8894_v51 = vpack.c.bf16 %v284_v48, %v283_v47  ;;  %v9885_v47 = vld [vmem:[%s10899_s0 + $0x10] sm:$0x3]  ;;  %v9892_v48 = vld [vmem:[%s10899_s0 + $0x16] sm:$0x3] }
  0xd1   :  { %8829 = vmatpush3.bf16.msra.mxu0 %v8828_v52  ;;  %v8906_v52 = vpack.c.bf16 %v292_v50, %v291_v49  ;;  %v8942_v49 = vpack.c.bf16 %v2322_v44, %v2321_v43 }
  0xd2   :  { %8841 = vmatpush3.bf16.msra.mxu1 %v8840_v53  ;;  %8830 = vmatprep.subr.bf16.mxu0 %v10908_v0  ;;  %v285_v53 = vld [vmem:[#allocation6 + $0x610] sm:$0xff] }
  0xd3   :  { %8842 = vmatprep.subr.bf16.mxu1 %v10908_v0  ;;  %v8897_v57 = vpack.c.bf16 %v286_v54, %v285_v53  ;;  %v2327_v53 = vld [vmem:[#allocation2 + $0xb0] sm:$0xff]  ;;  %v2328_v54 = vld [vmem:[#allocation2 + $0xb8] sm:$0xff] }
  0xd5   :  { %8832 = vmatpush3.bf16.msra.mxu0 %v8831_v58  ;;  %v8909_v58 = vpack.c.bf16 %v294_v56, %v293_v55  ;;  %v9903_v55 = vld [vmem:[%s10899_s0 + $0x14] sm:$0x3] }
  0xd6   :  { %8844 = vmatpush3.bf16.msra.mxu1 %v8843_v59  ;;  %8845 = vmatprep.subr.bf16.mxu0 %v10908_v0  ;;  %v287_v59 = vld [vmem:[#allocation6 + $0x620] sm:$0xff] }
  0xd7   :  { %8857 = vmatprep.subr.bf16.mxu1 %v10908_v0 }
  0xd8   :  { %7898 = vmatmul.mubr.msk.f32.vlgmr.msra.gmra.mrb[18].mxu0 %vm481_vm1, %v9606_v30 }
  0xd9   :  { %7917 = vmatmul.mubr.msk.f32.vlgmr.msra.gmra.mrb[18].mxu1 %vm481_vm1, %v9606_v30  ;;  %8847 = vmatpush3.bf16.msra.mxu0 %v8846_v2  ;;  %v289_v2 = vld [vmem:[#allocation6 + $0x630] sm:$0xff] }
  0xda   :  { %8859 = vmatpush3.bf16.msra.mxu1 %v8858_v3  ;;  %8848 = vmatprep.subr.bf16.mxu0 %v10908_v0  ;;  %v290_v3 = vld [vmem:[#allocation6 + $0x638] sm:$0xff] }
  0xdb   :  { %8860 = vmatprep.subr.bf16.mxu1 %v10908_v0  ;;  %7935 = vmatprep.mubr.msk.f32.mxu0 %vm9499_vm0, %v10906_v1 }
  0xdc   :  { %7954 = vmatprep.mubr.msk.f32.mxu1 %vm9499_vm0, %v10906_v1 }
  0xdd   :  { %8850 = vmatpush3.bf16.msra.mxu0 %v8849_v8  ;;  %v8903_v8 = vpack.c.bf16 %v290_v3, %v289_v2  ;;  %v9929_v3 = vld [vmem:[%s10899_s0 + $0x18] sm:$0x3] }
  0xde   :  { %8862 = vmatpush3.bf16.msra.mxu1 %v8861_v9  ;;  %8851 = vmatprep.subr.bf16.mxu0 %v10908_v0  ;;  %v8915_v9 = vpack.c.bf16 %v298_v6, %v297_v5  ;;  %v8960_v6 = vpack.c.bf16 %v2334_v62, %v2333_v61  ;;  %v2365_v62 = vld [vmem:[#allocation2 + $0x1e0] sm:$0xff] }
  0xdf   :  { %8863 = vmatprep.subr.bf16.mxu1 %v10908_v0 }
  0xe1   :  { %8853 = vmatpush3.bf16.msra.mxu0 %v8852_v14  ;;  %v2310_v14 = vld [vmem:[#allocation2 + $0x28] sm:$0xff] }
  0xe2   :  { %8865 = vmatpush3.bf16.msra.mxu1 %v8864_v15  ;;  %8854 = vmatprep.subr.bf16.mxu0 %v10908_v0  ;;  %v9820_v15 = vld [vmem:[%s10899_s0 + $0x6] sm:$0x3]  ;;  %v8924_v17 = vpack.c.bf16 %v2310_v14, %v2309_v13 }
  0xe3   :  { %8866 = vmatprep.subr.bf16.mxu1 %v10908_v0  ;;  %4496 = vrot.lane.b32.xlu1 %v9820_v15, %s9501_s14  ;;  %v2337_v14 = vld [vmem:[#allocation2 + $0x100] sm:$0xff] }
  0xe5   :  { %8856 = vmatpush3.bf16.msra.mxu0 %v8855_v20  ;;  %v9829_v20 = vld [vmem:[%s10899_s0 + $0x8] sm:$0x3] }
  0xe6   :  { %8868 = vmatpush3.bf16.msra.mxu1 %v8867_v21  ;;  %8869 = vmatprep.subr.bf16.mxu0 %v10908_v0  ;;  %v2311_v21 = vld [vmem:[#allocation2 + $0x30] sm:$0xff] }
  0xe7   :  { %8881 = vmatprep.subr.bf16.mxu1 %v10908_v0  ;;  %4498 = vrot.lane.b32.xlu0 %v9829_v20, %s9501_s14 }
  0xe8   :  { %7936 = vmatmul.mubr.msk.f32.vlgmr.msra.gmra.mrb[20].mxu0 %vm481_vm1, %v9606_v30  ;;  %4500 = vrot.lane.b32.xlu1 %v9835_v23, %s9501_s14 }
  0xe9   :  { %7955 = vmatmul.mubr.msk.f32.vlgmr.msra.gmra.mrb[20].mxu1 %vm481_vm1, %v9606_v30  ;;  %8871 = vmatpush3.bf16.msra.mxu0 %v8870_v26  ;;  %v8927_v26 = vpack.c.bf16 %v2312_v22, %v2311_v21  ;;  %v2339_v21 = vld [vmem:[#allocation2 + $0x110] sm:$0xff]  ;;  %v2340_v22 = vld [vmem:[#allocation2 + $0x118] sm:$0xff] }
  0xea   :  { %8883 = vmatpush3.bf16.msra.mxu1 %v8882_v27  ;;  %8872 = vmatprep.subr.bf16.mxu0 %v10908_v0  ;;  %v2313_v27 = vld [vmem:[#allocation2 + $0x40] sm:$0xff] }
  0xeb   :  { %8884 = vmatprep.subr.bf16.mxu1 %v10908_v0  ;;  %7973 = vmatprep.mubr.msk.f32.mxu0 %vm9499_vm0, %v10906_v1 }
  0xec   :  { %7992 = vmatprep.mubr.msk.f32.mxu1 %vm9499_vm0, %v10906_v1  ;;  %4504 = vrot.lane.b32.xlu1 %v9853_v32, %s9501_s14 }
  0xed   :  { %8874 = vmatpush3.bf16.msra.mxu0 %v8873_v33  ;;  %v9860_v33 = vld [vmem:[%s10899_s0 + $0xc] sm:$0x3] }
  0xee   :  { %8886 = vmatpush3.bf16.msra.mxu1 %v8885_v34  ;;  %8875 = vmatprep.subr.bf16.mxu0 %v10908_v0  ;;  %v8930_v34 = vpack.c.bf16 %v2314_v28, %v2313_v27  ;;  %v2345_v27 = vld [vmem:[#allocation2 + $0x140] sm:$0xff]  ;;  %v2346_v28 = vld [vmem:[#allocation2 + $0x148] sm:$0xff] }
  0xef   :  { %8887 = vmatprep.subr.bf16.mxu1 %v10908_v0  ;;  %4502 = vrot.lane.b32.xlu0 %v9860_v33, %s9501_s14  ;;  %v8978_v36 = vpack.c.bf16 %v2346_v28, %v2345_v27  ;;  %v2381_v28 = vld [vmem:[#allocation2 + $0x260] sm:$0xff] }
  0xf1   :  { %8877 = vmatpush3.bf16.msra.mxu0 %v8876_v39  ;;  %v2320_v39 = vld [vmem:[#allocation2 + $0x78] sm:$0xff] }
  0xf2   :  { %8889 = vmatpush3.bf16.msra.mxu1 %v8888_v40  ;;  %8878 = vmatprep.subr.bf16.mxu0 %v10908_v0  ;;  %v9871_v40 = vld [vmem:[%s10899_s0 + $0x12] sm:$0x3]  ;;  %v8939_v42 = vpack.c.bf16 %v2320_v39, %v2319_v38  ;;  %v2348_v39 = vld [vmem:[#allocation2 + $0x158] sm:$0xff] }
  0xf3   :  { %8890 = vmatprep.subr.bf16.mxu1 %v10908_v0  ;;  %4508 = vrot.lane.b32.xlu1 %v9871_v40, %s9501_s14  ;;  %v2347_v38 = vld [vmem:[#allocation2 + $0x150] sm:$0xff] }
  0xf4   :  { %4506 = vrot.lane.b32.xlu0 %v9885_v47, %s9501_s14  ;;  %v8981_v43 = vpack.c.bf16 %v2348_v39, %v2347_v38  ;;  %v2379_v38 = vld [vmem:[#allocation2 + $0x250] sm:$0xff]  ;;  %v2380_v39 = vld [vmem:[#allocation2 + $0x258] sm:$0xff] }
  0xf5   :  { %8880 = vmatpush3.bf16.msra.mxu0 %v8879_v45  ;;  %v2325_v45 = vld [vmem:[#allocation2 + $0xa0] sm:$0xff] }
  0xf6   :  { %8892 = vmatpush3.bf16.msra.mxu1 %v8891_v46  ;;  %8893 = vmatprep.subr.bf16.mxu0 %v10908_v0  ;;  %v2326_v46 = vld [vmem:[#allocation2 + $0xa8] sm:$0xff] }
  0xf7   :  { %8905 = vmatprep.subr.bf16.mxu1 %v10908_v0  ;;  %4512 = vrot.lane.b32.xlu1 %v9892_v48, %s9501_s14  ;;  %v8948_v50 = vpack.c.bf16 %v2326_v46, %v2325_v45  ;;  %v2353_v45 = vld [vmem:[#allocation2 + $0x180] sm:$0xff]  ;;  %v2354_v46 = vld [vmem:[#allocation2 + $0x188] sm:$0xff] }
  0xf8   :  { %7974 = vmatmul.mubr.msk.f32.vlgmr.msra.gmra.mrb[22].mxu0 %vm481_vm1, %v9606_v30  ;;  %4510 = vrot.lane.b32.xlu0 %v9903_v55, %s9501_s14 }
  0xf9   :  { %7993 = vmatmul.mubr.msk.f32.vlgmr.msra.gmra.mrb[22].mxu1 %vm481_vm1, %v9606_v30  ;;  %8895 = vmatpush3.bf16.msra.mxu0 %v8894_v51  ;;  %v8900_v30 = vpack.c.bf16 %v288_v60, %v287_v59  ;;  %v2323_v51 = vld [vmem:[#allocation2 + $0x90] sm:$0xff]  ;;  %v2330_v59 = vld [vmem:[#allocation2 + $0xc8] sm:$0xff] }
  0xfa   :  { %8907 = vmatpush3.bf16.msra.mxu1 %v8906_v52  ;;  %8896 = vmatprep.subr.bf16.mxu0 %v10908_v0  ;;  %v2324_v52 = vld [vmem:[#allocation2 + $0x98] sm:$0xff] }
  0xfb   :  { %8908 = vmatprep.subr.bf16.mxu1 %v10908_v0  ;;  %8011 = vmatprep.mubr.msk.f32.mxu0 %vm9499_vm0, %v10906_v1  ;;  %v8945_v56 = vpack.c.bf16 %v2324_v52, %v2323_v51  ;;  %v2355_v51 = vld [vmem:[#allocation2 + $0x190] sm:$0xff]  ;;  %v2356_v52 = vld [vmem:[#allocation2 + $0x198] sm:$0xff] }
  0xfc   :  { %8030 = vmatprep.mubr.msk.f32.mxu1 %vm9499_vm0, %v10906_v1  ;;  %4514 = vrot.lane.b32.xlu0 %v9929_v3, %s9501_s14 }
  0xfd   :  { %8898 = vmatpush3.bf16.msra.mxu0 %v8897_v57  ;;  %v8951_v57 = vpack.c.bf16 %v2328_v54, %v2327_v53  ;;  %v2359_v53 = vld [vmem:[#allocation2 + $0x1b0] sm:$0xff]  ;;  %v2360_v54 = vld [vmem:[#allocation2 + $0x1b8] sm:$0xff] }
  0xfe   :  { %8910 = vmatpush3.bf16.msra.mxu1 %v8909_v58  ;;  %8899 = vmatprep.subr.bf16.mxu0 %v10908_v0  ;;  %v2329_v58 = vld [vmem:[#allocation2 + $0xc0] sm:$0xff] }
  0xff   :  { %8911 = vmatprep.subr.bf16.mxu1 %v10908_v0  ;;  %v8954_v5 = vpack.c.bf16 %v2330_v59, %v2329_v58  ;;  %v2361_v58 = vld [vmem:[#allocation2 + $0x1c0] sm:$0xff]  ;;  %v2362_v59 = vld [vmem:[#allocation2 + $0x1c8] sm:$0xff] }
 0x100   :  { %4518 = vrot.lane.b32.xlu0 %v9955_v18, %s9501_s14 }
 0x101   :  { %8901 = vmatpush3.bf16.msra.mxu0 %v8900_v30  ;;  %v9920_v30 = vld [vmem:[%s10899_s0 + $0x1a] sm:$0x3] }
 0x102   :  { %8913 = vmatpush3.bf16.msra.mxu1 %v8912_v63  ;;  %8902 = vmatprep.subr.bf16.mxu0 %v10908_v0 }
 0x103   :  { %8914 = vmatprep.subr.bf16.mxu1 %v10908_v0  ;;  %4516 = vrot.lane.b32.xlu1 %v9920_v30, %s9501_s14 }
 0x105   :  { %8904 = vmatpush3.bf16.msra.mxu0 %v8903_v8  ;;  %v2332_v8 = vld [vmem:[#allocation2 + $0xd8] sm:$0xff] }
 0x106   :  { %8916 = vmatpush3.bf16.msra.mxu1 %v8915_v9  ;;  %8917 = vmatprep.subr.bf16.mxu0 %v10908_v0  ;;  %v2335_v9 = vld [vmem:[#allocation2 + $0xf0] sm:$0xff] }
 0x107   :  { %8923 = vmatprep.subr.bf16.mxu1 %v10908_v0  ;;  %4520 = vrot.lane.b32.xlu1 %v9940_v11, %s9501_s14  ;;  %v8963_v13 = vpack.c.bf16 %v2336_v10, %v2335_v9  ;;  %v2367_v9 = vld [vmem:[#allocation2 + $0x1f0] sm:$0xff]  ;;  %v2368_v10 = vld [vmem:[#allocation2 + $0x1f8] sm:$0xff] }
 0x108   :  { %8012 = vmatmul.mubr.msk.f32.vlgmr.msra.gmra.mrb[24].mxu0 %vm481_vm1, %v9396_v24 }
 0x109   :  { %8031 = vmatmul.mubr.msk.f32.vlgmr.msra.gmra.mrb[24].mxu1 %vm481_vm1, %v9396_v24  ;;  %8919 = vmatpush3.bf16.msra.mxu0 %v8918_v16  ;;  %v2341_v16 = vld [vmem:[#allocation2 + $0x120] sm:$0xff]  ;;  %v2344_v24 = vld [vmem:[#allocation2 + $0x138] sm:$0xff] }
 0x10a   :  { %8925 = vmatpush3.bf16.msra.mxu1 %v8924_v17  ;;  %8920 = vmatprep.subr.bf16.mxu0 %v10908_v0  ;;  %v2342_v17 = vld [vmem:[#allocation2 + $0x128] sm:$0xff] }
 0x10b   :  { %8926 = vmatprep.subr.bf16.mxu1 %v10908_v0  ;;  %8041 = vmatprep.mubr.msk.f32.mxu0 %vm9499_vm0, %v10906_v1 }
 0x10c   :  { %8052 = vmatprep.mubr.msk.f32.mxu1 %vm9499_vm0, %v10906_v1 }
 0x10d   :  { %8922 = vmatpush3.bf16.msra.mxu0 %v8921_v25  ;;  %v8969_v25 = vpack.c.bf16 %v2340_v22, %v2339_v21  ;;  %v2375_v21 = vld [vmem:[#allocation2 + $0x230] sm:$0xff]  ;;  %v2376_v22 = vld [vmem:[#allocation2 + $0x238] sm:$0xff] }
 0x10e   :  { %8928 = vmatpush3.bf16.msra.mxu1 %v8927_v26  ;;  %8929 = vmatprep.subr.bf16.mxu0 %v10908_v0 }
 0x10f   :  { %8935 = vmatprep.subr.bf16.mxu1 %v10908_v0 }
 0x110   :  { %8042 = vmatmul.mubr.msk.f32.vlgmr.msra.gmra.mrb[26].mxu0 %vm2409_vm2, %v9800_v4 }
 0x111   :  { %8053 = vmatmul.mubr.msk.f32.vlgmr.msra.gmra.mrb[26].mxu1 %vm2409_vm2, %v65_v12  ;;  %8931 = vmatpush3.bf16.msra.mxu0 %v8930_v34 }
 0x112   :  { %8937 = vmatpush3.bf16.msra.mxu1 %v8936_v35  ;;  %8932 = vmatprep.subr.bf16.mxu0 %v10908_v0 }
 0x113   :  { %8938 = vmatprep.subr.bf16.mxu1 %v10908_v0  ;;  %8063 = vmatprep.mubr.msk.f32.mxu0 %vm9499_vm0, %v10906_v1 }
 0x114   :  { %8074 = vmatprep.mubr.msk.f32.mxu1 %vm9499_vm0, %v10906_v1 }
 0x115   :  { %8934 = vmatpush3.bf16.msra.mxu0 %v8933_v41  ;;  %v2351_v41 = vld [vmem:[#allocation2 + $0x170] sm:$0xff] }
 0x116   :  { %8940 = vmatpush3.bf16.msra.mxu1 %v8939_v42  ;;  %8941 = vmatprep.subr.bf16.mxu0 %v10908_v0  ;;  %v2352_v42 = vld [vmem:[#allocation2 + $0x178] sm:$0xff] }
 0x117   :  { %8947 = vmatprep.subr.bf16.mxu1 %v10908_v0  ;;  %v8987_v44 = vpack.c.bf16 %v2352_v42, %v2351_v41  ;;  %v2383_v41 = vld [vmem:[#allocation2 + $0x270] sm:$0xff]  ;;  %v2384_v42 = vld [vmem:[#allocation2 + $0x278] sm:$0xff] }
 0x118   :  { %8064 = vmatmul.mubr.msk.f32.vlgmr.msra.gmra.mrb[28].mxu0 %vm2409_vm2, %v9806_v7  ;;  %v2331_v7 = vld [vmem:[#allocation2 + $0xd0] sm:$0xff] }
 0x119   :  { %8075 = vmatmul.mubr.msk.f32.vlgmr.msra.gmra.mrb[28].mxu1 %vm2409_vm2, %v9820_v15  ;;  %8943 = vmatpush3.bf16.msra.mxu0 %v8942_v49  ;;  %v8957_v12 = vpack.c.bf16 %v2332_v8, %v2331_v7  ;;  %v2338_v15 = vld [vmem:[#allocation2 + $0x108] sm:$0xff]  ;;  %v2357_v49 = vld [vmem:[#allocation2 + $0x1a0] sm:$0xff]  ;;  %v2363_v7 = vld [vmem:[#allocation2 + $0x1d0] sm:$0xff] }
 0x11a   :  { %8949 = vmatpush3.bf16.msra.mxu1 %v8948_v50  ;;  %8944 = vmatprep.subr.bf16.mxu0 %v10908_v0  ;;  %v8966_v19 = vpack.c.bf16 %v2338_v15, %v2337_v14  ;;  %v2358_v50 = vld [vmem:[#allocation2 + $0x1a8] sm:$0xff]  ;;  %v2364_v8 = vld [vmem:[#allocation2 + $0x1d8] sm:$0xff]  ;;  %v2369_v14 = vld [vmem:[#allocation2 + $0x200] sm:$0xff] }
 0x11b   :  { %v9912_v60 = vpop.f32.mrb[0].mxu0  ;;  %8950 = vmatprep.subr.bf16.mxu1 %v10908_v0  ;;  %8085 = vmatprep.mubr.msk.f32.mxu0 %vm9499_vm0, %v10906_v1  ;;  %v2370_v15 = vld [vmem:[#allocation2 + $0x208] sm:$0xff] }
 0x11c   :  { %v9922_v63 = vpop.f32.mrb[0].mxu1  ;;  %v7557_v2 = vpop.f32.mrb[1].mxu0  ;;  %8096 = vmatprep.mubr.msk.f32.mxu1 %vm9499_vm0, %v10906_v1 }
 0x11d   :  { %v7576_v4 = vpop.f32.mrb[1].mxu1  ;;  %8946 = vmatpush3.bf16.msra.mxu0 %v8945_v56  ;;  %v8993_v56 = vpack.c.bf16 %v2356_v52, %v2355_v51  ;;  %v10063_v51 = vld [vmem:[%s10899_s0 + $0x26] sm:$0x3] }
 0x11e   :  { %8952 = vmatpush3.bf16.msra.mxu1 %v8951_v57  ;;  %8953 = vmatprep.subr.bf16.mxu0 %v10908_v0  ;;  %v8999_v57 = vpack.c.bf16 %v2360_v54, %v2359_v53  ;;  %v2387_v53 = vld [vmem:[#allocation2 + $0x290] sm:$0xff]  ;;  %v2388_v54 = vld [vmem:[#allocation2 + $0x298] sm:$0xff] }
 0x11f   :  { %8959 = vmatprep.subr.bf16.mxu1 %v10908_v0 }
 0x120   :  { %8086 = vmatmul.mubr.msk.f32.vlgmr.msra.gmra.mrb[30].mxu0 %vm2409_vm2, %v9829_v20  ;;  %v8972_v20 = vpack.c.bf16 %v2342_v17, %v2341_v16  ;;  %v2373_v16 = vld [vmem:[#allocation2 + $0x220] sm:$0xff]  ;;  %v2374_v17 = vld [vmem:[#allocation2 + $0x228] sm:$0xff] }
 0x121   :  { %8097 = vmatmul.mubr.msk.f32.vlgmr.msra.gmra.mrb[30].mxu1 %vm2409_vm2, %v9835_v23  ;;  %8955 = vmatpush3.bf16.msra.mxu0 %v8954_v5  ;;  %v2343_v23 = vld [vmem:[#allocation2 + $0x130] sm:$0xff]  ;;  %v9002_v5 = vpack.c.bf16 %v2362_v59, %v2361_v58  ;;  %v9041_v58 = vpack.c.bf16 %v2388_v54, %v2387_v53 }
 0x122   :  { %8961 = vmatpush3.bf16.msra.mxu1 %v8960_v6  ;;  %8956 = vmatprep.subr.bf16.mxu0 %v10908_v0  ;;  %v8975_v26 = vpack.c.bf16 %v2344_v24, %v2343_v23  ;;  %v9023_v24 = vpack.c.bf16 %v2376_v22, %v2375_v21  ;;  %v2405_v21 = vld [vmem:[#allocation2 + $0x320] sm:$0xff]  ;;  %v2406_v22 = vld [vmem:[#allocation2 + $0x328] sm:$0xff] }
 0x123   :  { %8962 = vmatprep.subr.bf16.mxu1 %v10908_v0  ;;  %8107 = vmatprep.mubr.msk.f32.mxu0 %vm9499_vm0, %v10906_v1 }
 0x124   :  { %8118 = vmatprep.mubr.msk.f32.mxu1 %vm9499_vm0, %v10906_v1 }
 0x125   :  { %8958 = vmatpush3.bf16.msra.mxu0 %v8957_v12  ;;  %v9005_v12 = vpack.c.bf16 %v2364_v8, %v2363_v7 }
 0x126   :  { %8964 = vmatpush3.bf16.msra.mxu1 %v8963_v13  ;;  %8965 = vmatprep.subr.bf16.mxu0 %v10908_v0  ;;  %v9011_v13 = vpack.c.bf16 %v2368_v10, %v2367_v9  ;;  %v10084_v9 = vld [vmem:[%s10899_s0 + $0x28] sm:$0x3] }
 0x127   :  { %8971 = vmatprep.subr.bf16.mxu1 %v10908_v0 }
 0x128   :  { %8108 = vmatmul.mubr.msk.f32.vlgmr.msra.gmra.mrb[32].mxu0 %vm2409_vm2, %v9860_v33  ;;  %v2350_v33 = vld [vmem:[#allocation2 + $0x168] sm:$0xff] }
 0x129   :  { %8119 = vmatmul.mubr.msk.f32.vlgmr.msra.gmra.mrb[32].mxu1 %vm2409_vm2, %v9853_v32  ;;  %8967 = vmatpush3.bf16.msra.mxu0 %v8966_v19  ;;  %v8984_v37 = vpack.c.bf16 %v2350_v33, %v2349_v31  ;;  %v2371_v19 = vld [vmem:[#allocation2 + $0x210] sm:$0xff] }
 0x12a   :  { %8973 = vmatpush3.bf16.msra.mxu1 %v8972_v20  ;;  %8968 = vmatprep.subr.bf16.mxu0 %v10908_v0  ;;  %v2372_v20 = vld [vmem:[#allocation2 + $0x218] sm:$0xff] }
 0x12b   :  { %v9968_v29 = vpop.f32.mrb[2].mxu0  ;;  %8974 = vmatprep.subr.bf16.mxu1 %v10908_v0  ;;  %8129 = vmatprep.mubr.msk.f32.mxu0 %vm9499_vm0, %v10906_v1  ;;  %v9017_v23 = vpack.c.bf16 %v2372_v20, %v2371_v19  ;;  %v2401_v19 = vld [vmem:[#allocation2 + $0x300] sm:$0xff]  ;;  %v2402_v20 = vld [vmem:[#allocation2 + $0x308] sm:$0xff] }
 0x12c   :  { %v9973_v34 = vpop.f32.mrb[2].mxu1  ;;  %v7595_v32 = vpop.f32.mrb[3].mxu0  ;;  %8140 = vmatprep.mubr.msk.f32.mxu1 %vm9499_vm0, %v10906_v1 }
 0x12d   :  { %v7614_v35 = vpop.f32.mrb[3].mxu1  ;;  %8970 = vmatpush3.bf16.msra.mxu0 %v8969_v25  ;;  %v2377_v25 = vld [vmem:[#allocation2 + $0x240] sm:$0xff] }
 0x12e   :  { %8976 = vmatpush3.bf16.msra.mxu1 %v8975_v26  ;;  %8977 = vmatprep.subr.bf16.mxu0 %v10908_v0  ;;  %v2378_v26 = vld [vmem:[#allocation2 + $0x248] sm:$0xff]  ;;  %v10036_v32 = vld [vmem:[%s10899_s0 + $0x20] sm:$0x3] }
 0x12f   :  { %8983 = vmatprep.subr.bf16.mxu1 %v10908_v0  ;;  %v9026_v35 = vpack.c.bf16 %v2378_v26, %v2377_v25  ;;  %v10111_v25 = vld [vmem:[%s10899_s0 + $0x2e] sm:$0x3]  ;;  %v9068_v26 = vpack.c.bf16 %v2406_v22, %v2405_v21  ;;  %v4596_v22 = vld [vmem:[#allocation4 + $0x10] sm:$0xff] }
 0x130   :  { %8130 = vmatmul.mubr.msk.f32.vlgmr.msra.gmra.mrb[34].mxu0 %vm2409_vm2, %v9885_v47  ;;  %v8996_v47 = vpack.c.bf16 %v2358_v50, %v2357_v49  ;;  %v2389_v49 = vld [vmem:[#allocation2 + $0x2a0] sm:$0xff]  ;;  %v2390_v50 = vld [vmem:[#allocation2 + $0x2a8] sm:$0xff] }
 0x131   :  { %8141 = vmatmul.mubr.msk.f32.vlgmr.msra.gmra.mrb[34].mxu1 %vm2409_vm2, %v9871_v40  ;;  %8979 = vmatpush3.bf16.msra.mxu0 %v8978_v36  ;;  %v8990_v40 = vpack.c.bf16 %v2354_v46, %v2353_v45  ;;  %v10041_v36 = vld [vmem:[%s10899_s0 + $0x22] sm:$0x3]  ;;  %v2386_v46 = vld [vmem:[#allocation2 + $0x288] sm:$0xff]  ;;  %v9044_v52 = vpack.c.bf16 %v2390_v50, %v2389_v49 }
 0x132   :  { %8985 = vmatpush3.bf16.msra.mxu1 %v8984_v37  ;;  %8980 = vmatprep.subr.bf16.mxu0 %v10908_v0  ;;  %v2385_v45 = vld [vmem:[#allocation2 + $0x280] sm:$0xff]  ;;  %v4599_v21 = vld [vmem:[#allocation4 + $0x28] sm:$0xff] }
 0x133   :  { %8986 = vmatprep.subr.bf16.mxu1 %v10908_v0  ;;  %8151 = vmatprep.mubr.msk.f32.mxu0 %vm9499_vm0, %v10906_v1 }
 0x134   :  { %8162 = vmatprep.mubr.msk.f32.mxu1 %vm9499_vm0, %v10906_v1 }
 0x135   :  { %8982 = vmatpush3.bf16.msra.mxu0 %v8981_v43  ;;  %v9029_v43 = vpack.c.bf16 %v2380_v39, %v2379_v38 }
 0x136   :  { %8988 = vmatpush3.bf16.msra.mxu1 %v8987_v44  ;;  %8989 = vmatprep.subr.bf16.mxu0 %v10908_v0  ;;  %v9035_v44 = vpack.c.bf16 %v2384_v42, %v2383_v41 }
 0x137   :  { %8995 = vmatprep.subr.bf16.mxu1 %v10908_v0 }
 0x138   :  { %8152 = vmatmul.mubr.msk.f32.vlgmr.msra.gmra.mrb[36].mxu0 %vm2409_vm2, %v9903_v55  ;;  %v2366_v55 = vld [vmem:[#allocation2 + $0x1e8] sm:$0xff] }
 0x139   :  { %8163 = vmatmul.mubr.msk.f32.vlgmr.msra.gmra.mrb[36].mxu1 %vm2409_vm2, %v9892_v48  ;;  %8991 = vmatpush3.bf16.msra.mxu0 %v8990_v40  ;;  %v9008_v6 = vpack.c.bf16 %v2366_v55, %v2365_v62  ;;  %v10058_v40 = vld [vmem:[%s10899_s0 + $0x24] sm:$0x3]  ;;  %v2394_v55 = vld [vmem:[#allocation2 + $0x2c8] sm:$0xff] }
 0x13a   :  { %8997 = vmatpush3.bf16.msra.mxu1 %v8996_v47  ;;  %8992 = vmatprep.subr.bf16.mxu0 %v10908_v0  ;;  %v9038_v47 = vpack.c.bf16 %v2386_v46, %v2385_v45  ;;  %v2393_v62 = vld [vmem:[#allocation2 + $0x2c0] sm:$0xff] }
 0x13b   :  { %v9996_v61 = vpop.f32.mrb[4].mxu0  ;;  %8998 = vmatprep.subr.bf16.mxu1 %v10908_v0  ;;  %8173 = vmatprep.mubr.msk.f32.mxu0 %vm9499_vm0, %v10906_v1  ;;  %v9050_v10 = vpack.c.bf16 %v2394_v55, %v2393_v62 }
 0x13c   :  { %v10001_v2 = vpop.f32.mrb[4].mxu1  ;;  %v7633_v48 = vpop.f32.mrb[5].mxu0  ;;  %8184 = vmatprep.mubr.msk.f32.mxu1 %vm9499_vm0, %v10906_v1 }
 0x13d   :  { %v7652_v4 = vpop.f32.mrb[5].mxu1  ;;  %8994 = vmatpush3.bf16.msra.mxu0 %v8993_v56  ;;  %v2391_v56 = vld [vmem:[#allocation2 + $0x2b0] sm:$0xff] }
 0x13e   :  { %9000 = vmatpush3.bf16.msra.mxu1 %v8999_v57  ;;  %9001 = vmatprep.subr.bf16.mxu0 %v10908_v0  ;;  %v2392_v57 = vld [vmem:[#allocation2 + $0x2b8] sm:$0xff]  ;;  %v2397_v4 = vld [vmem:[#allocation2 + $0x2e0] sm:$0xff] }
 0x13f   :  { %9007 = vmatprep.subr.bf16.mxu1 %v10908_v0  ;;  %v9047_v59 = vpack.c.bf16 %v2392_v57, %v2391_v56 }
 0x140   :  { %8174 = vmatmul.mubr.msk.f32.vlgmr.msra.gmra.mrb[38].mxu0 %vm2409_vm2, %v9929_v3  ;;  %v9020_v3 = vpack.c.bf16 %v2374_v17, %v2373_v16  ;;  %v2399_v16 = vld [vmem:[#allocation2 + $0x2f0] sm:$0xff]  ;;  %v2400_v17 = vld [vmem:[#allocation2 + $0x2f8] sm:$0xff] }
 0x141   :  { %8185 = vmatmul.mubr.msk.f32.vlgmr.msra.gmra.mrb[38].mxu1 %vm2409_vm2, %v9920_v30  ;;  %9003 = vmatpush3.bf16.msra.mxu0 %v9002_v5  ;;  %v9014_v30 = vpack.c.bf16 %v2370_v15, %v2369_v14  ;;  %v2398_v5 = vld [vmem:[#allocation2 + $0x2e8] sm:$0xff]  ;;  %v2395_v14 = vld [vmem:[#allocation2 + $0x2d0] sm:$0xff]  ;;  %v2396_v15 = vld [vmem:[#allocation2 + $0x2d8] sm:$0xff] }
 0x142   :  { %9009 = vmatpush3.bf16.msra.mxu1 %v9008_v6  ;;  %9004 = vmatprep.subr.bf16.mxu0 %v10908_v0 }
 0x143   :  { %9010 = vmatprep.subr.bf16.mxu1 %v10908_v0  ;;  %8195 = vmatprep.mubr.msk.f32.mxu0 %vm9499_vm0, %v10906_v1 }
 0x144   :  { %8206 = vmatprep.mubr.msk.f32.mxu1 %vm9499_vm0, %v10906_v1 }
 0x145   :  { %9006 = vmatpush3.bf16.msra.mxu0 %v9005_v12  ;;  %v10089_v12 = vld [vmem:[%s10899_s0 + $0x2a] sm:$0x3] }
 0x146   :  { %9012 = vmatpush3.bf16.msra.mxu1 %v9011_v13  ;;  %9013 = vmatprep.subr.bf16.mxu0 %v10908_v0  ;;  %v9056_v13 = vpack.c.bf16 %v2398_v5, %v2397_v4 }
 0x147   :  { %9019 = vmatprep.subr.bf16.mxu1 %v10908_v0 }
 0x148   :  { %8196 = vmatmul.mubr.msk.f32.vlgmr.msra.gmra.mrb[40].mxu0 %vm2409_vm2, %v9955_v18  ;;  %v2382_v18 = vld [vmem:[#allocation2 + $0x268] sm:$0xff] }
 0x149   :  { %8207 = vmatmul.mubr.msk.f32.vlgmr.msra.gmra.mrb[40].mxu1 %vm2409_vm2, %v9940_v11  ;;  %9015 = vmatpush3.bf16.msra.mxu0 %v9014_v30  ;;  %v9032_v37 = vpack.c.bf16 %v2382_v18, %v2381_v28  ;;  %v9053_v30 = vpack.c.bf16 %v2396_v15, %v2395_v14  ;;  %v2403_v28 = vld [vmem:[#allocation2 + $0x310] sm:$0xff]  ;;  %v2404_v18 = vld [vmem:[#allocation2 + $0x318] sm:$0xff] }
 0x14a   :  { %9021 = vmatpush3.bf16.msra.mxu1 %v9020_v3  ;;  %9016 = vmatprep.subr.bf16.mxu0 %v10908_v0  ;;  %v9059_v3 = vpack.c.bf16 %v2400_v17, %v2399_v16 }
 0x14b   :  { %v10024_v27 = vpop.f32.mrb[6].mxu0  ;;  %9022 = vmatprep.subr.bf16.mxu1 %v10908_v0  ;;  %8217 = vmatprep.mubr.msk.f32.mxu0 %vm9499_vm0, %v10906_v1 }
 0x14c   :  { %v10029_v31 = vpop.f32.mrb[6].mxu1  ;;  %v7671_v11 = vpop.f32.mrb[7].mxu0  ;;  %8228 = vmatprep.mubr.msk.f32.mxu1 %vm9499_vm0, %v10906_v1 }
 0x14d   :  { %v7690_v33 = vpop.f32.mrb[7].mxu1  ;;  %9018 = vmatpush3.bf16.msra.mxu0 %v9017_v23  ;;  %v10106_v23 = vld [vmem:[%s10899_s0 + $0x2c] sm:$0x3]  ;;  %v2407_v11 = vld [vmem:[#allocation2 + $0x330] sm:$0xff] }
 0x14e   :  { %9024 = vmatpush3.bf16.msra.mxu1 %v9023_v24  ;;  %9025 = vmatprep.subr.bf16.mxu0 %v10908_v0  ;;  %v9062_v24 = vpack.c.bf16 %v2402_v20, %v2401_v19  ;;  %v2408_v33 = vld [vmem:[#allocation2 + $0x338] sm:$0xff]  ;;  %v4598_v19 = vld [vmem:[#allocation4 + $0x20] sm:$0xff] }
 0x14f   :  { %9031 = vmatprep.subr.bf16.mxu1 %v10908_v0 }
 0x150   :  { %8218 = vmatmul.mubr.msk.f32.vlgmr.msra.gmra.mrb[42].mxu0 %vm2409_vm2, %v10036_v32 }
 0x151   :  { %8229 = vmatmul.mubr.msk.f32.vlgmr.msra.gmra.mrb[42].mxu1 %vm2409_vm2, %v10041_v36  ;;  %9027 = vmatpush3.bf16.msra.mxu0 %v9026_v35  ;;  %v9065_v35 = vpack.c.bf16 %v2404_v18, %v2403_v28  ;;  %v4600_v28 = vld [vmem:[#allocation4 + $0x30] sm:$0xff]  ;;  %v4601_v18 = vld [vmem:[#allocation4 + $0x38] sm:$0xff] }
 0x152   :  { %9033 = vmatpush3.bf16.msra.mxu1 %v9032_v37  ;;  %9028 = vmatprep.subr.bf16.mxu0 %v10908_v0  ;;  %v9071_v37 = vpack.c.bf16 %v2408_v33, %v2407_v11  ;;  %v9083_v33 = vpack.c.bf16 %v4601_v18, %v4600_v28  ;;  %v6919_v18 = vld [vmem:[%s10904_s5 + $0x4] ss:$0 sm:$0xff] }
 0x153   :  { %9034 = vmatprep.subr.bf16.mxu1 %v10908_v0  ;;  %8239 = vmatprep.mubr.msk.f32.mxu0 %vm9499_vm0, %v10906_v1 }
 0x154   :  { %8250 = vmatprep.mubr.msk.f32.mxu1 %vm9499_vm0, %v10906_v1 }
 0x155   :  { %9030 = vmatpush3.bf16.msra.mxu0 %v9029_v43  ;;  %v10132_v43 = vld [vmem:[%s10899_s0 + $0x30] sm:$0x3] }
 0x156   :  { %9036 = vmatpush3.bf16.msra.mxu1 %v9035_v44  ;;  %9037 = vmatprep.subr.bf16.mxu0 %v10908_v0  ;;  %v10137_v44 = vld [vmem:[%s10899_s0 + $0x32] sm:$0x3] }
 0x157   :  { %9043 = vmatprep.subr.bf16.mxu1 %v10908_v0 }
 0x158   :  { %8240 = vmatmul.mubr.msk.f32.vlgmr.msra.gmra.mrb[44].mxu0 %vm2409_vm2, %v10058_v40 }
 0x159   :  { %8251 = vmatmul.mubr.msk.f32.vlgmr.msra.gmra.mrb[44].mxu1 %vm2409_vm2, %v10063_v51  ;;  %9039 = vmatpush3.bf16.msra.mxu0 %v9038_v47 }
 0x15a   :  { %9045 = vmatpush3.bf16.msra.mxu1 %v9044_v52  ;;  %9040 = vmatprep.subr.bf16.mxu0 %v10908_v0 }
 0x15b   :  { %v10072_v48 = vpop.f32.mrb[8].mxu0  ;;  %9046 = vmatprep.subr.bf16.mxu1 %v10908_v0  ;;  %8261 = vmatprep.mubr.msk.f32.mxu0 %vm9499_vm0, %v10906_v1 }
 0x15c   :  { %v10077_v6 = vpop.f32.mrb[8].mxu1  ;;  %v7709_v7 = vpop.f32.mrb[9].mxu0  ;;  %8272 = vmatprep.mubr.msk.f32.mxu1 %vm9499_vm0, %v10906_v1 }
 0x15d   :  { %v7728_v8 = vpop.f32.mrb[9].mxu1  ;;  %9042 = vmatpush3.bf16.msra.mxu0 %v9041_v58 }
 0x15e   :  { %9048 = vmatpush3.bf16.msra.mxu1 %v9047_v59  ;;  %9049 = vmatprep.subr.bf16.mxu0 %v10908_v0 }
 0x15f   :  { %9055 = vmatprep.subr.bf16.mxu1 %v10908_v0 }
 0x160   :  { %8262 = vmatmul.mubr.msk.f32.vlgmr.msra.gmra.mrb[46].mxu0 %vm2409_vm2, %v10084_v9 }
 0x161   :  { %8273 = vmatmul.mubr.msk.f32.vlgmr.msra.gmra.mrb[46].mxu1 %vm2409_vm2, %v10089_v12  ;;  %9051 = vmatpush3.bf16.msra.mxu0 %v9050_v10 }
 0x162   :  { %9057 = vmatpush3.bf16.msra.mxu1 %v9056_v13  ;;  %9052 = vmatprep.subr.bf16.mxu0 %v10908_v0 }
 0x163   :  { %9058 = vmatprep.subr.bf16.mxu1 %v10908_v0  ;;  %8283 = vmatprep.mubr.msk.f32.mxu0 %vm9499_vm0, %v10906_v1 }
 0x164   :  { %8294 = vmatprep.mubr.msk.f32.mxu1 %vm9499_vm0, %v10906_v1 }
 0x165   :  { %9054 = vmatpush3.bf16.msra.mxu0 %v9053_v30  ;;  %v4594_v30 = vld [vmem:[#allocation4] sm:$0xff] }
 0x166   :  { %9060 = vmatpush3.bf16.msra.mxu1 %v9059_v3  ;;  %9061 = vmatprep.subr.bf16.mxu0 %v10908_v0  ;;  %v4595_v3 = vld [vmem:[#allocation4 + $0x8] sm:$0xff] }
 0x167   :  { %9067 = vmatprep.subr.bf16.mxu1 %v10908_v0  ;;  %v9074_v20 = vpack.c.bf16 %v4595_v3, %v4594_v30 }
 0x168   :  { %8284 = vmatmul.mubr.msk.f32.vlgmr.msra.gmra.mrb[48].mxu0 %vm2409_vm2, %v10106_v23 }
 0x169   :  { %8295 = vmatmul.mubr.msk.f32.vlgmr.msra.gmra.mrb[48].mxu1 %vm2409_vm2, %v10111_v25  ;;  %9063 = vmatpush3.bf16.msra.mxu0 %v9062_v24  ;;  %v4597_v24 = vld [vmem:[#allocation4 + $0x18] sm:$0xff] }
 0x16a   :  { %9069 = vmatpush3.bf16.msra.mxu1 %v9068_v26  ;;  %9064 = vmatprep.subr.bf16.mxu0 %v10908_v0  ;;  %v9080_v26 = vpack.c.bf16 %v4599_v21, %v4598_v19  ;;  %v9077_v11 = vpack.c.bf16 %v4597_v24, %v4596_v22 }
 0x16b   :  { %v10120_v38 = vpop.f32.mrb[10].mxu0  ;;  %9070 = vmatprep.subr.bf16.mxu1 %v10908_v0  ;;  %8305 = vmatprep.mubr.msk.f32.mxu0 %vm9499_vm0, %v10906_v1 }
 0x16c   :  { %v10125_v39 = vpop.f32.mrb[10].mxu1  ;;  %v7747_v41 = vpop.f32.mrb[11].mxu0  ;;  %8316 = vmatprep.mubr.msk.f32.mxu1 %vm9499_vm0, %v10906_v1 }
 0x16d   :  { %v7766_v42 = vpop.f32.mrb[11].mxu1  ;;  %9066 = vmatpush3.bf16.msra.mxu0 %v9065_v35 }
 0x16e   :  { %9072 = vmatpush3.bf16.msra.mxu1 %v9071_v37  ;;  %9073 = vmatprep.subr.bf16.mxu0 %v10908_v0 }
 0x16f   :  { %9079 = vmatprep.subr.bf16.mxu1 %v10908_v0 }
 0x170   :  { %8306 = vmatmul.mubr.msk.f32.vlgmr.msra.gmra.mrb[50].mxu0 %vm2409_vm2, %v10132_v43 }
 0x171   :  { %8317 = vmatmul.mubr.msk.f32.vlgmr.msra.gmra.mrb[50].mxu1 %vm2409_vm2, %v10137_v44  ;;  %8327 = vmatprep.mubr.msk.f32.mxu0 %vm9499_vm0, %v10906_v1 }
 0x172   :  { %8338 = vmatprep.mubr.msk.f32.mxu1 %vm9499_vm0, %v10906_v1  ;;  %9075 = vmatpush3.bf16.msra.mxu0 %v9074_v20  ;;  %v4605_v1 = vld [vmem:[#allocation4 + $0x58] sm:$0xff] }
 0x173   :  { %9081 = vmatpush3.bf16.msra.mxu1 %v9080_v26  ;;  %9076 = vmatprep.subr.bf16.mxu0 %v10908_v0 }
 0x174   :  { %9082 = vmatprep.subr.bf16.mxu1 %v10908_v0 }
 0x176   :  { %9078 = vmatpush3.bf16.msra.mxu0 %v9077_v11 }
 0x177   :  { %9084 = vmatpush3.bf16.msra.mxu1 %v9083_v33  ;;  %9085 = vmatprep.subr.bf16.mxu0 %v10908_v0  ;;  %v10216_v33 = vadd.f32 %v6919_v18, %v9996_v61  ;;  %v6921_v61 = vld [vmem:[%s10904_s5 + $0x6] ss:$0 sm:$0xff] }
 0x178   :  { %9091 = vmatprep.subr.bf16.mxu1 %v10908_v0 }
 0x17b   :  { %v10149_v45 = vpop.f32.mrb[12].mxu0 }
 0x17c   :  { %v10151_v46 = vpop.f32.mrb[12].mxu1  ;;  %v7785_v49 = vpop.f32.mrb[13].mxu0 }
 0x17d   :  { %v7804_v50 = vpop.f32.mrb[13].mxu1  ;;  %v6915_v49 = vld [vmem:[%s10904_s5] ss:$0 sm:$0xff] }
 0x17e   :  { %v6916_v50 = vld [vmem:[%s10904_s5 + $0x1] ss:$0 sm:$0xff] }
 0x18b   :  { %v10153_v47 = vpop.f32.mrb[14].mxu0 }
 0x18c   :  { %v10155_v52 = vpop.f32.mrb[14].mxu1  ;;  %v7823_v53 = vpop.f32.mrb[15].mxu0 }
 0x18d   :  { %v7842_v54 = vpop.f32.mrb[15].mxu1  ;;  %v10188_v53 = vadd.f32 %v6915_v49, %v9912_v60  ;;  %v6918_v60 = vld [vmem:[%s10904_s5 + $0x3] ss:$0 sm:$0xff] }
 0x18e   :  { %v10191_v54 = vadd.f32 %v6916_v50, %v9922_v63  ;;  %v10205_v3 = vadd.f32 %v6918_v60, %v9973_v34 }
 0x19b   :  { %v10157_v56 = vpop.f32.mrb[16].mxu0 }
 0x19c   :  { %v10159_v57 = vpop.f32.mrb[16].mxu1  ;;  %v7861_v58 = vpop.f32.mrb[17].mxu0 }
 0x19d   :  { %v7880_v59 = vpop.f32.mrb[17].mxu1 }
 0x1ab   :  { %v10161_v62 = vpop.f32.mrb[18].mxu0 }
 0x1ac   :  { %v10163_v55 = vpop.f32.mrb[18].mxu1  ;;  %v7899_v4 = vpop.f32.mrb[19].mxu0 }
 0x1ad   :  { %v7918_v5 = vpop.f32.mrb[19].mxu1 }
 0x1bb   :  { %v10165_v7 = vpop.f32.mrb[20].mxu0 }
 0x1bc   :  { %v10167_v8 = vpop.f32.mrb[20].mxu1  ;;  %v7937_v10 = vpop.f32.mrb[21].mxu0 }
 0x1bd   :  { %v7956_v13 = vpop.f32.mrb[21].mxu1 }
 0x1cb   :  { %v10169_v14 = vpop.f32.mrb[22].mxu0 }
 0x1cc   :  { %v10171_v15 = vpop.f32.mrb[22].mxu1  ;;  %v7975_v16 = vpop.f32.mrb[23].mxu0 }
 0x1cd   :  { %v7994_v17 = vpop.f32.mrb[23].mxu1 }
 0x1ce   :  { %v6917_v17 = vld [vmem:[%s10904_s5 + $0x2] ss:$0 sm:$0xff] }
 0x1cf   :  { %v10202_v63 = vadd.f32 %v6917_v17, %v9968_v29  ;;  %v6920_v29 = vld [vmem:[%s10904_s5 + $0x5] ss:$0 sm:$0xff] }
 0x1db   :  { %v10174_v35 = vpop.f32.mrb[24].mxu0 }
 0x1dc   :  { %v10177_v37 = vpop.f32.mrb[24].mxu1  ;;  %v8013_v41 = vpop.f32.mrb[25].mxu0 }
 0x1dd   :  { %v8032_v42 = vpop.f32.mrb[25].mxu1 }
 0x1de   :  { %v10219_v42 = vadd.f32 %v6920_v29, %v10001_v2  ;;  %v6922_v2 = vld [vmem:[%s10904_s5 + $0x7] ss:$0 sm:$0xff] }
 0x1e3   :  { %v2479_v58 = vpop.f32.mrb[26].mxu0 }
 0x1e4   :  { %v4308_v59 = vadd.f32 %v2479_v58, %v10188_v53  ;;  %v2552_v4 = vpop.f32.mrb[26].mxu1  ;;  %v8043_v5 = vpop.f32.mrb[27].mxu0 }
 0x1e5   :  { %v4309_v10 = vadd.f32 %v2552_v4, %v10191_v54  ;;  %v8054_v13 = vpop.f32.mrb[27].mxu1 }
 0x1e6   :  { %v6993_v16 = vmul.f32 -1.442695, %v4308_v59 }
 0x1e7   :  { %v6994_v30 = vmul.f32 -1.442695, %v4309_v10 }
 0x1e8   :  { %9240 = vpow2.f32 %v6993_v16 }
 0x1e9   :  { %9242 = vpow2.f32 %v6994_v30  ;;  %v4491_v30 = vpop.permute.xlu0 %4490 }
 0x1eb   :  { %v2625_v19 = vpop.f32.mrb[28].mxu0 }
 0x1ec   :  { %v4310_v20 = vadd.f32 %v2625_v19, %v10202_v63  ;;  %v2698_v21 = vpop.f32.mrb[28].mxu1  ;;  %v8065_v22 = vpop.f32.mrb[29].mxu0  ;;  %v10230_v19 = vadd.f32 %v6921_v61, %v10024_v27 }
 0x1ed   :  { %v4311_v24 = vadd.f32 %v2698_v21, %v10205_v3  ;;  %v8076_v26 = vpop.f32.mrb[29].mxu1  ;;  %v10233_v21 = vadd.f32 %v6922_v2, %v10029_v31  ;;  %v6923_v31 = vld [vmem:[%s10904_s5 + $0x8] ss:$0 sm:$0xff] }
 0x1ee   :  { %v6995_v28 = vmul.f32 -1.442695, %v4310_v20 }
 0x1ef   :  { %v6996_v11 = vmul.f32 -1.442695, %v4311_v24 }
 0x1f0   :  { %9244 = vpow2.f32 %v6995_v28 }
 0x1f1   :  { %9246 = vpow2.f32 %v6996_v11 }
 0x1f2   :  { %v9241_v34 = vpop.eup %9240 }
 0x1f3   :  { %v9243_v41 = vpop.eup %9242  ;;  %v4412_v49 = vadd.f32 1.0, %v9241_v34  ;;  %v2771_v50 = vpop.f32.mrb[30].mxu0 }
 0x1f4   :  { %v4413_v58 = vadd.f32 1.0, %v9243_v41  ;;  %v4312_v59 = vadd.f32 %v2771_v50, %v10216_v33  ;;  %v2844_v4 = vpop.f32.mrb[30].mxu1  ;;  %v8087_v5 = vpop.f32.mrb[31].mxu0 }
 0x1f5   :  { %9248 = vrcp.f32 %v4412_v49  ;;  %v4313_v10 = vadd.f32 %v2844_v4, %v10219_v42  ;;  %v8098_v13 = vpop.f32.mrb[31].mxu1  ;;  %v4493_v49 = vpop.permute.xlu0 %4492 }
 0x1f6   :  { %9250 = vrcp.f32 %v4413_v58  ;;  %v6997_v16 = vmul.f32 -1.442695, %v4312_v59  ;;  %v6924_v59 = vld [vmem:[%s10904_s5 + $0x9] ss:$0 sm:$0xff]  ;;  %v4495_v5 = vpop.permute.xlu1 %4494 }
 0x1f7   :  { %v6998_v17 = vmul.f32 -1.442695, %v4313_v10 }
 0x1f8   :  { %9252 = vpow2.f32 %v6997_v16  ;;  %v10250_v16 = vadd.f32 %v6923_v31, %v10072_v48 }
 0x1f9   :  { %9254 = vpow2.f32 %v6998_v17  ;;  %v10254_v17 = vadd.f32 %v6924_v59, %v10077_v6 }
 0x1fa   :  { %v9245_v60 = vpop.eup %9244  ;;  %v4497_v6 = vpop.permute.xlu1 %4496 }
 0x1fb   :  { %v9247_v20 = vpop.eup %9246  ;;  %v4414_v22 = vadd.f32 1.0, %v9245_v60  ;;  %v2917_v24 = vpop.f32.mrb[32].mxu0 }
 0x1fc   :  { %v4415_v26 = vadd.f32 1.0, %v9247_v20  ;;  %v2990_v28 = vpop.f32.mrb[32].mxu1  ;;  %v4314_v18 = vadd.f32 %v2917_v24, %v10230_v19  ;;  %v8109_v11 = vpop.f32.mrb[33].mxu0 }
 0x1fd   :  { %9256 = vrcp.f32 %v4414_v22  ;;  %v4315_v29 = vadd.f32 %v2990_v28, %v10233_v21  ;;  %v8120_v34 = vpop.f32.mrb[33].mxu1  ;;  %v6925_v11 = vld [vmem:[%s10904_s5 + $0xa] ss:$0 sm:$0xff] }
 0x1fe   :  { %9258 = vrcp.f32 %v4415_v26  ;;  %v6999_v41 = vmul.f32 -1.442695, %v4314_v18 }
 0x1ff   :  { %v10237_v27 = vpop.eup %9248  ;;  %v7000_v50 = vmul.f32 -1.442695, %v4315_v29 }
 0x200   :  { %v10242_v58 = vpop.eup %9250  ;;  %v4568_v4 = vmul.f32 %v10237_v27, %v4491_v30  ;;  %9260 = vpow2.f32 %v6999_v41  ;;  %v6926_v41 = vld [vmem:[%s10904_s5 + $0xb] ss:$0 sm:$0xff] }
 0x201   :  { %9262 = vpow2.f32 %v7000_v50  ;;  %v4569_v10 = vmul.f32 %v10242_v58, %v4493_v49  ;;  %v10276_v50 = vadd.f32 %v6925_v11, %v10120_v38  ;;  %v4499_v38 = vpop.permute.xlu0 %4498 }
 0x202   :  { %v9253_v13 = vpop.eup %9252  ;;  %4699 = vrot.lane.b32.xlu0 %v4568_v4, %s9502_s30 }
 0x203   :  { %v9255_v61 = vpop.eup %9254  ;;  %v4416_v2 = vadd.f32 1.0, %v9253_v13  ;;  %4778 = vrot.lane.b32.xlu1 %v4569_v10, %s9502_s30  ;;  %v3063_v30 = vpop.f32.mrb[34].mxu0 }
 0x204   :  { %v4417_v60 = vadd.f32 1.0, %v9255_v61  ;;  %v4316_v20 = vadd.f32 %v3063_v30, %v10250_v16  ;;  %v3136_v22 = vpop.f32.mrb[34].mxu1  ;;  %v8131_v24 = vpop.f32.mrb[35].mxu0 }
 0x205   :  { %9264 = vrcp.f32 %v4416_v2  ;;  %v4317_v48 = vadd.f32 %v3136_v22, %v10254_v17  ;;  %v8142_v26 = vpop.f32.mrb[35].mxu1  ;;  %v6927_v24 = vld [vmem:[%s10904_s5 + $0xc] ss:$0 sm:$0xff] }
 0x206   :  { %9266 = vrcp.f32 %v4417_v60  ;;  %v7001_v28 = vmul.f32 -1.442695, %v4316_v20  ;;  %4522 = vrot.lane.b32.xlu0 %v10036_v32, %s9501_s14 }
 0x207   :  { %v10261_v18 = vpop.eup %9256  ;;  %v7002_v29 = vmul.f32 -1.442695, %v4317_v48  ;;  %4524 = vrot.lane.b32.xlu1 %v10041_v36, %s9501_s14  ;;  %v10280_v36 = vadd.f32 %v6926_v41, %v10125_v39  ;;  %v4501_v39 = vpop.permute.xlu1 %4500 }
 0x208   :  { %v10268_v34 = vpop.eup %9258  ;;  %v4570_v49 = vmul.f32 %v10261_v18, %v4495_v5  ;;  %9268 = vpow2.f32 %v7001_v28  ;;  %v6928_v28 = vld [vmem:[%s10904_s5 + $0xd] ss:$0 sm:$0xff] }
 0x209   :  { %9270 = vpow2.f32 %v7002_v29  ;;  %v4571_v32 = vmul.f32 %v10268_v34, %v4497_v6  ;;  %v10302_v29 = vadd.f32 %v6927_v24, %v10149_v45  ;;  %v4503_v45 = vpop.permute.xlu0 %4502 }
 0x20a   :  { %v9261_v31 = vpop.eup %9260  ;;  %4857 = vrot.lane.b32.xlu0 %v4570_v49, %s9502_s30 }
 0x20b   :  { %v9263_v59 = vpop.eup %9262  ;;  %v4418_v4 = vadd.f32 1.0, %v9261_v31  ;;  %4936 = vrot.lane.b32.xlu1 %v4571_v32, %s9502_s30  ;;  %v3209_v10 = vpop.f32.mrb[36].mxu0 }
 0x20c   :  { %v4419_v13 = vadd.f32 1.0, %v9263_v59  ;;  %v4318_v5 = vadd.f32 %v3209_v10, %v10276_v50  ;;  %v3282_v61 = vpop.f32.mrb[36].mxu1  ;;  %v8153_v2 = vpop.f32.mrb[37].mxu0 }
 0x20d   :  { %9272 = vrcp.f32 %v4418_v4  ;;  %v4319_v30 = vadd.f32 %v3282_v61, %v10280_v36  ;;  %v8164_v60 = vpop.f32.mrb[37].mxu1 }
 0x20e   :  { %9274 = vrcp.f32 %v4419_v13  ;;  %v7003_v20 = vmul.f32 -1.442695, %v4318_v5  ;;  %4526 = vrot.lane.b32.xlu0 %v10058_v40, %s9501_s14 }
 0x20f   :  { %v10287_v22 = vpop.eup %9264  ;;  %v7004_v48 = vmul.f32 -1.442695, %v4319_v30  ;;  %4528 = vrot.lane.b32.xlu1 %v10063_v51, %s9501_s14  ;;  %v10306_v51 = vadd.f32 %v6928_v28, %v10151_v46  ;;  %v4505_v46 = vpop.permute.xlu1 %4504  ;;  %v6929_v30 = vld [vmem:[%s10904_s5 + $0xe] ss:$0 sm:$0xff] }
 0x210   :  { %v10294_v26 = vpop.eup %9266  ;;  %9276 = vpow2.f32 %v7003_v20  ;;  %v4572_v40 = vmul.f32 %v10287_v22, %v4499_v38  ;;  %v6930_v20 = vld [vmem:[%s10904_s5 + $0xf] ss:$0 sm:$0xff] }
 0x211   :  { %9278 = vpow2.f32 %v7004_v48  ;;  %v4573_v6 = vmul.f32 %v10294_v26, %v4501_v39  ;;  %v10328_v48 = vadd.f32 %v6929_v30, %v10153_v47  ;;  %v4507_v47 = vpop.permute.xlu0 %4506 }
 0x212   :  { %v9269_v11 = vpop.eup %9268  ;;  %5015 = vrot.lane.b32.xlu0 %v4572_v40, %s9502_s30 }
 0x213   :  { %v9271_v41 = vpop.eup %9270  ;;  %v4420_v49 = vadd.f32 1.0, %v9269_v11  ;;  %5094 = vrot.lane.b32.xlu1 %v4573_v6, %s9502_s30  ;;  %v3355_v32 = vpop.f32.mrb[38].mxu0 }
 0x214   :  { %v4421_v31 = vadd.f32 1.0, %v9271_v41  ;;  %v4320_v59 = vadd.f32 %v3355_v32, %v10302_v29  ;;  %v3428_v4 = vpop.f32.mrb[38].mxu1  ;;  %v8175_v10 = vpop.f32.mrb[39].mxu0 }
 0x215   :  { %9280 = vrcp.f32 %v4420_v49  ;;  %v4321_v13 = vadd.f32 %v3428_v4, %v10306_v51  ;;  %v8186_v5 = vpop.f32.mrb[39].mxu1 }
 0x216   :  { %9282 = vrcp.f32 %v4421_v31  ;;  %v7005_v61 = vmul.f32 -1.442695, %v4320_v59  ;;  %4530 = vrot.lane.b32.xlu0 %v10084_v9, %s9501_s14 }
 0x217   :  { %v10313_v2 = vpop.eup %9272  ;;  %v7006_v38 = vmul.f32 -1.442695, %v4321_v13  ;;  %4532 = vrot.lane.b32.xlu1 %v10089_v12, %s9501_s14  ;;  %v10332_v12 = vadd.f32 %v6930_v20, %v10155_v52  ;;  %v4509_v52 = vpop.permute.xlu1 %4508 }
 0x218   :  { %v10320_v60 = vpop.eup %9274  ;;  %9284 = vpow2.f32 %v7005_v61  ;;  %v4574_v9 = vmul.f32 %v10313_v2, %v4503_v45 }
 0x219   :  { %9286 = vpow2.f32 %v7006_v38  ;;  %v4575_v39 = vmul.f32 %v10320_v60, %v4505_v46 }
 0x21a   :  { %v9277_v24 = vpop.eup %9276  ;;  %5173 = vrot.lane.b32.xlu0 %v4574_v9, %s9502_s30 }
 0x21b   :  { %v9279_v28 = vpop.eup %9278  ;;  %v4422_v40 = vadd.f32 1.0, %v9277_v24  ;;  %5252 = vrot.lane.b32.xlu1 %v4575_v39, %s9502_s30  ;;  %v3501_v6 = vpop.f32.mrb[40].mxu0 }
 0x21c   :  { %v4423_v11 = vadd.f32 1.0, %v9279_v28  ;;  %v4322_v41 = vadd.f32 %v3501_v6, %v10328_v48  ;;  %v3574_v49 = vpop.f32.mrb[40].mxu1  ;;  %v8197_v32 = vpop.f32.mrb[41].mxu0 }
 0x21d   :  { %9288 = vrcp.f32 %v4422_v40  ;;  %v4323_v31 = vadd.f32 %v3574_v49, %v10332_v12  ;;  %v8208_v59 = vpop.f32.mrb[41].mxu1  ;;  %v4513_v28 = vpop.permute.xlu1 %4512 }
 0x21e   :  { %9290 = vrcp.f32 %v4423_v11  ;;  %v7007_v4 = vmul.f32 -1.442695, %v4322_v41  ;;  %4534 = vrot.lane.b32.xlu0 %v10106_v23, %s9501_s14 }
 0x21f   :  { %v10339_v10 = vpop.eup %9280  ;;  %v7008_v13 = vmul.f32 -1.442695, %v4323_v31  ;;  %4536 = vrot.lane.b32.xlu1 %v10111_v25, %s9501_s14  ;;  %v4511_v25 = vpop.permute.xlu0 %4510 }
 0x220   :  { %v10343_v45 = vpop.eup %9282  ;;  %9292 = vpow2.f32 %v7007_v4  ;;  %v4576_v5 = vmul.f32 %v10339_v10, %v4507_v47 }
 0x221   :  { %9294 = vpow2.f32 %v7008_v13  ;;  %v4577_v61 = vmul.f32 %v10343_v45, %v4509_v52  ;;  %v4517_v13 = vpop.permute.xlu1 %4516 }
 0x222   :  { %v9285_v46 = vpop.eup %9284  ;;  %5331 = vrot.lane.b32.xlu0 %v4576_v5, %s9502_s30 }
 0x223   :  { %v9287_v30 = vpop.eup %9286  ;;  %v4424_v23 = vadd.f32 1.0, %v9285_v46  ;;  %5410 = vrot.lane.b32.xlu1 %v4577_v61, %s9502_s30  ;;  %v3647_v38 = vpop.f32.mrb[42].mxu0 }
 0x224   :  { %v4425_v20 = vadd.f32 1.0, %v9287_v30  ;;  %v3720_v9 = vpop.f32.mrb[42].mxu1  ;;  %v8219_v39 = vpop.f32.mrb[43].mxu0 }
 0x225   :  { %9296 = vrcp.f32 %v4424_v23  ;;  %v8230_v24 = vpop.f32.mrb[43].mxu1  ;;  %v4515_v52 = vpop.permute.xlu0 %4514 }
 0x226   :  { %9298 = vrcp.f32 %v4425_v20  ;;  %4538 = vrot.lane.b32.xlu0 %v10132_v43, %s9501_s14 }
 0x227   :  { %v10351_v40 = vpop.eup %9288  ;;  %4540 = vrot.lane.b32.xlu1 %v10137_v44, %s9501_s14 }
 0x228   :  { %v10355_v6 = vpop.eup %9290  ;;  %v4578_v11 = vmul.f32 %v10351_v40, %v4511_v25 }
 0x229   :  { %v4579_v41 = vmul.f32 %v10355_v6, %v4513_v28  ;;  %v4519_v25 = vpop.permute.xlu0 %4518  ;;  %v4521_v28 = vpop.permute.xlu1 %4520 }
 0x22a   :  { %v9293_v49 = vpop.eup %9292  ;;  %5489 = vrot.lane.b32.xlu0 %v4578_v11, %s9502_s30 }
 0x22b   :  { %v9295_v32 = vpop.eup %9294  ;;  %v4426_v31 = vadd.f32 1.0, %v9293_v49  ;;  %5568 = vrot.lane.b32.xlu1 %v4579_v41, %s9502_s30  ;;  %v3793_v43 = vpop.f32.mrb[44].mxu0 }
 0x22c   :  { %v4427_v47 = vadd.f32 1.0, %v9295_v32  ;;  %v3866_v59 = vpop.f32.mrb[44].mxu1  ;;  %v8241_v4 = vpop.f32.mrb[45].mxu0 }
 0x22d   :  { %9300 = vrcp.f32 %v4426_v31  ;;  %v8252_v44 = vpop.f32.mrb[45].mxu1 }
 0x22e   :  { %9302 = vrcp.f32 %v4427_v47 }
 0x22f   :  { %v10361_v5 = vpop.eup %9296 }
 0x230   :  { %v10363_v61 = vpop.eup %9298  ;;  %v4580_v46 = vmul.f32 %v10361_v5, %v4515_v52 }
 0x231   :  { %10924 = vst [vmem:[#allocation9_spill] sm:$0xff] %v10363_v61  ;;  %v4581_v30 = vmul.f32 %v10363_v61, %v4517_v13 }
 0x232   :  { %5647 = vrot.lane.b32.xlu0 %v4580_v46, %s9502_s30 }
 0x233   :  { %5726 = vrot.lane.b32.xlu1 %v4581_v30, %s9502_s30  ;;  %v3939_v23 = vpop.f32.mrb[46].mxu0 }
 0x234   :  { %v4012_v20 = vpop.f32.mrb[46].mxu1  ;;  %v8263_v39 = vpop.f32.mrb[47].mxu0 }
 0x235   :  { %v8274_v24 = vpop.f32.mrb[47].mxu1  ;;  %v6931_v39 = vld [vmem:[%s10904_s5 + $0x10] ss:$0 sm:$0xff] }
 0x236   :  { %v10388_v24 = vadd.f32 %v6931_v39, %v10157_v56  ;;  %v6934_v56 = vld [vmem:[%s10904_s5 + $0x13] ss:$0 sm:$0xff] }
 0x237   :  { %v10369_v11 = vpop.eup %9300  ;;  %v10406_v39 = vadd.f32 %v6934_v56, %v10163_v55 }
 0x238   :  { %10925 = vst [vmem:[#allocation10_spill] sm:$0xff] %v10369_v11  ;;  %v10371_v41 = vpop.eup %9302  ;;  %v4582_v49 = vmul.f32 %v10369_v11, %v4519_v25  ;;  %v6932_v25 = vld [vmem:[%s10904_s5 + $0x11] ss:$0 sm:$0xff]  ;;  %v4609_v11 = vld [vmem:[#allocation4 + $0x78] sm:$0xff] }
 0x239   :  { %10926 = vst [vmem:[#allocation11_spill] sm:$0xff] %v10371_v41  ;;  %v4583_v32 = vmul.f32 %v10371_v41, %v4521_v28  ;;  %v10391_v28 = vadd.f32 %v6932_v25, %v10159_v57  ;;  %v4608_v41 = vld [vmem:[#allocation4 + $0x70] sm:$0xff] }
 0x23a   :  { %5805 = vrot.lane.b32.xlu0 %v4582_v49, %s9502_s30  ;;  %v4324_v49 = vadd.f32 %v3647_v38, %v10388_v24  ;;  %v6935_v38 = vld [vmem:[%s10904_s5 + $0x14] ss:$0 sm:$0xff] }
 0x23b   :  { %5884 = vrot.lane.b32.xlu1 %v4583_v32, %s9502_s30  ;;  %v4085_v31 = vpop.f32.mrb[48].mxu0  ;;  %v6933_v32 = vld [vmem:[%s10904_s5 + $0x12] ss:$0 sm:$0xff]  ;;  %v10413_v25 = vadd.f32 %v6935_v38, %v10165_v7  ;;  %v6937_v7 = vld [vmem:[%s10904_s5 + $0x16] ss:$0 sm:$0xff] }
 0x23c   :  { %v4158_v47 = vpop.f32.mrb[48].mxu1  ;;  %v8285_v4 = vpop.f32.mrb[49].mxu0 }
 0x23d   :  { %v8296_v52 = vpop.f32.mrb[49].mxu1  ;;  %v4325_v4 = vadd.f32 %v3720_v9, %v10391_v28  ;;  %v4327_v9 = vadd.f32 %v3866_v59, %v10406_v39  ;;  %v4328_v55 = vadd.f32 %v3939_v23, %v10413_v25  ;;  %v10430_v23 = vadd.f32 %v6937_v7, %v10169_v14  ;;  %v6939_v14 = vld [vmem:[%s10904_s5 + $0x18] ss:$0 sm:$0xff] }
 0x23e   :  { %v7009_v52 = vmul.f32 -1.442695, %v4324_v49  ;;  %v6936_v49 = vld [vmem:[%s10904_s5 + $0x15] ss:$0 sm:$0xff] }
 0x23f   :  { %v7013_v59 = vmul.f32 -1.442695, %v4328_v55  ;;  %v4603_v55 = vld [vmem:[#allocation4 + $0x48] sm:$0xff] }
 0x240   :  { %9304 = vpow2.f32 %v7009_v52 }
 0x243   :  { %v10377_v44 = vpop.f32.mrb[50].mxu0 }
 0x244   :  { %v10379_v13 = vpop.f32.mrb[50].mxu1  ;;  %v8307_v46 = vpop.f32.mrb[51].mxu0 }
 0x245   :  { %v8318_v30 = vpop.f32.mrb[51].mxu1  ;;  %v10399_v46 = vadd.f32 %v6933_v32, %v10161_v62  ;;  %v10420_v32 = vadd.f32 %v6936_v49, %v10167_v8 }
 0x246   :  { %v7010_v30 = vmul.f32 -1.442695, %v4325_v4 }
 0x247   :  { %v4326_v57 = vadd.f32 %v3793_v43, %v10399_v46  ;;  %v7012_v43 = vmul.f32 -1.442695, %v4327_v9  ;;  %v4329_v52 = vadd.f32 %v4012_v20, %v10420_v32 }
 0x248   :  { %9306 = vpow2.f32 %v7010_v30  ;;  %v6938_v30 = vld [vmem:[%s10904_s5 + $0x17] ss:$0 sm:$0xff] }
 0x249   :  { %v7011_v62 = vmul.f32 -1.442695, %v4326_v57  ;;  %v7014_v38 = vmul.f32 -1.442695, %v4329_v52  ;;  %v10433_v9 = vadd.f32 %v6938_v30, %v10171_v15  ;;  %v6940_v15 = vld [vmem:[%s10904_s5 + $0x19] ss:$0 sm:$0xff] }
 0x24a   :  { %v9305_v4 = vpop.eup %9304  ;;  %v10447_v0 = vadd.f32 %v6940_v15, %v10177_v37  ;;  %v10929_v15 = vmov 0.0   ;;  %s9503_s5 = smov 64  }
 0x24b   :  { %9308 = vpow2.f32 %v7011_v62  ;;  %v4428_v57 = vadd.f32 1.0, %v9305_v4  ;;  %v4330_v62 = vadd.f32 %v4085_v31, %v10430_v23  ;;  %v4331_v49 = vadd.f32 %v4158_v47, %v10433_v9 }
 0x24c   :  { %9310 = vpow2.f32 %v7012_v43  ;;  %v4602_v43 = vld [vmem:[#allocation4 + $0x40] sm:$0xff]  ;;  %v10444_v47 = vadd.f32 %v6939_v14, %v10174_v35  ;;  %v4333_v35 = vadd.f32 %v10379_v13, %v10447_v0 }
 0x24d   :  { %9312 = vpow2.f32 %v7013_v59  ;;  %v4606_v59 = vld [vmem:[#allocation4 + $0x60] sm:$0xff]  ;;  %v7015_v7 = vmul.f32 -1.442695, %v4330_v62  ;;  %v7016_v31 = vmul.f32 -1.442695, %v4331_v49  ;;  %v9086_v30 = vpack.c.bf16 %v4603_v55, %v4602_v43 }
 0x24e   :  { %9314 = vrcp.f32 %v4428_v57  ;;  %v4332_v62 = vadd.f32 %v10377_v44, %v10444_v47  ;;  %v10928_v55 = vmov 0.0|0.0   ;;  %v4610_v14 = vld [vmem:[#allocation4 + $0x80] sm:$0xff]  ;;  %v4611_v44 = vld [vmem:[#allocation4 + $0x88] sm:$0xff] }
 0x24f   :  { %9316 = vpow2.f32 %v7014_v38  ;;  %v4614_v13 = vld [vmem:[#allocation4 + $0xa0] sm:$0xff] }
 0x252   :  { %v9307_v56 = vpop.eup %9306 }
 0x253   :  { %v4429_v8 = vadd.f32 1.0, %v9307_v56  ;;  %v4607_v56 = vld [vmem:[#allocation4 + $0x68] sm:$0xff] }
 0x254   :  { %v9092_v38 = vpack.c.bf16 %v4607_v56, %v4606_v59 }
 0x255   :  { %v9309_v20 = vpop.eup %9308  ;;  %9318 = vrcp.f32 %v4429_v8  ;;  %v4604_v8 = vld [vmem:[#allocation4 + $0x50] sm:$0xff] }
 0x256   :  { %v9311_v4 = vpop.eup %9310  ;;  %v4430_v52 = vadd.f32 1.0, %v9309_v20  ;;  %v9089_v37 = vpack.c.bf16 %v4605_v1, %v4604_v8 }
 0x257   :  { %v4431_v57 = vadd.f32 1.0, %v9311_v4  ;;  %v9313_v61 = vpop.eup %9312  ;;  %v9095_v4 = vpack.c.bf16 %v4609_v11, %v4608_v41  ;;  %v7018_v11 = vmul.f32 -1.442695, %v4333_v35  ;;  %v9098_v41 = vpack.c.bf16 %v4611_v44, %v4610_v14 }
 0x258   :  { %9320 = vrcp.f32 %v4430_v52  ;;  %v10455_v43 = vpop.eup %9314  ;;  %v4432_v59 = vadd.f32 1.0, %v9313_v61 }
 0x259   :  { %9322 = vpow2.f32 %v7015_v7  ;;  %10927 = vst [vmem:[#allocation12_spill] sm:$0xff] %v10455_v43  ;;  %v9317_v52 = vpop.eup %9316  ;;  %v4615_v7 = vld [vmem:[#allocation4 + $0xa8] sm:$0xff] }
 0x25a   :  { %9324 = vpow2.f32 %v7016_v31  ;;  %v7017_v31 = vmul.f32 -1.442695, %v4332_v62  ;;  %v9104_v8 = vpack.c.bf16 %v4615_v7, %v4614_v13 }
 0x25b   :  { %9326 = vrcp.f32 %v4431_v57 }
 0x25c   :  { %9328 = vrcp.f32 %v4432_v59  ;;  %v4619_v59 = vld [vmem:[#allocation4 + $0xc8] sm:$0xff] }
 0x25d   :  { %9330 = vpow2.f32 %v7017_v31  ;;  %v4622_v31 = vld [vmem:[#allocation4 + $0xe0] sm:$0xff] }
 0x25e   :  { %9332 = vpow2.f32 %v7018_v11 }
 0x25f   :  { %v10461_v1 = vpop.eup %9318 }
 0x274   :  { %v4700_v20 = vpop.permute.xlu0 %4699 }
 0x275   :  { %v4779_v49 = vpop.permute.xlu1 %4778  ;;  %8328 = vmatmul.mubr.msk.f32.vlgmr.msra.gmra.mrb[52].mxu0 %vm2409_vm2, %v4700_v20  ;;  %v4612_v20 = vld [vmem:[#allocation4 + $0x90] sm:$0xff] }
 0x276   :  { %8339 = vmatmul.mubr.msk.f32.vlgmr.msra.gmra.mrb[52].mxu1 %vm2409_vm2, %v4779_v49  ;;  %9087 = vmatpush3.bf16.msra.mxu0 %v9086_v30  ;;  %v4613_v49 = vld [vmem:[#allocation4 + $0x98] sm:$0xff] }
 0x277   :  { %9093 = vmatpush3.bf16.msra.mxu1 %v9092_v38  ;;  %9088 = vmatprep.subr.bf16.mxu0 %v10928_v55  ;;  %v4433_v38 = vadd.f32 1.0, %v9317_v52  ;;  %v4618_v52 = vld [vmem:[#allocation4 + $0xc0] sm:$0xff] }
 0x278   :  { %v4523_v56 = vpop.permute.xlu0 %4522  ;;  %9094 = vmatprep.subr.bf16.mxu1 %v10928_v55  ;;  %8360 = vmatprep.mubr.msk.f32.mxu1 %vm9499_vm0, %v10929_v15 }
 0x279   :  { %v4525_v30 = vpop.permute.xlu1 %4524  ;;  %v4584_v57 = vmul.f32 %v10455_v43, %v4523_v56  ;;  %8349 = vmatprep.mubr.msk.f32.mxu0 %vm9499_vm0, %v10929_v15  ;;  %v4616_v56 = vld [vmem:[#allocation4 + $0xb0] sm:$0xff]  ;;  %v4617_v43 = vld [vmem:[#allocation4 + $0xb8] sm:$0xff]  ;;  %9334 = vrcp.f32 %v4433_v38  ;;  %v9110_v38 = vpack.c.bf16 %v4619_v59, %v4618_v52  ;;  %v4626_v59 = vld [vmem:[#allocation4 + $0x100] sm:$0xff] }
 0x27a   :  { %v4585_v61 = vmul.f32 %v10461_v1, %v4525_v30  ;;  %9090 = vmatpush3.bf16.msra.mxu0 %v9089_v37  ;;  %v10472_v37 = vpop.eup %9320  ;;  %v9107_v44 = vpack.c.bf16 %v4617_v43, %v4616_v56  ;;  %v4623_v30 = vld [vmem:[#allocation4 + $0xe8] sm:$0xff] }
 0x27b   :  { %9096 = vmatpush3.bf16.msra.mxu1 %v9095_v4  ;;  %5963 = vrot.lane.b32.xlu0 %v4584_v57, %s9502_s30  ;;  %10930 = vst [vmem:[#allocation13_spill] sm:$0xff] %v10472_v37  ;;  %v9101_v4 = vpack.c.bf16 %v4613_v49, %v4612_v20  ;;  %v9323_v14 = vpop.eup %9322  ;;  %v9116_v20 = vpack.c.bf16 %v4623_v30, %v4622_v31  ;;  %v4620_v49 = vld [vmem:[#allocation4 + $0xd0] sm:$0xff] }
 0x27c   :  { %6042 = vrot.lane.b32.xlu1 %v4585_v61, %s9502_s30  ;;  %v4858_v62 = vpop.permute.xlu0 %4857  ;;  %9097 = vmatprep.subr.bf16.mxu0 %v10928_v55  ;;  %v9325_v13 = vpop.eup %9324  ;;  %v4434_v43 = vadd.f32 1.0, %v9323_v14 }
 0x27d   :  { %v4937_v35 = vpop.permute.xlu1 %4936  ;;  %8350 = vmatmul.mubr.msk.f32.vlgmr.msra.gmra.mrb[54].mxu0 %vm2409_vm2, %v4858_v62  ;;  %9103 = vmatprep.subr.bf16.mxu1 %v10928_v55  ;;  %v10479_v57 = vpop.eup %9326  ;;  %v4621_v62 = vld [vmem:[#allocation4 + $0xd8] sm:$0xff] }
 0x27e   :  { %8361 = vmatmul.mubr.msk.f32.vlgmr.msra.gmra.mrb[54].mxu1 %vm2409_vm2, %v4937_v35  ;;  %9099 = vmatpush3.bf16.msra.mxu0 %v9098_v41  ;;  %10931 = vst [vmem:[#allocation14_spill] sm:$0xff] %v10479_v57  ;;  %v4624_v35 = vld [vmem:[#allocation4 + $0xf0] sm:$0xff]  ;;  %9336 = vrcp.f32 %v4434_v43  ;;  %v9113_v14 = vpack.c.bf16 %v4621_v62, %v4620_v49 }
 0x27f   :  { %9105 = vmatpush3.bf16.msra.mxu1 %v9104_v8  ;;  %9100 = vmatprep.subr.bf16.mxu0 %v10928_v55  ;;  %v4435_v8 = vadd.f32 1.0, %v9325_v13  ;;  %v4627_v13 = vld [vmem:[#allocation4 + $0x108] sm:$0xff] }
 0x280   :  { %v4527_v7 = vpop.permute.xlu0 %4526  ;;  %9106 = vmatprep.subr.bf16.mxu1 %v10928_v55  ;;  %8382 = vmatprep.mubr.msk.f32.mxu1 %vm9499_vm0, %v10929_v15 }
 0x281   :  { %v4529_v11 = vpop.permute.xlu1 %4528  ;;  %v4586_v61 = vmul.f32 %v10472_v37, %v4527_v7  ;;  %8371 = vmatprep.mubr.msk.f32.mxu0 %vm9499_vm0, %v10929_v15  ;;  %v4625_v7 = vld [vmem:[#allocation4 + $0xf8] sm:$0xff]  ;;  %9338 = vrcp.f32 %v4435_v8 }
 0x282   :  { %v4587_v41 = vmul.f32 %v10479_v57, %v4529_v11  ;;  %9102 = vmatpush3.bf16.msra.mxu0 %v9101_v4  ;;  %v10490_v4 = vpop.eup %9328  ;;  %v9119_v52 = vpack.c.bf16 %v4625_v7, %v4624_v35  ;;  %v4630_v11 = vld [vmem:[#allocation4 + $0x120] sm:$0xff]  ;;  %v4629_v35 = vld [vmem:[#allocation4 + $0x118] sm:$0xff] }
 0x283   :  { %9108 = vmatpush3.bf16.msra.mxu1 %v9107_v44  ;;  %6121 = vrot.lane.b32.xlu0 %v4586_v61, %s9502_s30  ;;  %10932 = vst [vmem:[#allocation15_spill] sm:$0xff] %v10490_v4  ;;  %v9331_v44 = vpop.eup %9330  ;;  %v4631_v61 = vld [vmem:[#allocation4 + $0x128] sm:$0xff] }
 0x284   :  { %6200 = vrot.lane.b32.xlu1 %v4587_v41, %s9502_s30  ;;  %v5016_v56 = vpop.permute.xlu0 %5015  ;;  %9109 = vmatprep.subr.bf16.mxu0 %v10928_v55  ;;  %v9333_v31 = vpop.eup %9332  ;;  %v9128_v62 = vpack.c.bf16 %v4631_v61, %v4630_v11  ;;  %v4638_v11 = vld [vmem:[#allocation4 + $0x160] sm:$0xff]  ;;  %v4639_v61 = vld [vmem:[#allocation4 + $0x168] sm:$0xff] }
 0x285   :  { %v5095_v37 = vpop.permute.xlu1 %5094  ;;  %8372 = vmatmul.mubr.msk.f32.vlgmr.msra.gmra.mrb[56].mxu0 %vm2409_vm2, %v5016_v56  ;;  %9115 = vmatprep.subr.bf16.mxu1 %v10928_v55  ;;  %v4437_v49 = vadd.f32 1.0, %v9333_v31  ;;  %v4628_v56 = vld [vmem:[#allocation4 + $0x110] sm:$0xff] }
 0x286   :  { %8383 = vmatmul.mubr.msk.f32.vlgmr.msra.gmra.mrb[56].mxu1 %vm2409_vm2, %v5095_v37  ;;  %9111 = vmatpush3.bf16.msra.mxu0 %v9110_v38  ;;  %v10497_v37 = vpop.eup %9334  ;;  %v4436_v38 = vadd.f32 1.0, %v9331_v44 }
 0x287   :  { %9117 = vmatpush3.bf16.msra.mxu1 %v9116_v20  ;;  %9112 = vmatprep.subr.bf16.mxu0 %v10928_v55  ;;  %v9122_v20 = vpack.c.bf16 %v4627_v13, %v4626_v59  ;;  %v4635_v59 = vld [vmem:[#allocation4 + $0x148] sm:$0xff] }
 0x288   :  { %v4531_v30 = vpop.permute.xlu0 %4530  ;;  %9118 = vmatprep.subr.bf16.mxu1 %v10928_v55  ;;  %8404 = vmatprep.mubr.msk.f32.mxu1 %vm9499_vm0, %v10929_v15  ;;  %9340 = vrcp.f32 %v4436_v38  ;;  %v10510_v13 = vpop.eup %9336 }
 0x289   :  { %v4533_v43 = vpop.permute.xlu1 %4532  ;;  %v4588_v41 = vmul.f32 %v10490_v4, %v4531_v30  ;;  %8393 = vmatprep.mubr.msk.f32.mxu0 %vm9499_vm0, %v10929_v15  ;;  %v4632_v30 = vld [vmem:[#allocation4 + $0x130] sm:$0xff]  ;;  %v4633_v4 = vld [vmem:[#allocation4 + $0x138] sm:$0xff]  ;;  %9342 = vrcp.f32 %v4437_v49 }
 0x28a   :  { %v4589_v8 = vmul.f32 %v10497_v37, %v4533_v43  ;;  %9114 = vmatpush3.bf16.msra.mxu0 %v9113_v14  ;;  %v9125_v14 = vpack.c.bf16 %v4629_v35, %v4628_v56  ;;  %v9131_v44 = vpack.c.bf16 %v4633_v4, %v4632_v30  ;;  %v4637_v49 = vld [vmem:[#allocation4 + $0x158] sm:$0xff]  ;;  %v4640_v56 = vld [vmem:[#allocation4 + $0x170] sm:$0xff] }
 0x28b   :  { %9120 = vmatpush3.bf16.msra.mxu1 %v9119_v52  ;;  %6279 = vrot.lane.b32.xlu0 %v4588_v41, %s9502_s30  ;;  %v4634_v52 = vld [vmem:[#allocation4 + $0x140] sm:$0xff]  ;;  %v4641_v35 = vld [vmem:[#allocation4 + $0x178] sm:$0xff] }
 0x28c   :  { %6358 = vrot.lane.b32.xlu1 %v4589_v8, %s9502_s30  ;;  %v5174_v7 = vpop.permute.xlu0 %5173  ;;  %9121 = vmatprep.subr.bf16.mxu0 %v10928_v55  ;;  %v9134_v38 = vpack.c.bf16 %v4635_v59, %v4634_v52  ;;  %v9140_v8 = vpack.c.bf16 %v4639_v61, %v4638_v11  ;;  %v4643_v52 = vld [vmem:[#allocation4 + $0x188] sm:$0xff]  ;;  %v4646_v11 = vld [vmem:[#allocation4 + $0x1a0] sm:$0xff] }
 0x28d   :  { %v5253_v57 = vpop.permute.xlu1 %5252  ;;  %8394 = vmatmul.mubr.msk.f32.vlgmr.msra.gmra.mrb[58].mxu0 %vm2409_vm2, %v5174_v7  ;;  %9127 = vmatprep.subr.bf16.mxu1 %v10928_v55  ;;  %v4647_v61 = vld [vmem:[#allocation4 + $0x1a8] sm:$0xff] }
 0x28e   :  { %8405 = vmatmul.mubr.msk.f32.vlgmr.msra.gmra.mrb[58].mxu1 %vm2409_vm2, %v5253_v57  ;;  %9123 = vmatpush3.bf16.msra.mxu0 %v9122_v20  ;;  %v10515_v57 = vpop.eup %9338  ;;  %v4636_v20 = vld [vmem:[#allocation4 + $0x150] sm:$0xff] }
 0x28f   :  { %9129 = vmatpush3.bf16.msra.mxu1 %v9128_v62  ;;  %9124 = vmatprep.subr.bf16.mxu0 %v10928_v55  ;;  %v9137_v30 = vpack.c.bf16 %v4637_v49, %v4636_v20  ;;  %v9152_v20 = vpack.c.bf16 %v4647_v61, %v4646_v11  ;;  %v4644_v49 = vld [vmem:[#allocation4 + $0x190] sm:$0xff]  ;;  %v4654_v11 = vld [vmem:[#allocation4 + $0x1e0] sm:$0xff]  ;;  %v4655_v61 = vld [vmem:[#allocation4 + $0x1e8] sm:$0xff] }
 0x290   :  { %v4535_v31 = vpop.permute.xlu0 %4534  ;;  %9130 = vmatprep.subr.bf16.mxu1 %v10928_v55  ;;  %8426 = vmatprep.mubr.msk.f32.mxu1 %vm9499_vm0, %v10929_v15 }
 0x291   :  { %v4537_v43 = vpop.permute.xlu1 %4536  ;;  %v4590_v41 = vmul.f32 %v10510_v13, %v4535_v31  ;;  %8415 = vmatprep.mubr.msk.f32.mxu0 %vm9499_vm0, %v10929_v15 }
 0x292   :  { %v4591_v4 = vmul.f32 %v10515_v57, %v4537_v43  ;;  %9126 = vmatpush3.bf16.msra.mxu0 %v9125_v14  ;;  %v9143_v14 = vpack.c.bf16 %v4641_v35, %v4640_v56  ;;  %v10528_v59 = vpop.eup %9340  ;;  %v4648_v35 = vld [vmem:[#allocation4 + $0x1b0] sm:$0xff] }
 0x293   :  { %9132 = vmatpush3.bf16.msra.mxu1 %v9131_v44  ;;  %6437 = vrot.lane.b32.xlu0 %v4590_v41, %s9502_s30  ;;  %v4642_v44 = vld [vmem:[#allocation4 + $0x180] sm:$0xff]  ;;  %v10533_v43 = vpop.eup %9342 }
 0x294   :  { %6516 = vrot.lane.b32.xlu1 %v4591_v4, %s9502_s30  ;;  %v5332_v62 = vpop.permute.xlu0 %5331  ;;  %9133 = vmatprep.subr.bf16.mxu0 %v10928_v55 }
 0x295   :  { %v5411_v7 = vpop.permute.xlu1 %5410  ;;  %8416 = vmatmul.mubr.msk.f32.vlgmr.msra.gmra.mrb[60].mxu0 %vm2409_vm2, %v5332_v62  ;;  %9139 = vmatprep.subr.bf16.mxu1 %v10928_v55  ;;  %v4645_v62 = vld [vmem:[#allocation4 + $0x198] sm:$0xff] }
 0x296   :  { %8427 = vmatmul.mubr.msk.f32.vlgmr.msra.gmra.mrb[60].mxu1 %vm2409_vm2, %v5411_v7  ;;  %9135 = vmatpush3.bf16.msra.mxu0 %v9134_v38  ;;  %v4649_v7 = vld [vmem:[#allocation4 + $0x1b8] sm:$0xff] }
 0x297   :  { %9141 = vmatpush3.bf16.msra.mxu1 %v9140_v8  ;;  %9136 = vmatprep.subr.bf16.mxu0 %v10928_v55  ;;  %v9146_v8 = vpack.c.bf16 %v4643_v52, %v4642_v44  ;;  %v4650_v44 = vld [vmem:[#allocation4 + $0x1c0] sm:$0xff]  ;;  %v4651_v52 = vld [vmem:[#allocation4 + $0x1c8] sm:$0xff] }
 0x298   :  { %v4539_v31 = vpop.permute.xlu0 %4538  ;;  %9142 = vmatprep.subr.bf16.mxu1 %v10928_v55  ;;  %8448 = vmatprep.mubr.msk.f32.mxu1 %vm9499_vm0, %v10929_v15 }
 0x299   :  { %v4541_v41 = vpop.permute.xlu1 %4540  ;;  %v4592_v4 = vmul.f32 %v10528_v59, %v4539_v31  ;;  %8437 = vmatprep.mubr.msk.f32.mxu0 %vm9499_vm0, %v10929_v15 }
 0x29a   :  { %v4593_v38 = vmul.f32 %v10533_v43, %v4541_v41  ;;  %9138 = vmatpush3.bf16.msra.mxu0 %v9137_v30  ;;  %v9149_v30 = vpack.c.bf16 %v4645_v62, %v4644_v49  ;;  %v9164_v41 = vpack.c.bf16 %v4655_v61, %v4654_v11 }
 0x29b   :  { %9144 = vmatpush3.bf16.msra.mxu1 %v9143_v14  ;;  %6595 = vrot.lane.b32.xlu0 %v4592_v4, %s9502_s30  ;;  %v9155_v14 = vpack.c.bf16 %v4649_v7, %v4648_v35  ;;  %v4653_v4 = vld [vmem:[#allocation4 + $0x1d8] sm:$0xff]  ;;  %v4662_v35 = vld [vmem:[#allocation4 + $0x220] sm:$0xff]  ;;  %v4663_v7 = vld [vmem:[#allocation4 + $0x228] sm:$0xff] }
 0x29c   :  { %6674 = vrot.lane.b32.xlu1 %v4593_v38, %s9502_s30  ;;  %v5490_v56 = vpop.permute.xlu0 %5489  ;;  %9145 = vmatprep.subr.bf16.mxu0 %v10928_v55 }
 0x29d   :  { %v5569_v31 = vpop.permute.xlu1 %5568  ;;  %8438 = vmatmul.mubr.msk.f32.vlgmr.msra.gmra.mrb[62].mxu0 %vm2409_vm2, %v5490_v56  ;;  %9151 = vmatprep.subr.bf16.mxu1 %v10928_v55  ;;  %v4659_v56 = vld [vmem:[#allocation4 + $0x208] sm:$0xff] }
 0x29e   :  { %8449 = vmatmul.mubr.msk.f32.vlgmr.msra.gmra.mrb[62].mxu1 %vm2409_vm2, %v5569_v31  ;;  %9147 = vmatpush3.bf16.msra.mxu0 %v9146_v8  ;;  %v4656_v8 = vld [vmem:[#allocation4 + $0x1f0] sm:$0xff]  ;;  %v9176_v31 = vpack.c.bf16 %v4663_v7, %v4662_v35  ;;  %v4687_v35 = vld [vmem:[#allocation4 + $0x2e8] sm:$0xff] }
 0x29f   :  { %9153 = vmatpush3.bf16.msra.mxu1 %v9152_v20  ;;  %4702 = vrot.lane.b32.xlu0 %v10188_v53, %s9503_s5  ;;  %v9158_v53 = vpack.c.bf16 %v4651_v52, %v4650_v44  ;;  %v4657_v20 = vld [vmem:[#allocation4 + $0x1f8] sm:$0xff]  ;;  %v4664_v44 = vld [vmem:[#allocation4 + $0x230] sm:$0xff] }
 0x2a0   :  { %4781 = vrot.lane.b32.xlu1 %v10191_v54, %s9503_s5  ;;  %9148 = vmatprep.subr.bf16.mxu0 %v10928_v55  ;;  %v4652_v54 = vld [vmem:[#allocation4 + $0x1d0] sm:$0xff]  ;;  %v9167_v62 = vpack.c.bf16 %v4657_v20, %v4656_v8  ;;  %v4665_v52 = vld [vmem:[#allocation4 + $0x238] sm:$0xff] }
 0x2a1   :  { %9154 = vmatprep.subr.bf16.mxu1 %v10928_v55  ;;  %8470 = vmatprep.mubr.msk.f32.mxu1 %vm9499_vm0, %v10929_v15  ;;  %v9179_v61 = vpack.c.bf16 %v4665_v52, %v4664_v44  ;;  %v4681_v8 = vld [vmem:[#allocation4 + $0x2b8] sm:$0xff] }
 0x2a2   :  { %9150 = vmatpush3.bf16.msra.mxu0 %v9149_v30  ;;  %8459 = vmatprep.mubr.msk.f32.mxu0 %vm9499_vm0, %v10929_v15  ;;  %v4661_v30 = vld [vmem:[#allocation4 + $0x218] sm:$0xff] }
 0x2a3   :  { %9156 = vmatpush3.bf16.msra.mxu1 %v9155_v14  ;;  %4860 = vrot.lane.b32.xlu0 %v10202_v63, %s9503_s5  ;;  %v9161_v63 = vpack.c.bf16 %v4653_v4, %v4652_v54  ;;  %v4677_v54 = vld [vmem:[#allocation4 + $0x298] sm:$0xff] }
 0x2a4   :  { %4939 = vrot.lane.b32.xlu1 %v10205_v3, %s9503_s5  ;;  %v5648_v38 = vpop.permute.xlu0 %5647  ;;  %9157 = vmatprep.subr.bf16.mxu0 %v10928_v55  ;;  %v4658_v3 = vld [vmem:[#allocation4 + $0x200] sm:$0xff]  ;;  %v4689_v44 = vld [vmem:[#allocation4 + $0x2f8] sm:$0xff] }
 0x2a5   :  { %v5727_v49 = vpop.permute.xlu1 %5726  ;;  %8460 = vmatmul.mubr.msk.f32.vlgmr.msra.gmra.mrb[64].mxu0 %vm2409_vm2, %v5648_v38  ;;  %9163 = vmatprep.subr.bf16.mxu1 %v10928_v55  ;;  %v4680_v38 = vld [vmem:[#allocation4 + $0x2b0] sm:$0xff] }
 0x2a6   :  { %8471 = vmatmul.mubr.msk.f32.vlgmr.msra.gmra.mrb[64].mxu1 %vm2409_vm2, %v5727_v49  ;;  %9159 = vmatpush3.bf16.msra.mxu0 %v9158_v53 }
 0x2a7   :  { %9165 = vmatpush3.bf16.msra.mxu1 %v9164_v41  ;;  %5018 = vrot.lane.b32.xlu0 %v10216_v33, %s9503_s5  ;;  %v9170_v33 = vpack.c.bf16 %v4659_v56, %v4658_v3  ;;  %v4676_v41 = vld [vmem:[#allocation4 + $0x290] sm:$0xff]  ;;  %v4683_v3 = vld [vmem:[#allocation4 + $0x2c8] sm:$0xff]  ;;  %v4686_v56 = vld [vmem:[#allocation4 + $0x2e0] sm:$0xff] }
 0x2a8   :  { %5097 = vrot.lane.b32.xlu1 %v10219_v42, %s9503_s5  ;;  %9160 = vmatprep.subr.bf16.mxu0 %v10928_v55  ;;  %v4660_v42 = vld [vmem:[#allocation4 + $0x210] sm:$0xff]  ;;  %v9197_v49 = vpack.c.bf16 %v4677_v54, %v4676_v41 }
 0x2a9   :  { %9166 = vmatprep.subr.bf16.mxu1 %v10928_v55  ;;  %8492 = vmatprep.mubr.msk.f32.mxu1 %vm9499_vm0, %v10929_v15 }
 0x2aa   :  { %9162 = vmatpush3.bf16.msra.mxu0 %v9161_v63  ;;  %8481 = vmatprep.mubr.msk.f32.mxu0 %vm9499_vm0, %v10929_v15  ;;  %v9203_v63 = vpack.c.bf16 %v4681_v8, %v4680_v38 }
 0x2ab   :  { %9168 = vmatpush3.bf16.msra.mxu1 %v9167_v62  ;;  %5176 = vrot.lane.b32.xlu0 %v10230_v19, %s9503_s5  ;;  %v9173_v19 = vpack.c.bf16 %v4661_v30, %v4660_v42  ;;  %v4682_v62 = vld [vmem:[#allocation4 + $0x2c0] sm:$0xff]  ;;  %v4685_v42 = vld [vmem:[#allocation4 + $0x2d8] sm:$0xff] }
 0x2ac   :  { %5255 = vrot.lane.b32.xlu1 %v10233_v21, %s9503_s5  ;;  %v5806_v14 = vpop.permute.xlu0 %5805  ;;  %9169 = vmatprep.subr.bf16.mxu0 %v10928_v55  ;;  %v4666_v21 = vld [vmem:[#allocation4 + $0x240] sm:$0xff]  ;;  %v9206_v7 = vpack.c.bf16 %v4683_v3, %v4682_v62 }
 0x2ad   :  { %v5885_v11 = vpop.permute.xlu1 %5884  ;;  %8482 = vmatmul.mubr.msk.f32.vlgmr.msra.gmra.mrb[66].mxu0 %vm2409_vm2, %v5806_v14  ;;  %9175 = vmatprep.subr.bf16.mxu1 %v10928_v55  ;;  %v4688_v14 = vld [vmem:[#allocation4 + $0x2f0] sm:$0xff] }
 0x2ae   :  { %8493 = vmatmul.mubr.msk.f32.vlgmr.msra.gmra.mrb[66].mxu1 %vm2409_vm2, %v5885_v11  ;;  %9171 = vmatpush3.bf16.msra.mxu0 %v9170_v33  ;;  %v9212_v33 = vpack.c.bf16 %v4687_v35, %v4686_v56  ;;  %v6779_v56 = vsub.f32 1.0, %v10242_v58 }
 0x2af   :  { %5334 = vrot.lane.b32.xlu0 %v10250_v16, %s9503_s5  ;;  %9177 = vmatpush3.bf16.msra.mxu1 %v9176_v31  ;;  %v4667_v16 = vld [vmem:[#allocation4 + $0x248] sm:$0xff]  ;;  %v4684_v31 = vld [vmem:[#allocation4 + $0x2d0] sm:$0xff] }
 0x2b0   :  { %5413 = vrot.lane.b32.xlu1 %v10254_v17, %s9503_s5  ;;  %9172 = vmatprep.subr.bf16.mxu0 %v10928_v55  ;;  %v4670_v17 = vld [vmem:[#allocation4 + $0x260] sm:$0xff]  ;;  %v9209_v11 = vpack.c.bf16 %v4685_v42, %v4684_v31 }
 0x2b1   :  { %9178 = vmatprep.subr.bf16.mxu1 %v10928_v55  ;;  %8514 = vmatprep.mubr.msk.f32.mxu1 %vm9499_vm0, %v10929_v15 }
 0x2b2   :  { %9174 = vmatpush3.bf16.msra.mxu0 %v9173_v19  ;;  %8503 = vmatprep.mubr.msk.f32.mxu0 %vm9499_vm0, %v10929_v15  ;;  %v9215_v19 = vpack.c.bf16 %v4689_v44, %v4688_v14  ;;  %v9398_v14 = vld [vmem:[%s10899_s0 + $0x2] sm:$0x3] }
 0x2b3   :  { %5492 = vrot.lane.b32.xlu0 %v10276_v50, %s9503_s5  ;;  %9180 = vmatpush3.bf16.msra.mxu1 %v9179_v61  ;;  %v4671_v50 = vld [vmem:[#allocation4 + $0x268] sm:$0xff]  ;;  %v4690_v61 = vld [vmem:[#allocation4 + $0x300] sm:$0xff]  ;;  %v6805_v44 = vmul.f32 %v9398_v14, %v6779_v56 }
 0x2b4   :  { %5571 = vrot.lane.b32.xlu1 %v10280_v36, %s9503_s5  ;;  %9181 = vmatprep.subr.bf16.mxu0 %v10928_v55  ;;  %v9182_v36 = vpack.c.bf16 %v4667_v16, %v4666_v21  ;;  %v4691_v21 = vld [vmem:[#allocation4 + $0x308] sm:$0xff]  ;;  %v4694_v16 = vld [vmem:[#allocation4 + $0x320] sm:$0xff] }
 0x2b5   :  { %9187 = vmatprep.subr.bf16.mxu1 %v10928_v55 }
 0x2b7   :  { %5650 = vrot.lane.b32.xlu0 %v10302_v29, %s9503_s5  ;;  %v9188_v29 = vpack.c.bf16 %v4671_v50, %v4670_v17  ;;  %v4695_v17 = vld [vmem:[#allocation4 + $0x328] sm:$0xff]  ;;  %v9218_v50 = vpack.c.bf16 %v4691_v21, %v4690_v61 }
 0x2b8   :  { %5729 = vrot.lane.b32.xlu1 %v10306_v51, %s9503_s5  ;;  %v4668_v51 = vld [vmem:[#allocation4 + $0x250] sm:$0xff] }
 0x2bb   :  { %5808 = vrot.lane.b32.xlu0 %v10328_v48, %s9503_s5  ;;  %v4669_v48 = vld [vmem:[#allocation4 + $0x258] sm:$0xff] }
 0x2bc   :  { %5887 = vrot.lane.b32.xlu1 %v10332_v12, %s9503_s5 }
 0x2bf   :  { %5966 = vrot.lane.b32.xlu0 %v10388_v24, %s9503_s5  ;;  %v4672_v24 = vld [vmem:[#allocation4 + $0x270] sm:$0xff] }
 0x2c0   :  { %6045 = vrot.lane.b32.xlu1 %v10391_v28, %s9503_s5  ;;  %v4673_v28 = vld [vmem:[#allocation4 + $0x278] sm:$0xff] }
 0x2c3   :  { %6124 = vrot.lane.b32.xlu0 %v10399_v46, %s9503_s5 }
 0x2c4   :  { %6203 = vrot.lane.b32.xlu1 %v10406_v39, %s9503_s5  ;;  %v9185_v39 = vpack.c.bf16 %v4669_v48, %v4668_v51  ;;  %v4693_v51 = vld [vmem:[#allocation4 + $0x318] sm:$0xff] }
 0x2c7   :  { %6282 = vrot.lane.b32.xlu0 %v10413_v25, %s9503_s5  ;;  %v4674_v25 = vld [vmem:[#allocation4 + $0x280] sm:$0xff] }
 0x2c8   :  { %6361 = vrot.lane.b32.xlu1 %v10420_v32, %s9503_s5  ;;  %v4675_v32 = vld [vmem:[#allocation4 + $0x288] sm:$0xff] }
 0x2cb   :  { %6440 = vrot.lane.b32.xlu0 %v10430_v23, %s9503_s5  ;;  %v4678_v23 = vld [vmem:[#allocation4 + $0x2a0] sm:$0xff] }
 0x2cc   :  { %6519 = vrot.lane.b32.xlu1 %v10433_v9, %s9503_s5  ;;  %v4679_v9 = vld [vmem:[#allocation4 + $0x2a8] sm:$0xff] }
 0x2cd   :  { %v9200_v53 = vpack.c.bf16 %v4679_v9, %v4678_v23 }
 0x2cf   :  { %6598 = vrot.lane.b32.xlu0 %v10444_v47, %s9503_s5  ;;  %v9194_v47 = vpack.c.bf16 %v4675_v32, %v4674_v25 }
 0x2d0   :  { %6677 = vrot.lane.b32.xlu1 %v10447_v0, %s9503_s5  ;;  %v9191_v0 = vpack.c.bf16 %v4673_v28, %v4672_v24  ;;  %v4697_v24 = vld [vmem:[#allocation4 + $0x338] sm:$0xff] }
 0x2ed   :  { %v5964_v12 = vpop.permute.xlu0 %5963 }
 0x2ee   :  { %v6043_v46 = vpop.permute.xlu1 %6042  ;;  %8504 = vmatmul.mubr.msk.f32.vlgmr.msra.gmra.mrb[68].mxu0 %vm2409_vm2, %v5964_v12  ;;  %v4696_v12 = vld [vmem:[#allocation4 + $0x330] sm:$0xff] }
 0x2ef   :  { %8515 = vmatmul.mubr.msk.f32.vlgmr.msra.gmra.mrb[68].mxu1 %vm2409_vm2, %v6043_v46  ;;  %9183 = vmatpush3.bf16.msra.mxu0 %v9182_v36  ;;  %v9224_v36 = vpack.c.bf16 %v4695_v17, %v4694_v16 }
 0x2f0   :  { %9189 = vmatpush3.bf16.msra.mxu1 %v9188_v29  ;;  %9184 = vmatprep.subr.bf16.mxu0 %v10928_v55  ;;  %v4692_v29 = vld [vmem:[#allocation4 + $0x310] sm:$0xff] }
 0x2f1   :  { %9190 = vmatprep.subr.bf16.mxu1 %v10928_v55  ;;  %8536 = vmatprep.mubr.msk.f32.mxu1 %vm9499_vm0, %v10929_v15  ;;  %v9221_v46 = vpack.c.bf16 %v4693_v51, %v4692_v29 }
 0x2f2   :  { %8525 = vmatprep.mubr.msk.f32.mxu0 %vm9499_vm0, %v10929_v15 }
 0x2f3   :  { %9186 = vmatpush3.bf16.msra.mxu0 %v9185_v39  ;;  %v9227_v39 = vpack.c.bf16 %v4697_v24, %v4696_v12  ;;  %v9399_v12 = vld [vmem:[%s10899_s0 + $0x4] sm:$0x3] }
 0x2f4   :  { %9192 = vmatpush3.bf16.msra.mxu1 %v9191_v0  ;;  %9193 = vmatprep.subr.bf16.mxu0 %v10928_v55 }
 0x2f5   :  { %v6122_v4 = vpop.permute.xlu0 %6121  ;;  %9199 = vmatprep.subr.bf16.mxu1 %v10928_v55 }
 0x2f6   :  { %v6201_v20 = vpop.permute.xlu1 %6200  ;;  %8526 = vmatmul.mubr.msk.f32.vlgmr.msra.gmra.mrb[70].mxu0 %vm2409_vm2, %v6122_v4 }
 0x2f7   :  { %8537 = vmatmul.mubr.msk.f32.vlgmr.msra.gmra.mrb[70].mxu1 %vm2409_vm2, %v6201_v20  ;;  %9195 = vmatpush3.bf16.msra.mxu0 %v9194_v47 }
 0x2f8   :  { %9201 = vmatpush3.bf16.msra.mxu1 %v9200_v53  ;;  %9196 = vmatprep.subr.bf16.mxu0 %v10928_v55 }
 0x2f9   :  { %9202 = vmatprep.subr.bf16.mxu1 %v10928_v55  ;;  %8558 = vmatprep.mubr.msk.f32.mxu1 %vm9499_vm0, %v10929_v15 }
 0x2fa   :  { %8547 = vmatprep.mubr.msk.f32.mxu0 %vm9499_vm0, %v10929_v15 }
 0x2fb   :  { %9198 = vmatpush3.bf16.msra.mxu0 %v9197_v49 }
 0x2fc   :  { %9204 = vmatpush3.bf16.msra.mxu1 %v9203_v63  ;;  %9205 = vmatprep.subr.bf16.mxu0 %v10928_v55  ;;  %v6778_v63 = vsub.f32 1.0, %v10237_v27 }
 0x2fd   :  { %v6280_v30 = vpop.permute.xlu0 %6279  ;;  %9211 = vmatprep.subr.bf16.mxu1 %v10928_v55 }
 0x2fe   :  { %v6359_v52 = vpop.permute.xlu1 %6358  ;;  %8548 = vmatmul.mubr.msk.f32.vlgmr.msra.gmra.mrb[72].mxu0 %vm2409_vm2, %v6280_v30 }
 0x2ff   :  { %8559 = vmatmul.mubr.msk.f32.vlgmr.msra.gmra.mrb[72].mxu1 %vm2409_vm2, %v6359_v52  ;;  %9207 = vmatpush3.bf16.msra.mxu0 %v9206_v7 }
 0x300   :  { %9213 = vmatpush3.bf16.msra.mxu1 %v9212_v33  ;;  %9208 = vmatprep.subr.bf16.mxu0 %v10928_v55  ;;  %v9397_v33 = vld [vmem:[%s10899_s0] sm:$0x3] }
 0x301   :  { %9214 = vmatprep.subr.bf16.mxu1 %v10928_v55  ;;  %8580 = vmatprep.mubr.msk.f32.mxu1 %vm9499_vm0, %v10929_v15  ;;  %v6804_v31 = vmul.f32 %v9397_v33, %v6778_v63 }
 0x302   :  { %8569 = vmatprep.mubr.msk.f32.mxu0 %vm9499_vm0, %v10929_v15 }
 0x303   :  { %9210 = vmatpush3.bf16.msra.mxu0 %v9209_v11 }
 0x304   :  { %9216 = vmatpush3.bf16.msra.mxu1 %v9215_v19  ;;  %9217 = vmatprep.subr.bf16.mxu0 %v10928_v55 }
 0x305   :  { %v6438_v48 = vpop.permute.xlu0 %6437  ;;  %9223 = vmatprep.subr.bf16.mxu1 %v10928_v55 }
 0x306   :  { %v6517_v28 = vpop.permute.xlu1 %6516  ;;  %8570 = vmatmul.mubr.msk.f32.vlgmr.msra.gmra.mrb[74].mxu0 %vm2409_vm2, %v6438_v48 }
 0x307   :  { %8581 = vmatmul.mubr.msk.f32.vlgmr.msra.gmra.mrb[74].mxu1 %vm2409_vm2, %v6517_v28  ;;  %9219 = vmatpush3.bf16.msra.mxu0 %v9218_v50 }
 0x308   :  { %9225 = vmatpush3.bf16.msra.mxu1 %v9224_v36  ;;  %9220 = vmatprep.subr.bf16.mxu0 %v10928_v55 }
 0x309   :  { %9226 = vmatprep.subr.bf16.mxu1 %v10928_v55  ;;  %8602 = vmatprep.mubr.msk.f32.mxu1 %vm9499_vm0, %v10929_v15 }
 0x30a   :  { %8591 = vmatprep.mubr.msk.f32.mxu0 %vm9499_vm0, %v10929_v15 }
 0x30b   :  { %9222 = vmatpush3.bf16.msra.mxu0 %v9221_v46 }
 0x30c   :  { %9228 = vmatpush3.bf16.msra.mxu1 %v9227_v39  ;;  %v9400_v39 = vld [vmem:[%s10899_s0 + $0x6] sm:$0x3] }
 0x30d   :  { %v6596_v0 = vpop.permute.xlu0 %6595 }
 0x30e   :  { %v6675_v25 = vpop.permute.xlu1 %6674  ;;  %8592 = vmatmul.mubr.msk.f32.vlgmr.msra.gmra.mrb[76].mxu0 %vm2409_vm2, %v6596_v0 }
 0x30f   :  { %8603 = vmatmul.mubr.msk.f32.vlgmr.msra.gmra.mrb[76].mxu1 %vm2409_vm2, %v6675_v25 }
 0x311   :  { %v4703_v32 = vpop.permute.xlu0 %4702 }
 0x312   :  { %v4782_v23 = vpop.permute.xlu1 %4781 }
 0x315   :  { %v4861_v4 = vpop.permute.xlu0 %4860 }
 0x316   :  { %v4940_v15 = vpop.permute.xlu1 %4939 }
 0x319   :  { %v5019_v30 = vpop.permute.xlu0 %5018 }
 0x31a   :  { %v5098_v11 = vpop.permute.xlu1 %5097 }
 0x31d   :  { %v5177_v46 = vpop.permute.xlu0 %5176 }
 0x321   :  { %v5335_v63 = vpop.permute.xlu0 %5334 }
 0x348   :  { %v4773_v9 = vpop.f32.mrb[52].mxu0 }
 0x349   :  { %v4774_v47 = vadd.f32 %v4773_v9, %v4703_v32  ;;  %v4852_v53 = vpop.f32.mrb[52].mxu1  ;;  %v8329_v55 = vpop.f32.mrb[53].mxu0 }
 0x34a   :  { %v4853_v41 = vadd.f32 %v4852_v53, %v4782_v23  ;;  %v8340_v54 = vpop.f32.mrb[53].mxu1  ;;  %v5256_v32 = vpop.permute.xlu1 %5255 }
 0x34b   :  { %9344 = vtanh.f32 %v4774_v47 }
 0x34c   :  { %9346 = vtanh.f32 %v4853_v41 }
 0x350   :  { %v4931_v38 = vpop.f32.mrb[54].mxu0 }
 0x351   :  { %v4932_v8 = vadd.f32 %v4931_v38, %v4861_v4  ;;  %v5010_v20 = vpop.f32.mrb[54].mxu1  ;;  %v8351_v49 = vpop.f32.mrb[55].mxu0 }
 0x352   :  { %v5011_v62 = vadd.f32 %v5010_v20, %v4940_v15  ;;  %v8362_v3 = vpop.f32.mrb[55].mxu1 }
 0x353   :  { %9348 = vtanh.f32 %v4932_v8  ;;  %v9401_v8 = vld [vmem:[%s10899_s0 + $0x8] sm:$0x3] }
 0x354   :  { %9350 = vtanh.f32 %v5011_v62  ;;  %v9402_v62 = vld [vmem:[%s10899_s0 + $0xa] sm:$0x3] }
 0x355   :  { %v9345_v35 = vpop.eup %9344 }
 0x356   :  { %v9347_v7 = vpop.eup %9346  ;;  %v6830_v42 = vmul.f32 %v9345_v35, %v10237_v27  ;;  %v6780_v27 = vsub.f32 1.0, %v10261_v18  ;;  %v5414_v35 = vpop.permute.xlu1 %5413 }
 0x357   :  { %v6831_v52 = vmul.f32 %v9347_v7, %v10242_v58  ;;  %v6781_v58 = vsub.f32 1.0, %v10268_v34 }
 0x358   :  { %v6856_v19 = vadd.f32 %v6830_v42, %v6804_v31  ;;  %v5089_v61 = vpop.f32.mrb[56].mxu0  ;;  %v6806_v24 = vmul.f32 %v9399_v12, %v6780_v27 }
 0x359   :  { %v6857_v21 = vadd.f32 %v6831_v52, %v6805_v44  ;;  %v5090_v16 = vadd.f32 %v5089_v61, %v5019_v30  ;;  %v5168_v17 = vpop.f32.mrb[56].mxu1  ;;  %v8373_v50 = vpop.f32.mrb[57].mxu0  ;;  %v6807_v0 = vmul.f32 %v9400_v39, %v6781_v58  ;;  %v9403_v61 = vld [vmem:[%s10899_s0 + $0xc] sm:$0x3] }
 0x35a   :  { %6883 = vst.msk [vmem:[%s10905_s6] sm:$0x3] %vm6882_vm3, %v6856_v19  ;;  %v5169_v36 = vadd.f32 %v5168_v17, %v5098_v11  ;;  %v8384_v29 = vpop.f32.mrb[57].mxu1  ;;  %v5493_v17 = vpop.permute.xlu0 %5492  ;;  %v9404_v50 = vld [vmem:[%s10899_s0 + $0xe] sm:$0x3] }
 0x35b   :  { %6884 = vst.msk [vmem:[%s10905_s6 + $0x2] sm:$0x3] %vm6882_vm3, %v6857_v21  ;;  %9352 = vtanh.f32 %v5090_v16  ;;  %v5572_v29 = vpop.permute.xlu1 %5571 }
 0x35c   :  { %9354 = vtanh.f32 %v5169_v36 }
 0x35d   :  { %v9349_v51 = vpop.eup %9348 }
 0x35e   :  { %v9351_v48 = vpop.eup %9350  ;;  %v6832_v28 = vmul.f32 %v9349_v51, %v10261_v18  ;;  %v6782_v18 = vsub.f32 1.0, %v10287_v22 }
 0x35f   :  { %v6833_v25 = vmul.f32 %v9351_v48, %v10268_v34  ;;  %v6783_v34 = vsub.f32 1.0, %v10294_v26 }
 0x360   :  { %v6858_v23 = vadd.f32 %v6832_v28, %v6806_v24  ;;  %v5247_v9 = vpop.f32.mrb[58].mxu0  ;;  %v6808_v20 = vmul.f32 %v9401_v8, %v6782_v18  ;;  %v5730_v18 = vpop.permute.xlu1 %5729 }
 0x361   :  { %v6859_v47 = vadd.f32 %v6833_v25, %v6807_v0  ;;  %v5248_v53 = vadd.f32 %v5247_v9, %v5177_v46  ;;  %v5326_v55 = vpop.f32.mrb[58].mxu1  ;;  %v8395_v41 = vpop.f32.mrb[59].mxu0  ;;  %v6809_v3 = vmul.f32 %v9402_v62, %v6783_v34 }
 0x362   :  { %6885 = vst.msk [vmem:[%s10905_s6 + $0x4] sm:$0x3] %vm6882_vm3, %v6858_v23  ;;  %v5327_v54 = vadd.f32 %v5326_v55, %v5256_v32  ;;  %v8406_v4 = vpop.f32.mrb[59].mxu1  ;;  %v9405_v32 = vld [vmem:[%s10899_s0 + $0x10] sm:$0x3] }
 0x363   :  { %6886 = vst.msk [vmem:[%s10905_s6 + $0x6] sm:$0x3] %vm6882_vm3, %v6859_v47  ;;  %9356 = vtanh.f32 %v5248_v53  ;;  %v5651_v47 = vpop.permute.xlu0 %5650  ;;  %v9406_v53 = vld [vmem:[%s10899_s0 + $0x12] sm:$0x3] }
 0x364   :  { %9358 = vtanh.f32 %v5327_v54 }
 0x365   :  { %v9353_v15 = vpop.eup %9352 }
 0x366   :  { %v9355_v38 = vpop.eup %9354  ;;  %v6834_v49 = vmul.f32 %v9353_v15, %v10287_v22  ;;  %v6784_v22 = vsub.f32 1.0, %v10313_v2 }
 0x367   :  { %v6835_v56 = vmul.f32 %v9355_v38, %v10294_v26  ;;  %v6785_v26 = vsub.f32 1.0, %v10320_v60 }
 0x368   :  { %v6860_v7 = vadd.f32 %v6834_v49, %v6808_v20  ;;  %v5405_v33 = vpop.f32.mrb[60].mxu0  ;;  %v6810_v21 = vmul.f32 %v9403_v61, %v6784_v22 }
 0x369   :  { %v6861_v31 = vadd.f32 %v6835_v56, %v6809_v3  ;;  %v5406_v42 = vadd.f32 %v5405_v33, %v5335_v63  ;;  %v5484_v30 = vpop.f32.mrb[60].mxu1  ;;  %v8417_v14 = vpop.f32.mrb[61].mxu0  ;;  %v6811_v27 = vmul.f32 %v9404_v50, %v6785_v26  ;;  %v9407_v3 = vld [vmem:[%s10899_s0 + $0x14] sm:$0x3]  ;;  %v9408_v33 = vld [vmem:[%s10899_s0 + $0x16] sm:$0x3] }
 0x36a   :  { %6887 = vst.msk [vmem:[%s10905_s6 + $0x8] sm:$0x3] %vm6882_vm3, %v6860_v7  ;;  %v5485_v44 = vadd.f32 %v5484_v30, %v5414_v35  ;;  %v8428_v52 = vpop.f32.mrb[61].mxu1  ;;  %v5809_v7 = vpop.permute.xlu0 %5808  ;;  %v9409_v50 = vld [vmem:[%s10899_s0 + $0x18] sm:$0x3] }
 0x36b   :  { %6888 = vst.msk [vmem:[%s10905_s6 + $0xa] sm:$0x3] %vm6882_vm3, %v6861_v31  ;;  %9360 = vtanh.f32 %v5406_v42  ;;  %v5888_v30 = vpop.permute.xlu1 %5887 }
 0x36c   :  { %9362 = vtanh.f32 %v5485_v44 }
 0x36d   :  { %v9357_v11 = vpop.eup %9356 }
 0x36e   :  { %v9359_v19 = vpop.eup %9358  ;;  %v6836_v16 = vmul.f32 %v9357_v11, %v10313_v2  ;;  %v6786_v2 = vsub.f32 1.0, %v10339_v10 }
 0x36f   :  { %v6837_v36 = vmul.f32 %v9359_v19, %v10320_v60  ;;  %v6787_v60 = vsub.f32 1.0, %v10343_v45 }
 0x370   :  { %v6862_v58 = vadd.f32 %v6836_v16, %v6810_v21  ;;  %v5563_v51 = vpop.f32.mrb[62].mxu0  ;;  %v6812_v23 = vmul.f32 %v9405_v32, %v6786_v2  ;;  %v9412_v32 = vld [vmem:[%s10899_s0 + $0x1e] sm:$0x3] }
 0x371   :  { %v6863_v48 = vadd.f32 %v6837_v36, %v6811_v27  ;;  %v5564_v12 = vadd.f32 %v5563_v51, %v5493_v17  ;;  %v5642_v24 = vpop.f32.mrb[62].mxu1  ;;  %v8439_v28 = vpop.f32.mrb[63].mxu0  ;;  %v6813_v55 = vmul.f32 %v9406_v53, %v6787_v60  ;;  %v9411_v60 = vld [vmem:[%s10899_s0 + $0x1c] sm:$0x3] }
 0x372   :  { %6889 = vst.msk [vmem:[%s10905_s6 + $0xc] sm:$0x3] %vm6882_vm3, %v6862_v58  ;;  %v5643_v46 = vadd.f32 %v5642_v24, %v5572_v29  ;;  %v8450_v39 = vpop.f32.mrb[63].mxu1  ;;  %v9410_v29 = vld [vmem:[%s10899_s0 + $0x1a] sm:$0x3]  ;;  %v10934_v24 = vld [vmem:[#allocation10_spill] sm:$0xff] }
 0x373   :  { %6890 = vst.msk [vmem:[%s10905_s6 + $0xe] sm:$0x3] %vm6882_vm3, %v6863_v48  ;;  %9364 = vtanh.f32 %v5564_v12  ;;  %v6792_v28 = vsub.f32 1.0, %v10934_v24 }
 0x374   :  { %9366 = vtanh.f32 %v5643_v46 }
 0x375   :  { %v9361_v0 = vpop.eup %9360 }
 0x376   :  { %v9363_v25 = vpop.eup %9362  ;;  %v6838_v9 = vmul.f32 %v9361_v0, %v10339_v10  ;;  %v6788_v10 = vsub.f32 1.0, %v10351_v40  ;;  %v6818_v0 = vmul.f32 %v9411_v60, %v6792_v28 }
 0x377   :  { %v6839_v41 = vmul.f32 %v9363_v25, %v10343_v45  ;;  %v6789_v45 = vsub.f32 1.0, %v10355_v6 }
 0x378   :  { %v6864_v54 = vadd.f32 %v6838_v9, %v6812_v23  ;;  %v5721_v4 = vpop.f32.mrb[64].mxu0  ;;  %v6814_v56 = vmul.f32 %v9407_v3, %v6788_v10 }
 0x379   :  { %v6865_v34 = vadd.f32 %v6839_v41, %v6813_v55  ;;  %v5722_v15 = vadd.f32 %v5721_v4, %v5651_v47  ;;  %v5800_v38 = vpop.f32.mrb[64].mxu1  ;;  %v8461_v8 = vpop.f32.mrb[65].mxu0  ;;  %v6815_v31 = vmul.f32 %v9408_v33, %v6789_v45 }
 0x37a   :  { %6891 = vst.msk [vmem:[%s10905_s6 + $0x10] sm:$0x3] %vm6882_vm3, %v6864_v54  ;;  %v5801_v20 = vadd.f32 %v5800_v38, %v5730_v18  ;;  %v8472_v49 = vpop.f32.mrb[65].mxu1  ;;  %v5967_v55 = vpop.permute.xlu0 %5966 }
 0x37b   :  { %6892 = vst.msk [vmem:[%s10905_s6 + $0x12] sm:$0x3] %vm6882_vm3, %v6865_v34  ;;  %9368 = vtanh.f32 %v5722_v15  ;;  %v6046_v41 = vpop.permute.xlu1 %6045 }
 0x37c   :  { %9370 = vtanh.f32 %v5801_v20 }
 0x37d   :  { %v9365_v63 = vpop.eup %9364 }
 0x37e   :  { %v9367_v62 = vpop.eup %9366  ;;  %v6840_v35 = vmul.f32 %v9365_v63, %v10351_v40  ;;  %v6790_v40 = vsub.f32 1.0, %v10361_v5  ;;  %v6125_v8 = vpop.permute.xlu0 %6124 }
 0x37f   :  { %v6841_v42 = vmul.f32 %v9367_v62, %v10355_v6  ;;  %v10933_v6 = vld [vmem:[#allocation9_spill] sm:$0xff]  ;;  %v6204_v10 = vpop.permute.xlu1 %6203  ;;  %v10936_v62 = vld [vmem:[#allocation12_spill] sm:$0xff] }
 0x380   :  { %v6866_v14 = vadd.f32 %v6840_v35, %v6814_v56  ;;  %v5879_v22 = vpop.f32.mrb[66].mxu0  ;;  %v6791_v21 = vsub.f32 1.0, %v10933_v6  ;;  %v6816_v27 = vmul.f32 %v9409_v50, %v6790_v40  ;;  %v6794_v3 = vsub.f32 1.0, %v10936_v62 }
 0x381   :  { %v6867_v44 = vadd.f32 %v6841_v42, %v6815_v31  ;;  %v5880_v52 = vadd.f32 %v5879_v22, %v5809_v7  ;;  %v5958_v26 = vpop.f32.mrb[66].mxu1  ;;  %v8483_v11 = vpop.f32.mrb[67].mxu0  ;;  %v6795_v7 = vsub.f32 1.0, %v10461_v1  ;;  %v9413_v42 = vld [vmem:[%s10899_s0 + $0x20] sm:$0x3] }
 0x382   :  { %6893 = vst.msk [vmem:[%s10905_s6 + $0x14] sm:$0x3] %vm6882_vm3, %v6866_v14  ;;  %v5959_v19 = vadd.f32 %v5958_v26, %v5888_v30  ;;  %v8494_v61 = vpop.f32.mrb[67].mxu1  ;;  %v6817_v58 = vmul.f32 %v9410_v29, %v6791_v21  ;;  %v6820_v30 = vmul.f32 %v9413_v42, %v6794_v3  ;;  %v6283_v22 = vpop.permute.xlu0 %6282 }
 0x383   :  { %6894 = vst.msk [vmem:[%s10905_s6 + $0x16] sm:$0x3] %vm6882_vm3, %v6867_v44  ;;  %9372 = vtanh.f32 %v5880_v52  ;;  %v9414_v44 = vld [vmem:[%s10899_s0 + $0x22] sm:$0x3]  ;;  %v6362_v11 = vpop.permute.xlu1 %6361 }
 0x384   :  { %9374 = vtanh.f32 %v5959_v19  ;;  %v6821_v52 = vmul.f32 %v9414_v44, %v6795_v7 }
 0x385   :  { %v9369_v16 = vpop.eup %9368 }
 0x386   :  { %v9371_v17 = vpop.eup %9370  ;;  %v6842_v36 = vmul.f32 %v9369_v16, %v10361_v5  ;;  %v10935_v5 = vld [vmem:[#allocation11_spill] sm:$0xff]  ;;  %v6441_v28 = vpop.permute.xlu0 %6440 }
 0x387   :  { %v6843_v51 = vmul.f32 %v9371_v17, %v10933_v6  ;;  %v6793_v2 = vsub.f32 1.0, %v10935_v5  ;;  %v10937_v17 = vld [vmem:[#allocation13_spill] sm:$0xff] }
 0x388   :  { %v6868_v48 = vadd.f32 %v6842_v36, %v6816_v27  ;;  %v6796_v50 = vsub.f32 1.0, %v10937_v17 }
 0x389   :  { %v6869_v12 = vadd.f32 %v6843_v51, %v6817_v58  ;;  %v6819_v23 = vmul.f32 %v9412_v32, %v6793_v2 }
 0x38a   :  { %6895 = vst.msk [vmem:[%s10905_s6 + $0x18] sm:$0x3] %vm6882_vm3, %v6868_v48  ;;  %v9415_v48 = vld [vmem:[%s10899_s0 + $0x24] sm:$0x3] }
 0x38b   :  { %6896 = vst.msk [vmem:[%s10905_s6 + $0x1a] sm:$0x3] %vm6882_vm3, %v6869_v12  ;;  %v6822_v12 = vmul.f32 %v9415_v48, %v6796_v50 }
 0x38d   :  { %v9373_v46 = vpop.eup %9372 }
 0x38e   :  { %v9375_v39 = vpop.eup %9374  ;;  %v6844_v25 = vmul.f32 %v9373_v46, %v10934_v24 }
 0x38f   :  { %v6845_v9 = vmul.f32 %v9375_v39, %v10935_v5  ;;  %v9416_v5 = vld [vmem:[%s10899_s0 + $0x26] sm:$0x3]  ;;  %v6520_v39 = vpop.permute.xlu1 %6519 }
 0x390   :  { %v6870_v47 = vadd.f32 %v6844_v25, %v6818_v0 }
 0x391   :  { %v6871_v53 = vadd.f32 %v6845_v9, %v6819_v23 }
 0x392   :  { %6897 = vst.msk [vmem:[%s10905_s6 + $0x1c] sm:$0x3] %vm6882_vm3, %v6870_v47  ;;  %v10939_v47 = vld [vmem:[#allocation15_spill] sm:$0xff] }
 0x393   :  { %6898 = vst.msk [vmem:[%s10905_s6 + $0x1e] sm:$0x3] %vm6882_vm3, %v6871_v53  ;;  %v6798_v53 = vsub.f32 1.0, %v10939_v47 }
 0x3c1   :  { %v6037_v18 = vpop.f32.mrb[68].mxu0 }
 0x3c2   :  { %v6038_v54 = vadd.f32 %v6037_v18, %v5967_v55  ;;  %v6116_v4 = vpop.f32.mrb[68].mxu1  ;;  %v8505_v34 = vpop.f32.mrb[69].mxu0  ;;  %v6799_v18 = vsub.f32 1.0, %v10497_v37 }
 0x3c3   :  { %v6117_v15 = vadd.f32 %v6116_v4, %v6046_v41  ;;  %v8516_v38 = vpop.f32.mrb[69].mxu1  ;;  %v9417_v34 = vld [vmem:[%s10899_s0 + $0x28] sm:$0x3] }
 0x3c4   :  { %9376 = vtanh.f32 %v6038_v54 }
 0x3c5   :  { %9378 = vtanh.f32 %v6117_v15  ;;  %v6824_v15 = vmul.f32 %v9417_v34, %v6798_v53 }
 0x3c9   :  { %v6195_v20 = vpop.f32.mrb[70].mxu0 }
 0x3ca   :  { %v6196_v49 = vadd.f32 %v6195_v20, %v6125_v8  ;;  %v6274_v45 = vpop.f32.mrb[70].mxu1  ;;  %v8527_v63 = vpop.f32.mrb[71].mxu0 }
 0x3cb   :  { %v6275_v56 = vadd.f32 %v6274_v45, %v6204_v10  ;;  %v8538_v35 = vpop.f32.mrb[71].mxu1  ;;  %v6599_v8 = vpop.permute.xlu0 %6598  ;;  %v9418_v10 = vld [vmem:[%s10899_s0 + $0x2a] sm:$0x3] }
 0x3cc   :  { %9380 = vtanh.f32 %v6196_v49  ;;  %v6825_v20 = vmul.f32 %v9418_v10, %v6799_v18  ;;  %v6678_v45 = vpop.permute.xlu1 %6677 }
 0x3cd   :  { %9382 = vtanh.f32 %v6275_v56 }
 0x3ce   :  { %v9377_v33 = vpop.eup %9376 }
 0x3cf   :  { %v9379_v31 = vpop.eup %9378  ;;  %v6846_v14 = vmul.f32 %v9377_v33, %v10936_v62  ;;  %v6800_v33 = vsub.f32 1.0, %v10510_v13 }
 0x3d0   :  { %v6847_v26 = vmul.f32 %v9379_v31, %v10461_v1  ;;  %v10938_v1 = vld [vmem:[#allocation14_spill] sm:$0xff] }
 0x3d1   :  { %v6872_v40 = vadd.f32 %v6846_v14, %v6820_v30  ;;  %v6353_v19 = vpop.f32.mrb[72].mxu0  ;;  %v6797_v29 = vsub.f32 1.0, %v10938_v1 }
 0x3d2   :  { %v6873_v61 = vadd.f32 %v6847_v26, %v6821_v52  ;;  %v6354_v6 = vadd.f32 %v6353_v19, %v6283_v22  ;;  %v6432_v21 = vpop.f32.mrb[72].mxu1  ;;  %v8549_v16 = vpop.f32.mrb[73].mxu0  ;;  %v9419_v22 = vld [vmem:[%s10899_s0 + $0x2c] sm:$0x3]  ;;  %v9420_v26 = vld [vmem:[%s10899_s0 + $0x2e] sm:$0x3] }
 0x3d3   :  { %6899 = vst.msk [vmem:[%s10905_s6 + $0x20] sm:$0x3] %vm6882_vm3, %v6872_v40  ;;  %v6433_v27 = vadd.f32 %v6432_v21, %v6362_v11  ;;  %v8560_v36 = vpop.f32.mrb[73].mxu1  ;;  %v6823_v2 = vmul.f32 %v9416_v5, %v6797_v29  ;;  %v6826_v44 = vmul.f32 %v9419_v22, %v6800_v33 }
 0x3d4   :  { %6900 = vst.msk [vmem:[%s10905_s6 + $0x22] sm:$0x3] %vm6882_vm3, %v6873_v61  ;;  %9384 = vtanh.f32 %v6354_v6  ;;  %v6802_v6 = vsub.f32 1.0, %v10528_v59 }
 0x3d5   :  { %9386 = vtanh.f32 %v6433_v27  ;;  %v9422_v27 = vld [vmem:[%s10899_s0 + $0x32] sm:$0x3] }
 0x3d6   :  { %v9381_v58 = vpop.eup %9380 }
 0x3d7   :  { %v9383_v51 = vpop.eup %9382  ;;  %v6848_v24 = vmul.f32 %v9381_v58, %v10937_v17 }
 0x3d8   :  { %v6849_v46 = vmul.f32 %v9383_v51, %v10938_v1 }
 0x3d9   :  { %v6874_v60 = vadd.f32 %v6848_v24, %v6822_v12  ;;  %v6511_v0 = vpop.f32.mrb[74].mxu0 }
 0x3da   :  { %v6875_v25 = vadd.f32 %v6849_v46, %v6823_v2  ;;  %v6512_v32 = vadd.f32 %v6511_v0, %v6441_v28  ;;  %v6590_v23 = vpop.f32.mrb[74].mxu1  ;;  %v8571_v9 = vpop.f32.mrb[75].mxu0 }
 0x3db   :  { %6901 = vst.msk [vmem:[%s10905_s6 + $0x24] sm:$0x3] %vm6882_vm3, %v6874_v60  ;;  %v6591_v55 = vadd.f32 %v6590_v23, %v6520_v39  ;;  %v8582_v41 = vpop.f32.mrb[75].mxu1 }
 0x3dc   :  { %6902 = vst.msk [vmem:[%s10905_s6 + $0x26] sm:$0x3] %vm6882_vm3, %v6875_v25  ;;  %9388 = vtanh.f32 %v6512_v32 }
 0x3dd   :  { %9390 = vtanh.f32 %v6591_v55 }
 0x3de   :  { %v9385_v54 = vpop.eup %9384 }
 0x3df   :  { %v9387_v4 = vpop.eup %9386  ;;  %v6850_v38 = vmul.f32 %v9385_v54, %v10939_v47 }
 0x3e0   :  { %v6851_v49 = vmul.f32 %v9387_v4, %v10497_v37  ;;  %v6801_v37 = vsub.f32 1.0, %v10515_v57 }
 0x3e1   :  { %v6876_v63 = vadd.f32 %v6850_v38, %v6824_v15  ;;  %v6669_v62 = vpop.f32.mrb[76].mxu0 }
 0x3e2   :  { %v6877_v3 = vadd.f32 %v6851_v49, %v6825_v20  ;;  %v6670_v56 = vadd.f32 %v6669_v62, %v6599_v8  ;;  %v6748_v35 = vpop.f32.mrb[76].mxu1  ;;  %v8593_v7 = vpop.f32.mrb[77].mxu0  ;;  %v6827_v11 = vmul.f32 %v9420_v26, %v6801_v37 }
 0x3e3   :  { %6903 = vst.msk [vmem:[%s10905_s6 + $0x28] sm:$0x3] %vm6882_vm3, %v6876_v63  ;;  %v6749_v31 = vadd.f32 %v6748_v35, %v6678_v45  ;;  %v8604_v42 = vpop.f32.mrb[77].mxu1 }
 0x3e4   :  { %6904 = vst.msk [vmem:[%s10905_s6 + $0x2a] sm:$0x3] %vm6882_vm3, %v6877_v3  ;;  %9392 = vtanh.f32 %v6670_v56 }
 0x3e5   :  { %9394 = vtanh.f32 %v6749_v31 }
 0x3e6   :  { %v9389_v30 = vpop.eup %9388 }
 0x3e7   :  { %v9391_v14 = vpop.eup %9390  ;;  %v6852_v52 = vmul.f32 %v9389_v30, %v10510_v13  ;;  %v6803_v13 = vsub.f32 1.0, %v10533_v43 }
 0x3e8   :  { %v6853_v40 = vmul.f32 %v9391_v14, %v10515_v57  ;;  %v9421_v57 = vld [vmem:[%s10899_s0 + $0x30] sm:$0x3] }
 0x3e9   :  { %v6878_v19 = vadd.f32 %v6852_v52, %v6826_v44  ;;  %v6828_v17 = vmul.f32 %v9421_v57, %v6802_v6  ;;  %v6829_v36 = vmul.f32 %v9422_v27, %v6803_v13 }
 0x3ea   :  { %v6879_v61 = vadd.f32 %v6853_v40, %v6827_v11 }
 0x3eb   :  { %6905 = vst.msk [vmem:[%s10905_s6 + $0x2c] sm:$0x3] %vm6882_vm3, %v6878_v19 }
 0x3ec   :  { %6906 = vst.msk [vmem:[%s10905_s6 + $0x2e] sm:$0x3] %vm6882_vm3, %v6879_v61 }
 0x3ee   :  { %v9393_v21 = vpop.eup %9392 }
 0x3ef   :  { %v9395_v16 = vpop.eup %9394  ;;  %v6854_v50 = vmul.f32 %v9393_v21, %v10528_v59 }
 0x3f0   :  { %v6855_v1 = vmul.f32 %v9395_v16, %v10533_v43 }
 0x3f1   :  { %v6880_v29 = vadd.f32 %v6854_v50, %v6828_v17 }
 0x3f2   :  { %v6881_v58 = vadd.f32 %v6855_v1, %v6829_v36 }
 0x3f3   :  { %6907 = vst.msk [vmem:[%s10905_s6 + $0x30] sm:$0x3] %vm6882_vm3, %v6880_v29 }
 0x3f4   :  { %6908 = vst.msk [vmem:[%s10905_s6 + $0x32] sm:$0x3] %vm6882_vm3, %v6881_v58 }
 0x3f5   :  { %6913 = vsyncpa [#allocation3], 1 }
 0x3f6   :  { %6914 = vsyncpa [#allocation5], 1 }

</bundles_post_ra>
